<compile_context>
chip_gen: v6e
topology: v6e:2x2x1
jax: 0.10.0
libtpu: 0.0.40
codegen_flags: <defaults>
</compile_context>

<pallas_src>
import math
import jax
import jax.numpy as jnp
from jax import lax
from jax.experimental import pallas as pl
from jax.experimental.pallas import tpu as pltpu


def _sigmoid(x):
    # hand-rolled (exp is a guaranteed EUP lowering in Mosaic)
    return 1.0 / (1.0 + jnp.exp(-x))


# ----------------------------------------------------------------------------------
# Fused dual-stream, multi-layer LSTM kernel.
#   grid = (2,)  -> stream 0 = question, stream 1 = history ("parallel": 2 TCs on v7x)
#   per stream: hoisted input projection + fori_loop recurrence, all layers fused.
# ----------------------------------------------------------------------------------
def _make_dual_lstm_kernel(nlayers, unroll):
    def kernel(seq_lens_ref, x_ref, h0_ref, c0_ref, *rest):
        w_refs = rest[:3 * nlayers]
        hn_ref = rest[3 * nlayers]
        cn_ref = rest[3 * nlayers + 1]
        hseq_scr, gih_scr, h_scr, c_scr = rest[3 * nlayers + 2:]

        s = pl.program_id(0)
        seq_len = seq_lens_ref[s]                 # dynamic per-stream valid length (SMEM)
        max_seq = x_ref.shape[1]
        batch = x_ref.shape[2]
        nhid = h0_ref.shape[-1]

        for layer in range(nlayers):
            wih = w_refs[3 * layer][0]            # (in_dim, 4*nhid)
            whh = w_refs[3 * layer + 1][0]        # (nhid,   4*nhid)
            b = w_refs[3 * layer + 2][0]          # (1,      4*nhid)

            if layer == 0:
                x_all = x_ref[0].reshape(max_seq * batch, x_ref.shape[3])
            else:
                x_all = hseq_scr[...].reshape(max_seq * batch, nhid)

            # Hoisted input projection over all timesteps: one well-shaped matmul.
            gih = jnp.dot(x_all, wih, preferred_element_type=jnp.float32) + b
            gih_scr[...] = gih.reshape(max_seq, batch, 4 * nhid)

            h_scr[...] = h0_ref[0, layer]
            c_scr[...] = c0_ref[0, layer]
            store_seq = layer + 1 < nlayers       # only the inter-layer activation is kept

            def step(t, carry, whh=whh, store_seq=store_seq):
                h = h_scr[...]
                c = c_scr[...]
                gates = gih_scr[t] + jnp.dot(h, whh, preferred_element_type=jnp.float32)
                # Apply the nonlinearities on the full (batch, 4*nhid) lane-dense tile,
                # then take cheap slices (PyTorch gate order i, f, g, o).
                sig = _sigmoid(gates)
                tnh = jnp.tanh(gates)
                i_g = sig[:, 0 * nhid:1 * nhid]
                f_g = sig[:, 1 * nhid:2 * nhid]
                g_g = tnh[:, 2 * nhid:3 * nhid]
                o_g = sig[:, 3 * nhid:4 * nhid]
                c_new = f_g * c + i_g * g_g
                h_new = o_g * jnp.tanh(c_new)
                # Mask padded timesteps (streams have different sequence lengths).
                valid = t < seq_len
                h_new = jnp.where(valid, h_new, h)
                c_new = jnp.where(valid, c_new, c)
                h_scr[...] = h_new
                c_scr[...] = c_new
                if store_seq:
                    hseq_scr[t] = h_new
                return carry

            lax.fori_loop(0, max_seq, step, 0, unroll=unroll)

            hn_ref[0, layer] = h_scr[...]
            cn_ref[0, layer] = c_scr[...]

    return kernel


def dual_stream_lstm(ques_emb, his_emb, ques_hidden, his_hidden, ques_layers, his_layers):
    """Run both multi-layer LSTMs in a single pallas_call (stream axis is 'parallel').

    Returns ((q_hn, q_cn), (h_hn, h_cn)) with shapes (nlayers, batch, nhid)."""
    seq_q, bq, ninp = ques_emb.shape
    seq_h, bh, _ = his_emb.shape
    nlayers = ques_hidden[0].shape[0]
    nhid = ques_hidden[0].shape[-1]

    max_seq = max(seq_q, seq_h)
    max_b = max(bq, bh)
    max_b = ((max_b + 7) // 8) * 8          # sublane-aligned so in-kernel reshapes are free

    def pad_x(x):
        s, b, _ = x.shape
        return jnp.pad(x, ((0, max_seq - s), (0, max_b - b), (0, 0)))

    def pad_h(h):
        return jnp.pad(h, ((0, 0), (0, max_b - h.shape[1]), (0, 0)))

    x_packed = jnp.stack([pad_x(ques_emb), pad_x(his_emb)])                 # (2,S,Bm,ninp)
    h0 = jnp.stack([pad_h(ques_hidden[0]), pad_h(his_hidden[0])])           # (2,L,Bm,nhid)
    c0 = jnp.stack([pad_h(ques_hidden[1]), pad_h(his_hidden[1])])
    seq_lens = jnp.array([seq_q, seq_h], jnp.int32)

    weight_args, weight_specs = [], []
    for l in range(nlayers):
        for w_q, w_h in zip(ques_layers[l], his_layers[l]):
            w = jnp.stack([w_q, w_h])                                       # (2, d0, d1)
            weight_args.append(w)
            weight_specs.append(pl.BlockSpec((1,) + w.shape[1:],
                                             lambda s, sl: (s, 0, 0)))

    grid_spec = pltpu.PrefetchScalarGridSpec(
        num_scalar_prefetch=1,
        grid=(2,),
        in_specs=[
            pl.BlockSpec((1, max_seq, max_b, ninp), lambda s, sl: (s, 0, 0, 0)),
            pl.BlockSpec((1, nlayers, max_b, nhid), lambda s, sl: (s, 0, 0, 0)),
            pl.BlockSpec((1, nlayers, max_b, nhid), lambda s, sl: (s, 0, 0, 0)),
        ] + weight_specs,
        out_specs=[
            pl.BlockSpec((1, nlayers, max_b, nhid), lambda s, sl: (s, 0, 0, 0)),
            pl.BlockSpec((1, nlayers, max_b, nhid), lambda s, sl: (s, 0, 0, 0)),
        ],
        scratch_shapes=[
            pltpu.VMEM((max_seq, max_b, nhid), jnp.float32),      # inter-layer h sequence
            pltpu.VMEM((max_seq, max_b, 4 * nhid), jnp.float32),  # hoisted input-proj gates
            pltpu.VMEM((max_b, nhid), jnp.float32),               # h carry
            pltpu.VMEM((max_b, nhid), jnp.float32),               # c carry
        ],
    )

    hn, cn = pl.pallas_call(
        _make_dual_lstm_kernel(nlayers, unroll=(max_seq <= 8)),
        grid_spec=grid_spec,
        out_shape=(jax.ShapeDtypeStruct((2, nlayers, max_b, nhid), jnp.float32),
                   jax.ShapeDtypeStruct((2, nlayers, max_b, nhid), jnp.float32)),
        compiler_params=pltpu.CompilerParams(dimension_semantics=("parallel",)),
    )(seq_lens, x_packed, h0, c0, *weight_args)

    q_hn, q_cn = hn[0, :, :bq], cn[0, :, :bq]
    h_hn, h_cn = hn[1, :, :bh], cn[1, :, :bh]
    return (q_hn, q_cn), (h_hn, h_cn)


# ----------------------------------------------------------------------------------
# Batched encoder fusion kernel (one launch for all B samples):
#   image embed, history attention, MCB image attention, MCB question/image fusion,
#   final fc + tanh.  Per-sample softmax/pooling/broadcast via group-selector matmuls
#   so everything stays lane-dense 2-D.
# ----------------------------------------------------------------------------------
def encoder_fusion_kernel(
    ques_ref, his_ref, img_ref, gr_ref, grt_ref, gp_ref, gpt_ref,
    wimg_ref, bimg_ref,
    wq1_ref, bq1_ref, wh1_ref, bh1_ref, wa1_ref, ba1_ref,
    wq2_ref, bq2_ref, wh2_ref, bh2_ref, wi2_ref, bi2_ref, wa2_ref, ba2_ref,
    s1qh_cos_ref, s1qh_sin_ref, s2qh_cos_ref, s2qh_sin_ref,
    s1qi_cos_ref, s1qi_sin_ref, s2qi_cos_ref, s2qi_sin_ref,
    cos_ref, sin_ref, wfc_q_ref, wfc_h_ref, bfc_ref,
    out_ref,
):
    nhid = ques_ref.shape[-1]
    inv_n = 1.0 / float(nhid)

    def mm(a, b):
        return jnp.dot(a, b, preferred_element_type=jnp.float32)

    q = ques_ref[...]                     # (B, nhid)
    his = his_ref[...]                    # (B*rnd, nhid)
    img = img_ref[...]                    # (B*49, feat)
    gr, grt = gr_ref[...], grt_ref[...]   # (B*rnd, B), (B, B*rnd) group selectors
    gp, gpt = gp_ref[...], gpt_ref[...]   # (B*49, B),  (B, B*49)
    cosm, sinm = cos_ref[...], sin_ref[...]

    def seg_softmax(lg, g, gt):
        # Sample-wise softmax of column logits lg (N,1) with groups given by g/gt.
        # A global max shift is exact (softmax is shift-invariant within each group)
        # and numerically safe here (tanh-bounded logits).
        m = jnp.max(lg, axis=0, keepdims=True)
        e = jnp.exp(lg - m)
        denom = mm(g, mm(gt, e))          # per-row group sum, (N, 1)
        return e / denom

    # img_emb = tanh(img_embed(img_raw))
    img_emb = jnp.tanh(mm(img, wimg_ref[...]) + bimg_ref[...])            # (B*49, nhid)

    # --- history attention (attention #1) ---
    q1 = mm(q, wq1_ref[...]) + bq1_ref[...]                               # (B, nhid)
    h1 = mm(his, wh1_ref[...]) + bh1_ref[...]                             # (B*rnd, nhid)
    a1 = jnp.tanh(h1 + mm(gr, q1))                                        # per-sample bcast
    lg1 = jnp.sum(a1 * wa1_ref[...], axis=-1, keepdims=True) + ba1_ref[...]   # (B*rnd, 1)
    w1 = seg_softmax(lg1, gr, grt)                                        # (B*rnd, 1)
    his_attn = mm(grt, w1 * his)                                          # (B, nhid)

    # --- image attention via MCB (attention #2) ---
    q2 = mm(q, wq2_ref[...]) + bq2_ref[...]                               # (B, nhid)
    h2 = mm(his_attn, wh2_ref[...]) + bh2_ref[...]                        # (B, nhid)
    i2 = mm(img_emb, wi2_ref[...]) + bi2_ref[...]                         # (B*49, nhid)
    y = q2 + h2                                                           # (B, nhid)
    # count-sketch folded into the forward DFT: xr = x@(S@cos), xi = -x@(S@sin)
    xr = mm(i2, s1qh_cos_ref[...])
    xi = -mm(i2, s1qh_sin_ref[...])
    yr = mm(gp, mm(y, s2qh_cos_ref[...]))                                 # bcast to 49 rows
    yi = -mm(gp, mm(y, s2qh_sin_ref[...]))
    zr = xr * yr - xi * yi
    zi = xr * yi + xi * yr
    qh = (mm(zr, cosm) - mm(zi, sinm)) * inv_n                            # real(IDFT)

    a2 = jnp.tanh(qh)
    lg2 = jnp.sum(a2 * wa2_ref[...], axis=-1, keepdims=True) + ba2_ref[...]   # (B*49, 1)
    w2 = seg_softmax(lg2, gp, gpt)                                        # (B*49, 1)
    img_attn = mm(gpt, w2 * img_emb)                                      # (B, nhid)

    # --- MCB fusion of question feature and attended image feature ---
    ar = mm(q, s1qi_cos_ref[...])
    ai = -mm(q, s1qi_sin_ref[...])
    br = mm(img_attn, s2qi_cos_ref[...])
    bi = -mm(img_attn, s2qi_sin_ref[...])
    zr2 = ar * br - ai * bi
    zi2 = ar * bi + ai * br
    qi_feat = (mm(zr2, cosm) - mm(zi2, sinm)) * inv_n                     # (B, nhid)

    # --- final fc over concat(qi, his_attn) + tanh (concat as split matmul) ---
    out_ref[...] = jnp.tanh(mm(qi_feat, wfc_q_ref[...])
                            + mm(his_attn, wfc_h_ref[...]) + bfc_ref[...])


def encoder_fusion(ques_feat, his_feat, img_flat, rnd, W):
    B, _ = ques_feat.shape
    npos = img_flat.shape[0] // B
    ninp = W["wfc_q"].shape[-1]

    # group-selector matrices (row i belongs to sample i // rnd, resp. i // 49)
    gr = jnp.repeat(jnp.eye(B, dtype=jnp.float32), rnd, axis=0)           # (B*rnd, B)
    gp = jnp.repeat(jnp.eye(B, dtype=jnp.float32), npos, axis=0)          # (B*49, B)

    weight_order = ["wimg", "bimg", "wq1", "bq1", "wh1", "bh1", "wa1", "ba1",
                    "wq2", "bq2", "wh2", "bh2", "wi2", "bi2", "wa2", "ba2",
                    "s1qh_cos", "s1qh_sin", "s2qh_cos", "s2qh_sin",
                    "s1qi_cos", "s1qi_sin", "s2qi_cos", "s2qi_sin",
                    "cos", "sin", "wfc_q", "wfc_h", "bfc"]
    weight_args = [W[k] for k in weight_order]

    return pl.pallas_call(
        encoder_fusion_kernel,
        out_shape=jax.ShapeDtypeStruct((B, ninp), jnp.float32),
    )(ques_feat, his_feat, img_flat, gr, gr.T, gp, gp.T, *weight_args)


# ----------------------------------------------------------------------------------
# Full forward (glue in plain JAX, hot paths in the two Pallas kernels above).
# ----------------------------------------------------------------------------------
def netE_forward(params, ques_emb, his_emb, img_raw, ques_hidden, his_hidden, rnd):
    (q_hn, q_cn), (h_hn, _) = dual_stream_lstm(
        ques_emb, his_emb, ques_hidden, his_hidden,
        params["ques_rnn"], params["his_rnn"])

    ques_feat = q_hn[-1]                          # == ques_rnn output at last timestep
    his_feat = h_hn[-1]                           # (B*rnd, nhid)

    img_flat = img_raw.reshape(-1, img_raw.shape[-1])   # (B*49, feat)
    encoder_feat = encoder_fusion(ques_feat, his_feat, img_flat, rnd, params["fusion"])
    return encoder_feat, (q_hn, q_cn)


# ----------------------------------------------------------------------------------
# Deterministic parameter construction.
# ----------------------------------------------------------------------------------
def make_params(key, ninp, nhid, nlayers, img_feat_size):
    keys = iter(jax.random.split(key, 64))

    def uni(shape, fan_in):
        lim = 1.0 / math.sqrt(fan_in)
        return jax.random.uniform(next(keys), shape, jnp.float32, -lim, lim)

    def lstm_params(input_size):
        layers = []
        for l in range(nlayers):
            in_dim = input_size if l == 0 else nhid
            w_ih = uni((in_dim, 4 * nhid), nhid)                      # pre-transposed
            w_hh = uni((nhid, 4 * nhid), nhid)
            b = uni((1, 4 * nhid), nhid) + uni((1, 4 * nhid), nhid)   # b_ih + b_hh
            layers.append((w_ih, w_hh, b))
        return layers

    n = jnp.arange(nhid, dtype=jnp.float32)
    ang = 2.0 * math.pi * jnp.outer(n, n) / nhid
    cosm, sinm = jnp.cos(ang), jnp.sin(ang)

    def sketch_dft(d_in):
        # count-sketch matrix folded into the forward DFT (S@cos, S@sin)
        h = jax.random.randint(next(keys), (d_in,), 0, nhid)
        s = jax.random.rademacher(next(keys), (d_in,), dtype=jnp.int32).astype(jnp.float32)
        S = jax.nn.one_hot(h, nhid, dtype=jnp.float32) * s[:, None]
        return S @ cosm, S @ sinm

    s1qh_cos, s1qh_sin = sketch_dft(nhid)
    s2qh_cos, s2qh_sin = sketch_dft(nhid)
    s1qi_cos, s1qi_sin = sketch_dft(nhid)
    s2qi_cos, s2qi_sin = sketch_dft(nhid)

    fusion = {
        "wimg": uni((img_feat_size, nhid), img_feat_size),
        "bimg": uni((1, nhid), img_feat_size),
        "wq1": uni((nhid, nhid), nhid), "bq1": uni((1, nhid), nhid),
        "wh1": uni((nhid, nhid), nhid), "bh1": uni((1, nhid), nhid),
        "wa1": uni((1, nhid), nhid), "ba1": uni((1, 1), nhid),
        "wq2": uni((nhid, nhid), nhid), "bq2": uni((1, nhid), nhid),
        "wh2": uni((nhid, nhid), nhid), "bh2": uni((1, nhid), nhid),
        "wi2": uni((nhid, nhid), nhid), "bi2": uni((1, nhid), nhid),
        "wa2": uni((1, nhid), nhid), "ba2": uni((1, 1), nhid),
        "s1qh_cos": s1qh_cos, "s1qh_sin": s1qh_sin,
        "s2qh_cos": s2qh_cos, "s2qh_sin": s2qh_sin,
        "s1qi_cos": s1qi_cos, "s1qi_sin": s1qi_sin,
        "s2qi_cos": s2qi_cos, "s2qi_sin": s2qi_sin,
        "cos": cosm, "sin": sinm,
        "wfc_q": uni((nhid, ninp), 2 * nhid), "wfc_h": uni((nhid, ninp), 2 * nhid),
        "bfc": uni((1, ninp), 2 * nhid),
    }
    return {
        "nhid": nhid,
        "ques_rnn": lstm_params(ninp),
        "his_rnn": lstm_params(ninp),
        "fusion": fusion,
    }


if __name__ == "__main__":
    # small, module-consistent shapes
    B = 2
    rnd = 4
    seq_q = 6
    seq_h = 5
    ninp = 32
    nhid = 32
    nlayers = 2
    img_feat_size = 64
    npos = 49  # fixed by the module (7x7 conv feature map)

    root = jax.random.PRNGKey(0)
    k_par, k_q, k_h, k_i = jax.random.split(root, 4)
    params = make_params(k_par, ninp, nhid, nlayers, img_feat_size)

    ques_emb = jax.random.normal(k_q, (seq_q, B, ninp), jnp.float32)
    his_emb = jax.random.normal(k_h, (seq_h, B * rnd, ninp), jnp.float32)
    img_raw = jax.random.normal(k_i, (B, npos, img_feat_size), jnp.float32)

    ques_hidden = (jnp.zeros((nlayers, B, nhid), jnp.float32),
                   jnp.zeros((nlayers, B, nhid), jnp.float32))
    his_hidden = (jnp.zeros((nlayers, B * rnd, nhid), jnp.float32),
                  jnp.zeros((nlayers, B * rnd, nhid), jnp.float32))

    encoder_feat, (h_n, c_n) = netE_forward(
        params, ques_emb, his_emb, img_raw, ques_hidden, his_hidden, rnd)

    jax.block_until_ready(encoder_feat)
    jax.block_until_ready(h_n)
    jax.block_until_ready(c_n)

    assert encoder_feat.shape == (B, ninp)
    assert h_n.shape == (nlayers, B, nhid) and c_n.shape == (nlayers, B, nhid)
    assert bool(jnp.all(jnp.isfinite(encoder_feat)))
    assert bool(jnp.all(jnp.isfinite(h_n))) and bool(jnp.all(jnp.isfinite(c_n)))
    print("KERNEL_OK")
</pallas_src>

<mosaic_0001>
module attributes {stable_mosaic.version = 11 : i64} {
  func.func @kernel(%arg0: i32, %arg1: memref<2xi32, #tpu.memory_space<smem>>, %arg2: memref<1x6x8x32xf32, #tpu.memory_space<vmem>>, %arg3: memref<1x2x8x32xf32, #tpu.memory_space<vmem>>, %arg4: memref<1x2x8x32xf32, #tpu.memory_space<vmem>>, %arg5: memref<1x32x128xf32, #tpu.memory_space<vmem>>, %arg6: memref<1x32x128xf32, #tpu.memory_space<vmem>>, %arg7: memref<1x1x128xf32, #tpu.memory_space<vmem>>, %arg8: memref<1x32x128xf32, #tpu.memory_space<vmem>>, %arg9: memref<1x32x128xf32, #tpu.memory_space<vmem>>, %arg10: memref<1x1x128xf32, #tpu.memory_space<vmem>>, %arg11: memref<1x2x8x32xf32, #tpu.memory_space<vmem>>, %arg12: memref<1x2x8x32xf32, #tpu.memory_space<vmem>>, %arg13: memref<6x8x32xf32, #tpu.memory_space<vmem>>, %arg14: memref<6x8x128xf32, #tpu.memory_space<vmem>>, %arg15: memref<8x32xf32, #tpu.memory_space<vmem>>, %arg16: memref<8x32xf32, #tpu.memory_space<vmem>>) attributes {dimension_semantics = [#tpu.dimension_semantics<parallel>], iteration_bounds = array<i64: 2>, scalar_prefetch = 1 : i64, scratch_operands = 4 : i64, tpu.core_type = #tpu.core_type<tc>, window_params = [{transform_indices = @transform_0, window_bounds = array<i64: 1, 6, 8, 32>}, {transform_indices = @transform_1, window_bounds = array<i64: 1, 2, 8, 32>}, {transform_indices = @transform_2, window_bounds = array<i64: 1, 2, 8, 32>}, {transform_indices = @transform_3, window_bounds = array<i64: 1, 32, 128>}, {transform_indices = @transform_4, window_bounds = array<i64: 1, 32, 128>}, {transform_indices = @transform_5, window_bounds = array<i64: 1, 1, 128>}, {transform_indices = @transform_6, window_bounds = array<i64: 1, 32, 128>}, {transform_indices = @transform_7, window_bounds = array<i64: 1, 32, 128>}, {transform_indices = @transform_8, window_bounds = array<i64: 1, 1, 128>}, {transform_indices = @transform_9, window_bounds = array<i64: 1, 2, 8, 32>}, {transform_indices = @transform_10, window_bounds = array<i64: 1, 2, 8, 32>}]} {
    %0 = arith.index_cast %arg0 : i32 to index
    %1 = memref.load %arg1[%0] : memref<2xi32, #tpu.memory_space<smem>>
    %c0 = arith.constant 0 : index
    %c0_0 = arith.constant 0 : index
    %c0_1 = arith.constant 0 : index
    %2 = vector.load %arg5[%c0, %c0_0, %c0_1] : memref<1x32x128xf32, #tpu.memory_space<vmem>>, vector<1x32x128xf32>
    %3 = vector.shape_cast %2 : vector<1x32x128xf32> to vector<32x128xf32>
    %c0_2 = arith.constant 0 : index
    %c0_3 = arith.constant 0 : index
    %c0_4 = arith.constant 0 : index
    %4 = vector.load %arg6[%c0_2, %c0_3, %c0_4] : memref<1x32x128xf32, #tpu.memory_space<vmem>>, vector<1x32x128xf32>
    %5 = vector.shape_cast %4 : vector<1x32x128xf32> to vector<32x128xf32>
    %c0_5 = arith.constant 0 : index
    %c0_6 = arith.constant 0 : index
    %c0_7 = arith.constant 0 : index
    %6 = vector.load %arg7[%c0_5, %c0_6, %c0_7] : memref<1x1x128xf32, #tpu.memory_space<vmem>>, vector<1x1x128xf32>
    %7 = vector.shape_cast %6 : vector<1x1x128xf32> to vector<1x128xf32>
    %c0_8 = arith.constant 0 : index
    %c0_9 = arith.constant 0 : index
    %c0_10 = arith.constant 0 : index
    %c0_11 = arith.constant 0 : index
    %8 = vector.load %arg2[%c0_8, %c0_9, %c0_10, %c0_11] : memref<1x6x8x32xf32, #tpu.memory_space<vmem>>, vector<1x6x8x32xf32>
    %9 = vector.shape_cast %8 : vector<1x6x8x32xf32> to vector<6x8x32xf32>
    %10 = vector.shape_cast %9 : vector<6x8x32xf32> to vector<48x32xf32>
    %cst = arith.constant dense<0.000000e+00> : vector<48x128xf32>
    %11 = tpu.matmul %10, %3, %cst {dimension_numbers = #tpu.dot_dimension_numbers<[1], [0], [0], [1], [0, 0, 1, 1], [], []>} : vector<48x32xf32>, vector<32x128xf32>, vector<48x128xf32> -> vector<48x128xf32>
    %12 = vector.broadcast %7 : vector<1x128xf32> to vector<48x128xf32>
    %13 = arith.addf %11, %12 : vector<48x128xf32>
    %14 = vector.shape_cast %13 : vector<48x128xf32> to vector<6x8x128xf32>
    %c0_12 = arith.constant 0 : index
    %c0_13 = arith.constant 0 : index
    %c0_14 = arith.constant 0 : index
    %15 = vector.load %arg14[%c0_12, %c0_13, %c0_14] : memref<6x8x128xf32, #tpu.memory_space<vmem>>, vector<6x8x128xf32>
    tpu.vector_store %arg14[%c0_12, %c0_13, %c0_14], %14 {strides = array<i32>} : memref<6x8x128xf32, #tpu.memory_space<vmem>>, vector<6x8x128xf32>,
    %c0_15 = arith.constant 0 : index
    %c0_16 = arith.constant 0 : index
    %c0_17 = arith.constant 0 : index
    %c0_18 = arith.constant 0 : index
    %16 = vector.load %arg3[%c0_15, %c0_16, %c0_17, %c0_18] : memref<1x2x8x32xf32, #tpu.memory_space<vmem>>, vector<1x1x8x32xf32>
    %17 = vector.shape_cast %16 : vector<1x1x8x32xf32> to vector<8x32xf32>
    %c0_19 = arith.constant 0 : index
    %c0_20 = arith.constant 0 : index
    %18 = vector.load %arg15[%c0_19, %c0_20] : memref<8x32xf32, #tpu.memory_space<vmem>>, vector<8x32xf32>
    tpu.vector_store %arg15[%c0_19, %c0_20], %17 {strides = array<i32>} : memref<8x32xf32, #tpu.memory_space<vmem>>, vector<8x32xf32>,
    %c0_21 = arith.constant 0 : index
    %c0_22 = arith.constant 0 : index
    %c0_23 = arith.constant 0 : index
    %c0_24 = arith.constant 0 : index
    %19 = vector.load %arg4[%c0_21, %c0_22, %c0_23, %c0_24] : memref<1x2x8x32xf32, #tpu.memory_space<vmem>>, vector<1x1x8x32xf32>
    %20 = vector.shape_cast %19 : vector<1x1x8x32xf32> to vector<8x32xf32>
    %c0_25 = arith.constant 0 : index
    %c0_26 = arith.constant 0 : index
    %21 = vector.load %arg16[%c0_25, %c0_26] : memref<8x32xf32, #tpu.memory_space<vmem>>, vector<8x32xf32>
    tpu.vector_store %arg16[%c0_25, %c0_26], %20 {strides = array<i32>} : memref<8x32xf32, #tpu.memory_space<vmem>>, vector<8x32xf32>,
    %c0_i32 = arith.constant 0 : i32
    %c0_27 = arith.constant 0 : index
    %c0_28 = arith.constant 0 : index
    %22 = vector.load %arg15[%c0_27, %c0_28] : memref<8x32xf32, #tpu.memory_space<vmem>>, vector<8x32xf32>
    %c0_29 = arith.constant 0 : index
    %c0_30 = arith.constant 0 : index
    %23 = vector.load %arg16[%c0_29, %c0_30] : memref<8x32xf32, #tpu.memory_space<vmem>>, vector<8x32xf32>
    %24 = arith.index_cast %c0_i32 : i32 to index
    %c0_31 = arith.constant 0 : index
    %c0_32 = arith.constant 0 : index
    %25 = vector.load %arg14[%24, %c0_31, %c0_32] : memref<6x8x128xf32, #tpu.memory_space<vmem>>, vector<1x8x128xf32>
    %26 = vector.shape_cast %25 : vector<1x8x128xf32> to vector<8x128xf32>
    %cst_33 = arith.constant dense<0.000000e+00> : vector<8x128xf32>
    %27 = tpu.matmul %22, %5, %cst_33 {dimension_numbers = #tpu.dot_dimension_numbers<[1], [0], [0], [1], [0, 0, 1, 1], [], []>} : vector<8x32xf32>, vector<32x128xf32>, vector<8x128xf32> -> vector<8x128xf32>
    %28 = arith.addf %26, %27 : vector<8x128xf32>
    %cst_34 = arith.constant 0.000000e+00 : f32
    %29 = vector.broadcast %cst_34 : f32 to vector<8x128xf32>
    %30 = arith.subf %29, %28 : vector<8x128xf32>
    %31 = math.exp %30 : vector<8x128xf32>
    %cst_35 = arith.constant 1.000000e+00 : f32
    %32 = vector.broadcast %cst_35 : f32 to vector<8x128xf32>
    %33 = arith.addf %32, %31 : vector<8x128xf32>
    %cst_36 = arith.constant 1.000000e+00 : f32
    %34 = vector.broadcast %cst_36 : f32 to vector<8x128xf32>
    %35 = arith.divf %34, %33 : vector<8x128xf32>
    %36 = math.tanh %28 : vector<8x128xf32>
    %37 = vector.extract_strided_slice %35 {offsets = [0, 0], sizes = [8, 32], strides = [1, 1]} : vector<8x128xf32> to vector<8x32xf32>
    %38 = vector.extract_strided_slice %35 {offsets = [0, 32], sizes = [8, 32], strides = [1, 1]} : vector<8x128xf32> to vector<8x32xf32>
    %39 = vector.extract_strided_slice %36 {offsets = [0, 64], sizes = [8, 32], strides = [1, 1]} : vector<8x128xf32> to vector<8x32xf32>
    %40 = vector.extract_strided_slice %35 {offsets = [0, 96], sizes = [8, 32], strides = [1, 1]} : vector<8x128xf32> to vector<8x32xf32>
    %41 = arith.mulf %38, %23 : vector<8x32xf32>
    %42 = arith.mulf %37, %39 : vector<8x32xf32>
    %43 = arith.addf %41, %42 : vector<8x32xf32>
    %44 = math.tanh %43 : vector<8x32xf32>
    %45 = arith.mulf %40, %44 : vector<8x32xf32>
    %46 = arith.cmpi slt, %c0_i32, %1 : i32
    %47 = arith.select %46, %45, %22 : vector<8x32xf32>
    %48 = arith.select %46, %43, %23 : vector<8x32xf32>
    %c0_37 = arith.constant 0 : index
    %c0_38 = arith.constant 0 : index
    %49 = vector.load %arg15[%c0_37, %c0_38] : memref<8x32xf32, #tpu.memory_space<vmem>>, vector<8x32xf32>
    tpu.vector_store %arg15[%c0_37, %c0_38], %47 {strides = array<i32>} : memref<8x32xf32, #tpu.memory_space<vmem>>, vector<8x32xf32>,
    %c0_39 = arith.constant 0 : index
    %c0_40 = arith.constant 0 : index
    %50 = vector.load %arg16[%c0_39, %c0_40] : memref<8x32xf32, #tpu.memory_space<vmem>>, vector<8x32xf32>
    tpu.vector_store %arg16[%c0_39, %c0_40], %48 {strides = array<i32>} : memref<8x32xf32, #tpu.memory_space<vmem>>, vector<8x32xf32>,
    %51 = arith.index_cast %c0_i32 : i32 to index
    %c0_41 = arith.constant 0 : index
    %c0_42 = arith.constant 0 : index
    %52 = vector.load %arg13[%51, %c0_41, %c0_42] : memref<6x8x32xf32, #tpu.memory_space<vmem>>, vector<1x8x32xf32>
    %53 = vector.shape_cast %52 : vector<1x8x32xf32> to vector<8x32xf32>
    %54 = vector.shape_cast %47 : vector<8x32xf32> to vector<1x8x32xf32>
    tpu.vector_store %arg13[%51, %c0_41, %c0_42], %54 {strides = array<i32>} : memref<6x8x32xf32, #tpu.memory_space<vmem>>, vector<1x8x32xf32>,
    %c1_i32 = arith.constant 1 : i32
    %c0_43 = arith.constant 0 : index
    %c0_44 = arith.constant 0 : index
    %55 = vector.load %arg15[%c0_43, %c0_44] : memref<8x32xf32, #tpu.memory_space<vmem>>, vector<8x32xf32>
    %c0_45 = arith.constant 0 : index
    %c0_46 = arith.constant 0 : index
    %56 = vector.load %arg16[%c0_45, %c0_46] : memref<8x32xf32, #tpu.memory_space<vmem>>, vector<8x32xf32>
    %57 = arith.index_cast %c1_i32 : i32 to index
    %c0_47 = arith.constant 0 : index
    %c0_48 = arith.constant 0 : index
    %58 = vector.load %arg14[%57, %c0_47, %c0_48] : memref<6x8x128xf32, #tpu.memory_space<vmem>>, vector<1x8x128xf32>
    %59 = vector.shape_cast %58 : vector<1x8x128xf32> to vector<8x128xf32>
    %cst_49 = arith.constant dense<0.000000e+00> : vector<8x128xf32>
    %60 = tpu.matmul %55, %5, %cst_49 {dimension_numbers = #tpu.dot_dimension_numbers<[1], [0], [0], [1], [0, 0, 1, 1], [], []>} : vector<8x32xf32>, vector<32x128xf32>, vector<8x128xf32> -> vector<8x128xf32>
    %61 = arith.addf %59, %60 : vector<8x128xf32>
    %cst_50 = arith.constant 0.000000e+00 : f32
    %62 = vector.broadcast %cst_50 : f32 to vector<8x128xf32>
    %63 = arith.subf %62, %61 : vector<8x128xf32>
    %64 = math.exp %63 : vector<8x128xf32>
    %cst_51 = arith.constant 1.000000e+00 : f32
    %65 = vector.broadcast %cst_51 : f32 to vector<8x128xf32>
    %66 = arith.addf %65, %64 : vector<8x128xf32>
    %cst_52 = arith.constant 1.000000e+00 : f32
    %67 = vector.broadcast %cst_52 : f32 to vector<8x128xf32>
    %68 = arith.divf %67, %66 : vector<8x128xf32>
    %69 = math.tanh %61 : vector<8x128xf32>
    %70 = vector.extract_strided_slice %68 {offsets = [0, 0], sizes = [8, 32], strides = [1, 1]} : vector<8x128xf32> to vector<8x32xf32>
    %71 = vector.extract_strided_slice %68 {offsets = [0, 32], sizes = [8, 32], strides = [1, 1]} : vector<8x128xf32> to vector<8x32xf32>
    %72 = vector.extract_strided_slice %69 {offsets = [0, 64], sizes = [8, 32], strides = [1, 1]} : vector<8x128xf32> to vector<8x32xf32>
    %73 = vector.extract_strided_slice %68 {offsets = [0, 96], sizes = [8, 32], strides = [1, 1]} : vector<8x128xf32> to vector<8x32xf32>
    %74 = arith.mulf %71, %56 : vector<8x32xf32>
    %75 = arith.mulf %70, %72 : vector<8x32xf32>
    %76 = arith.addf %74, %75 : vector<8x32xf32>
    %77 = math.tanh %76 : vector<8x32xf32>
    %78 = arith.mulf %73, %77 : vector<8x32xf32>
    %79 = arith.cmpi slt, %c1_i32, %1 : i32
    %80 = arith.select %79, %78, %55 : vector<8x32xf32>
    %81 = arith.select %79, %76, %56 : vector<8x32xf32>
    %c0_53 = arith.constant 0 : index
    %c0_54 = arith.constant 0 : index
    %82 = vector.load %arg15[%c0_53, %c0_54] : memref<8x32xf32, #tpu.memory_space<vmem>>, vector<8x32xf32>
    tpu.vector_store %arg15[%c0_53, %c0_54], %80 {strides = array<i32>} : memref<8x32xf32, #tpu.memory_space<vmem>>, vector<8x32xf32>,
    %c0_55 = arith.constant 0 : index
    %c0_56 = arith.constant 0 : index
    %83 = vector.load %arg16[%c0_55, %c0_56] : memref<8x32xf32, #tpu.memory_space<vmem>>, vector<8x32xf32>
    tpu.vector_store %arg16[%c0_55, %c0_56], %81 {strides = array<i32>} : memref<8x32xf32, #tpu.memory_space<vmem>>, vector<8x32xf32>,
    %84 = arith.index_cast %c1_i32 : i32 to index
    %c0_57 = arith.constant 0 : index
    %c0_58 = arith.constant 0 : index
    %85 = vector.load %arg13[%84, %c0_57, %c0_58] : memref<6x8x32xf32, #tpu.memory_space<vmem>>, vector<1x8x32xf32>
    %86 = vector.shape_cast %85 : vector<1x8x32xf32> to vector<8x32xf32>
    %87 = vector.shape_cast %80 : vector<8x32xf32> to vector<1x8x32xf32>
    tpu.vector_store %arg13[%84, %c0_57, %c0_58], %87 {strides = array<i32>} : memref<6x8x32xf32, #tpu.memory_space<vmem>>, vector<1x8x32xf32>,
    %c2_i32 = arith.constant 2 : i32
    %c0_59 = arith.constant 0 : index
    %c0_60 = arith.constant 0 : index
    %88 = vector.load %arg15[%c0_59, %c0_60] : memref<8x32xf32, #tpu.memory_space<vmem>>, vector<8x32xf32>
    %c0_61 = arith.constant 0 : index
    %c0_62 = arith.constant 0 : index
    %89 = vector.load %arg16[%c0_61, %c0_62] : memref<8x32xf32, #tpu.memory_space<vmem>>, vector<8x32xf32>
    %90 = arith.index_cast %c2_i32 : i32 to index
    %c0_63 = arith.constant 0 : index
    %c0_64 = arith.constant 0 : index
    %91 = vector.load %arg14[%90, %c0_63, %c0_64] : memref<6x8x128xf32, #tpu.memory_space<vmem>>, vector<1x8x128xf32>
    %92 = vector.shape_cast %91 : vector<1x8x128xf32> to vector<8x128xf32>
    %cst_65 = arith.constant dense<0.000000e+00> : vector<8x128xf32>
    %93 = tpu.matmul %88, %5, %cst_65 {dimension_numbers = #tpu.dot_dimension_numbers<[1], [0], [0], [1], [0, 0, 1, 1], [], []>} : vector<8x32xf32>, vector<32x128xf32>, vector<8x128xf32> -> vector<8x128xf32>
    %94 = arith.addf %92, %93 : vector<8x128xf32>
    %cst_66 = arith.constant 0.000000e+00 : f32
    %95 = vector.broadcast %cst_66 : f32 to vector<8x128xf32>
    %96 = arith.subf %95, %94 : vector<8x128xf32>
    %97 = math.exp %96 : vector<8x128xf32>
    %cst_67 = arith.constant 1.000000e+00 : f32
    %98 = vector.broadcast %cst_67 : f32 to vector<8x128xf32>
    %99 = arith.addf %98, %97 : vector<8x128xf32>
    %cst_68 = arith.constant 1.000000e+00 : f32
    %100 = vector.broadcast %cst_68 : f32 to vector<8x128xf32>
    %101 = arith.divf %100, %99 : vector<8x128xf32>
    %102 = math.tanh %94 : vector<8x128xf32>
    %103 = vector.extract_strided_slice %101 {offsets = [0, 0], sizes = [8, 32], strides = [1, 1]} : vector<8x128xf32> to vector<8x32xf32>
    %104 = vector.extract_strided_slice %101 {offsets = [0, 32], sizes = [8, 32], strides = [1, 1]} : vector<8x128xf32> to vector<8x32xf32>
    %105 = vector.extract_strided_slice %102 {offsets = [0, 64], sizes = [8, 32], strides = [1, 1]} : vector<8x128xf32> to vector<8x32xf32>
    %106 = vector.extract_strided_slice %101 {offsets = [0, 96], sizes = [8, 32], strides = [1, 1]} : vector<8x128xf32> to vector<8x32xf32>
    %107 = arith.mulf %104, %89 : vector<8x32xf32>
    %108 = arith.mulf %103, %105 : vector<8x32xf32>
    %109 = arith.addf %107, %108 : vector<8x32xf32>
    %110 = math.tanh %109 : vector<8x32xf32>
    %111 = arith.mulf %106, %110 : vector<8x32xf32>
    %112 = arith.cmpi slt, %c2_i32, %1 : i32
    %113 = arith.select %112, %111, %88 : vector<8x32xf32>
    %114 = arith.select %112, %109, %89 : vector<8x32xf32>
    %c0_69 = arith.constant 0 : index
    %c0_70 = arith.constant 0 : index
    %115 = vector.load %arg15[%c0_69, %c0_70] : memref<8x32xf32, #tpu.memory_space<vmem>>, vector<8x32xf32>
    tpu.vector_store %arg15[%c0_69, %c0_70], %113 {strides = array<i32>} : memref<8x32xf32, #tpu.memory_space<vmem>>, vector<8x32xf32>,
    %c0_71 = arith.constant 0 : index
    %c0_72 = arith.constant 0 : index
    %116 = vector.load %arg16[%c0_71, %c0_72] : memref<8x32xf32, #tpu.memory_space<vmem>>, vector<8x32xf32>
    tpu.vector_store %arg16[%c0_71, %c0_72], %114 {strides = array<i32>} : memref<8x32xf32, #tpu.memory_space<vmem>>, vector<8x32xf32>,
    %117 = arith.index_cast %c2_i32 : i32 to index
    %c0_73 = arith.constant 0 : index
    %c0_74 = arith.constant 0 : index
    %118 = vector.load %arg13[%117, %c0_73, %c0_74] : memref<6x8x32xf32, #tpu.memory_space<vmem>>, vector<1x8x32xf32>
    %119 = vector.shape_cast %118 : vector<1x8x32xf32> to vector<8x32xf32>
    %120 = vector.shape_cast %113 : vector<8x32xf32> to vector<1x8x32xf32>
    tpu.vector_store %arg13[%117, %c0_73, %c0_74], %120 {strides = array<i32>} : memref<6x8x32xf32, #tpu.memory_space<vmem>>, vector<1x8x32xf32>,
    %c3_i32 = arith.constant 3 : i32
    %c0_75 = arith.constant 0 : index
    %c0_76 = arith.constant 0 : index
    %121 = vector.load %arg15[%c0_75, %c0_76] : memref<8x32xf32, #tpu.memory_space<vmem>>, vector<8x32xf32>
    %c0_77 = arith.constant 0 : index
    %c0_78 = arith.constant 0 : index
    %122 = vector.load %arg16[%c0_77, %c0_78] : memref<8x32xf32, #tpu.memory_space<vmem>>, vector<8x32xf32>
    %123 = arith.index_cast %c3_i32 : i32 to index
    %c0_79 = arith.constant 0 : index
    %c0_80 = arith.constant 0 : index
    %124 = vector.load %arg14[%123, %c0_79, %c0_80] : memref<6x8x128xf32, #tpu.memory_space<vmem>>, vector<1x8x128xf32>
    %125 = vector.shape_cast %124 : vector<1x8x128xf32> to vector<8x128xf32>
    %cst_81 = arith.constant dense<0.000000e+00> : vector<8x128xf32>
    %126 = tpu.matmul %121, %5, %cst_81 {dimension_numbers = #tpu.dot_dimension_numbers<[1], [0], [0], [1], [0, 0, 1, 1], [], []>} : vector<8x32xf32>, vector<32x128xf32>, vector<8x128xf32> -> vector<8x128xf32>
    %127 = arith.addf %125, %126 : vector<8x128xf32>
    %cst_82 = arith.constant 0.000000e+00 : f32
    %128 = vector.broadcast %cst_82 : f32 to vector<8x128xf32>
    %129 = arith.subf %128, %127 : vector<8x128xf32>
    %130 = math.exp %129 : vector<8x128xf32>
    %cst_83 = arith.constant 1.000000e+00 : f32
    %131 = vector.broadcast %cst_83 : f32 to vector<8x128xf32>
    %132 = arith.addf %131, %130 : vector<8x128xf32>
    %cst_84 = arith.constant 1.000000e+00 : f32
    %133 = vector.broadcast %cst_84 : f32 to vector<8x128xf32>
    %134 = arith.divf %133, %132 : vector<8x128xf32>
    %135 = math.tanh %127 : vector<8x128xf32>
    %136 = vector.extract_strided_slice %134 {offsets = [0, 0], sizes = [8, 32], strides = [1, 1]} : vector<8x128xf32> to vector<8x32xf32>
    %137 = vector.extract_strided_slice %134 {offsets = [0, 32], sizes = [8, 32], strides = [1, 1]} : vector<8x128xf32> to vector<8x32xf32>
    %138 = vector.extract_strided_slice %135 {offsets = [0, 64], sizes = [8, 32], strides = [1, 1]} : vector<8x128xf32> to vector<8x32xf32>
    %139 = vector.extract_strided_slice %134 {offsets = [0, 96], sizes = [8, 32], strides = [1, 1]} : vector<8x128xf32> to vector<8x32xf32>
    %140 = arith.mulf %137, %122 : vector<8x32xf32>
    %141 = arith.mulf %136, %138 : vector<8x32xf32>
    %142 = arith.addf %140, %141 : vector<8x32xf32>
    %143 = math.tanh %142 : vector<8x32xf32>
    %144 = arith.mulf %139, %143 : vector<8x32xf32>
    %145 = arith.cmpi slt, %c3_i32, %1 : i32
    %146 = arith.select %145, %144, %121 : vector<8x32xf32>
    %147 = arith.select %145, %142, %122 : vector<8x32xf32>
    %c0_85 = arith.constant 0 : index
    %c0_86 = arith.constant 0 : index
    %148 = vector.load %arg15[%c0_85, %c0_86] : memref<8x32xf32, #tpu.memory_space<vmem>>, vector<8x32xf32>
    tpu.vector_store %arg15[%c0_85, %c0_86], %146 {strides = array<i32>} : memref<8x32xf32, #tpu.memory_space<vmem>>, vector<8x32xf32>,
    %c0_87 = arith.constant 0 : index
    %c0_88 = arith.constant 0 : index
    %149 = vector.load %arg16[%c0_87, %c0_88] : memref<8x32xf32, #tpu.memory_space<vmem>>, vector<8x32xf32>
    tpu.vector_store %arg16[%c0_87, %c0_88], %147 {strides = array<i32>} : memref<8x32xf32, #tpu.memory_space<vmem>>, vector<8x32xf32>,
    %150 = arith.index_cast %c3_i32 : i32 to index
    %c0_89 = arith.constant 0 : index
    %c0_90 = arith.constant 0 : index
    %151 = vector.load %arg13[%150, %c0_89, %c0_90] : memref<6x8x32xf32, #tpu.memory_space<vmem>>, vector<1x8x32xf32>
    %152 = vector.shape_cast %151 : vector<1x8x32xf32> to vector<8x32xf32>
    %153 = vector.shape_cast %146 : vector<8x32xf32> to vector<1x8x32xf32>
    tpu.vector_store %arg13[%150, %c0_89, %c0_90], %153 {strides = array<i32>} : memref<6x8x32xf32, #tpu.memory_space<vmem>>, vector<1x8x32xf32>,
    %c4_i32 = arith.constant 4 : i32
    %c0_91 = arith.constant 0 : index
    %c0_92 = arith.constant 0 : index
    %154 = vector.load %arg15[%c0_91, %c0_92] : memref<8x32xf32, #tpu.memory_space<vmem>>, vector<8x32xf32>
    %c0_93 = arith.constant 0 : index
    %c0_94 = arith.constant 0 : index
    %155 = vector.load %arg16[%c0_93, %c0_94] : memref<8x32xf32, #tpu.memory_space<vmem>>, vector<8x32xf32>
    %156 = arith.index_cast %c4_i32 : i32 to index
    %c0_95 = arith.constant 0 : index
    %c0_96 = arith.constant 0 : index
    %157 = vector.load %arg14[%156, %c0_95, %c0_96] : memref<6x8x128xf32, #tpu.memory_space<vmem>>, vector<1x8x128xf32>
    %158 = vector.shape_cast %157 : vector<1x8x128xf32> to vector<8x128xf32>
    %cst_97 = arith.constant dense<0.000000e+00> : vector<8x128xf32>
    %159 = tpu.matmul %154, %5, %cst_97 {dimension_numbers = #tpu.dot_dimension_numbers<[1], [0], [0], [1], [0, 0, 1, 1], [], []>} : vector<8x32xf32>, vector<32x128xf32>, vector<8x128xf32> -> vector<8x128xf32>
    %160 = arith.addf %158, %159 : vector<8x128xf32>
    %cst_98 = arith.constant 0.000000e+00 : f32
    %161 = vector.broadcast %cst_98 : f32 to vector<8x128xf32>
    %162 = arith.subf %161, %160 : vector<8x128xf32>
    %163 = math.exp %162 : vector<8x128xf32>
    %cst_99 = arith.constant 1.000000e+00 : f32
    %164 = vector.broadcast %cst_99 : f32 to vector<8x128xf32>
    %165 = arith.addf %164, %163 : vector<8x128xf32>
    %cst_100 = arith.constant 1.000000e+00 : f32
    %166 = vector.broadcast %cst_100 : f32 to vector<8x128xf32>
    %167 = arith.divf %166, %165 : vector<8x128xf32>
    %168 = math.tanh %160 : vector<8x128xf32>
    %169 = vector.extract_strided_slice %167 {offsets = [0, 0], sizes = [8, 32], strides = [1, 1]} : vector<8x128xf32> to vector<8x32xf32>
    %170 = vector.extract_strided_slice %167 {offsets = [0, 32], sizes = [8, 32], strides = [1, 1]} : vector<8x128xf32> to vector<8x32xf32>
    %171 = vector.extract_strided_slice %168 {offsets = [0, 64], sizes = [8, 32], strides = [1, 1]} : vector<8x128xf32> to vector<8x32xf32>
    %172 = vector.extract_strided_slice %167 {offsets = [0, 96], sizes = [8, 32], strides = [1, 1]} : vector<8x128xf32> to vector<8x32xf32>
    %173 = arith.mulf %170, %155 : vector<8x32xf32>
    %174 = arith.mulf %169, %171 : vector<8x32xf32>
    %175 = arith.addf %173, %174 : vector<8x32xf32>
    %176 = math.tanh %175 : vector<8x32xf32>
    %177 = arith.mulf %172, %176 : vector<8x32xf32>
    %178 = arith.cmpi slt, %c4_i32, %1 : i32
    %179 = arith.select %178, %177, %154 : vector<8x32xf32>
    %180 = arith.select %178, %175, %155 : vector<8x32xf32>
    %c0_101 = arith.constant 0 : index
    %c0_102 = arith.constant 0 : index
    %181 = vector.load %arg15[%c0_101, %c0_102] : memref<8x32xf32, #tpu.memory_space<vmem>>, vector<8x32xf32>
    tpu.vector_store %arg15[%c0_101, %c0_102], %179 {strides = array<i32>} : memref<8x32xf32, #tpu.memory_space<vmem>>, vector<8x32xf32>,
    %c0_103 = arith.constant 0 : index
    %c0_104 = arith.constant 0 : index
    %182 = vector.load %arg16[%c0_103, %c0_104] : memref<8x32xf32, #tpu.memory_space<vmem>>, vector<8x32xf32>
    tpu.vector_store %arg16[%c0_103, %c0_104], %180 {strides = array<i32>} : memref<8x32xf32, #tpu.memory_space<vmem>>, vector<8x32xf32>,
    %183 = arith.index_cast %c4_i32 : i32 to index
    %c0_105 = arith.constant 0 : index
    %c0_106 = arith.constant 0 : index
    %184 = vector.load %arg13[%183, %c0_105, %c0_106] : memref<6x8x32xf32, #tpu.memory_space<vmem>>, vector<1x8x32xf32>
    %185 = vector.shape_cast %184 : vector<1x8x32xf32> to vector<8x32xf32>
    %186 = vector.shape_cast %179 : vector<8x32xf32> to vector<1x8x32xf32>
    tpu.vector_store %arg13[%183, %c0_105, %c0_106], %186 {strides = array<i32>} : memref<6x8x32xf32, #tpu.memory_space<vmem>>, vector<1x8x32xf32>,
    %c5_i32 = arith.constant 5 : i32
    %c0_107 = arith.constant 0 : index
    %c0_108 = arith.constant 0 : index
    %187 = vector.load %arg15[%c0_107, %c0_108] : memref<8x32xf32, #tpu.memory_space<vmem>>, vector<8x32xf32>
    %c0_109 = arith.constant 0 : index
    %c0_110 = arith.constant 0 : index
    %188 = vector.load %arg16[%c0_109, %c0_110] : memref<8x32xf32, #tpu.memory_space<vmem>>, vector<8x32xf32>
    %189 = arith.index_cast %c5_i32 : i32 to index
    %c0_111 = arith.constant 0 : index
    %c0_112 = arith.constant 0 : index
    %190 = vector.load %arg14[%189, %c0_111, %c0_112] : memref<6x8x128xf32, #tpu.memory_space<vmem>>, vector<1x8x128xf32>
    %191 = vector.shape_cast %190 : vector<1x8x128xf32> to vector<8x128xf32>
    %cst_113 = arith.constant dense<0.000000e+00> : vector<8x128xf32>
    %192 = tpu.matmul %187, %5, %cst_113 {dimension_numbers = #tpu.dot_dimension_numbers<[1], [0], [0], [1], [0, 0, 1, 1], [], []>} : vector<8x32xf32>, vector<32x128xf32>, vector<8x128xf32> -> vector<8x128xf32>
    %193 = arith.addf %191, %192 : vector<8x128xf32>
    %cst_114 = arith.constant 0.000000e+00 : f32
    %194 = vector.broadcast %cst_114 : f32 to vector<8x128xf32>
    %195 = arith.subf %194, %193 : vector<8x128xf32>
    %196 = math.exp %195 : vector<8x128xf32>
    %cst_115 = arith.constant 1.000000e+00 : f32
    %197 = vector.broadcast %cst_115 : f32 to vector<8x128xf32>
    %198 = arith.addf %197, %196 : vector<8x128xf32>
    %cst_116 = arith.constant 1.000000e+00 : f32
    %199 = vector.broadcast %cst_116 : f32 to vector<8x128xf32>
    %200 = arith.divf %199, %198 : vector<8x128xf32>
    %201 = math.tanh %193 : vector<8x128xf32>
    %202 = vector.extract_strided_slice %200 {offsets = [0, 0], sizes = [8, 32], strides = [1, 1]} : vector<8x128xf32> to vector<8x32xf32>
    %203 = vector.extract_strided_slice %200 {offsets = [0, 32], sizes = [8, 32], strides = [1, 1]} : vector<8x128xf32> to vector<8x32xf32>
    %204 = vector.extract_strided_slice %201 {offsets = [0, 64], sizes = [8, 32], strides = [1, 1]} : vector<8x128xf32> to vector<8x32xf32>
    %205 = vector.extract_strided_slice %200 {offsets = [0, 96], sizes = [8, 32], strides = [1, 1]} : vector<8x128xf32> to vector<8x32xf32>
    %206 = arith.mulf %203, %188 : vector<8x32xf32>
    %207 = arith.mulf %202, %204 : vector<8x32xf32>
    %208 = arith.addf %206, %207 : vector<8x32xf32>
    %209 = math.tanh %208 : vector<8x32xf32>
    %210 = arith.mulf %205, %209 : vector<8x32xf32>
    %211 = arith.cmpi slt, %c5_i32, %1 : i32
    %212 = arith.select %211, %210, %187 : vector<8x32xf32>
    %213 = arith.select %211, %208, %188 : vector<8x32xf32>
    %c0_117 = arith.constant 0 : index
    %c0_118 = arith.constant 0 : index
    %214 = vector.load %arg15[%c0_117, %c0_118] : memref<8x32xf32, #tpu.memory_space<vmem>>, vector<8x32xf32>
    tpu.vector_store %arg15[%c0_117, %c0_118], %212 {strides = array<i32>} : memref<8x32xf32, #tpu.memory_space<vmem>>, vector<8x32xf32>,
    %c0_119 = arith.constant 0 : index
    %c0_120 = arith.constant 0 : index
    %215 = vector.load %arg16[%c0_119, %c0_120] : memref<8x32xf32, #tpu.memory_space<vmem>>, vector<8x32xf32>
    tpu.vector_store %arg16[%c0_119, %c0_120], %213 {strides = array<i32>} : memref<8x32xf32, #tpu.memory_space<vmem>>, vector<8x32xf32>,
    %216 = arith.index_cast %c5_i32 : i32 to index
    %c0_121 = arith.constant 0 : index
    %c0_122 = arith.constant 0 : index
    %217 = vector.load %arg13[%216, %c0_121, %c0_122] : memref<6x8x32xf32, #tpu.memory_space<vmem>>, vector<1x8x32xf32>
    %218 = vector.shape_cast %217 : vector<1x8x32xf32> to vector<8x32xf32>
    %219 = vector.shape_cast %212 : vector<8x32xf32> to vector<1x8x32xf32>
    tpu.vector_store %arg13[%216, %c0_121, %c0_122], %219 {strides = array<i32>} : memref<6x8x32xf32, #tpu.memory_space<vmem>>, vector<1x8x32xf32>,
    %c6_i32 = arith.constant 6 : i32
    %c0_123 = arith.constant 0 : index
    %c0_124 = arith.constant 0 : index
    %220 = vector.load %arg15[%c0_123, %c0_124] : memref<8x32xf32, #tpu.memory_space<vmem>>, vector<8x32xf32>
    %c0_125 = arith.constant 0 : index
    %c0_126 = arith.constant 0 : index
    %c0_127 = arith.constant 0 : index
    %c0_128 = arith.constant 0 : index
    %221 = vector.load %arg11[%c0_125, %c0_126, %c0_127, %c0_128] : memref<1x2x8x32xf32, #tpu.memory_space<vmem>>, vector<1x1x8x32xf32>
    %222 = vector.shape_cast %221 : vector<1x1x8x32xf32> to vector<8x32xf32>
    %223 = vector.shape_cast %220 : vector<8x32xf32> to vector<1x1x8x32xf32>
    tpu.vector_store %arg11[%c0_125, %c0_126, %c0_127, %c0_128], %223 {strides = array<i32>} : memref<1x2x8x32xf32, #tpu.memory_space<vmem>>, vector<1x1x8x32xf32>,
    %c0_129 = arith.constant 0 : index
    %c0_130 = arith.constant 0 : index
    %224 = vector.load %arg16[%c0_129, %c0_130] : memref<8x32xf32, #tpu.memory_space<vmem>>, vector<8x32xf32>
    %c0_131 = arith.constant 0 : index
    %c0_132 = arith.constant 0 : index
    %c0_133 = arith.constant 0 : index
    %c0_134 = arith.constant 0 : index
    %225 = vector.load %arg12[%c0_131, %c0_132, %c0_133, %c0_134] : memref<1x2x8x32xf32, #tpu.memory_space<vmem>>, vector<1x1x8x32xf32>
    %226 = vector.shape_cast %225 : vector<1x1x8x32xf32> to vector<8x32xf32>
    %227 = vector.shape_cast %224 : vector<8x32xf32> to vector<1x1x8x32xf32>
    tpu.vector_store %arg12[%c0_131, %c0_132, %c0_133, %c0_134], %227 {strides = array<i32>} : memref<1x2x8x32xf32, #tpu.memory_space<vmem>>, vector<1x1x8x32xf32>,
    %c0_135 = arith.constant 0 : index
    %c0_136 = arith.constant 0 : index
    %c0_137 = arith.constant 0 : index
    %228 = vector.load %arg8[%c0_135, %c0_136, %c0_137] : memref<1x32x128xf32, #tpu.memory_space<vmem>>, vector<1x32x128xf32>
    %229 = vector.shape_cast %228 : vector<1x32x128xf32> to vector<32x128xf32>
    %c0_138 = arith.constant 0 : index
    %c0_139 = arith.constant 0 : index
    %c0_140 = arith.constant 0 : index
    %230 = vector.load %arg9[%c0_138, %c0_139, %c0_140] : memref<1x32x128xf32, #tpu.memory_space<vmem>>, vector<1x32x128xf32>
    %231 = vector.shape_cast %230 : vector<1x32x128xf32> to vector<32x128xf32>
    %c0_141 = arith.constant 0 : index
    %c0_142 = arith.constant 0 : index
    %c0_143 = arith.constant 0 : index
    %232 = vector.load %arg10[%c0_141, %c0_142, %c0_143] : memref<1x1x128xf32, #tpu.memory_space<vmem>>, vector<1x1x128xf32>
    %233 = vector.shape_cast %232 : vector<1x1x128xf32> to vector<1x128xf32>
    %c0_144 = arith.constant 0 : index
    %c0_145 = arith.constant 0 : index
    %c0_146 = arith.constant 0 : index
    %234 = vector.load %arg13[%c0_144, %c0_145, %c0_146] : memref<6x8x32xf32, #tpu.memory_space<vmem>>, vector<6x8x32xf32>
    %235 = vector.shape_cast %234 : vector<6x8x32xf32> to vector<48x32xf32>
    %cst_147 = arith.constant dense<0.000000e+00> : vector<48x128xf32>
    %236 = tpu.matmul %235, %229, %cst_147 {dimension_numbers = #tpu.dot_dimension_numbers<[1], [0], [0], [1], [0, 0, 1, 1], [], []>} : vector<48x32xf32>, vector<32x128xf32>, vector<48x128xf32> -> vector<48x128xf32>
    %237 = vector.broadcast %233 : vector<1x128xf32> to vector<48x128xf32>
    %238 = arith.addf %236, %237 : vector<48x128xf32>
    %239 = vector.shape_cast %238 : vector<48x128xf32> to vector<6x8x128xf32>
    %c0_148 = arith.constant 0 : index
    %c0_149 = arith.constant 0 : index
    %c0_150 = arith.constant 0 : index
    %240 = vector.load %arg14[%c0_148, %c0_149, %c0_150] : memref<6x8x128xf32, #tpu.memory_space<vmem>>, vector<6x8x128xf32>
    tpu.vector_store %arg14[%c0_148, %c0_149, %c0_150], %239 {strides = array<i32>} : memref<6x8x128xf32, #tpu.memory_space<vmem>>, vector<6x8x128xf32>,
    %c0_151 = arith.constant 0 : index
    %c1 = arith.constant 1 : index
    %c0_152 = arith.constant 0 : index
    %c0_153 = arith.constant 0 : index
    %241 = vector.load %arg3[%c0_151, %c1, %c0_152, %c0_153] : memref<1x2x8x32xf32, #tpu.memory_space<vmem>>, vector<1x1x8x32xf32>
    %242 = vector.shape_cast %241 : vector<1x1x8x32xf32> to vector<8x32xf32>
    %c0_154 = arith.constant 0 : index
    %c0_155 = arith.constant 0 : index
    %243 = vector.load %arg15[%c0_154, %c0_155] : memref<8x32xf32, #tpu.memory_space<vmem>>, vector<8x32xf32>
    tpu.vector_store %arg15[%c0_154, %c0_155], %242 {strides = array<i32>} : memref<8x32xf32, #tpu.memory_space<vmem>>, vector<8x32xf32>,
    %c0_156 = arith.constant 0 : index
    %c1_157 = arith.constant 1 : index
    %c0_158 = arith.constant 0 : index
    %c0_159 = arith.constant 0 : index
    %244 = vector.load %arg4[%c0_156, %c1_157, %c0_158, %c0_159] : memref<1x2x8x32xf32, #tpu.memory_space<vmem>>, vector<1x1x8x32xf32>
    %245 = vector.shape_cast %244 : vector<1x1x8x32xf32> to vector<8x32xf32>
    %c0_160 = arith.constant 0 : index
    %c0_161 = arith.constant 0 : index
    %246 = vector.load %arg16[%c0_160, %c0_161] : memref<8x32xf32, #tpu.memory_space<vmem>>, vector<8x32xf32>
    tpu.vector_store %arg16[%c0_160, %c0_161], %245 {strides = array<i32>} : memref<8x32xf32, #tpu.memory_space<vmem>>, vector<8x32xf32>,
    %c0_i32_162 = arith.constant 0 : i32
    %c0_163 = arith.constant 0 : index
    %c0_164 = arith.constant 0 : index
    %247 = vector.load %arg15[%c0_163, %c0_164] : memref<8x32xf32, #tpu.memory_space<vmem>>, vector<8x32xf32>
    %c0_165 = arith.constant 0 : index
    %c0_166 = arith.constant 0 : index
    %248 = vector.load %arg16[%c0_165, %c0_166] : memref<8x32xf32, #tpu.memory_space<vmem>>, vector<8x32xf32>
    %249 = arith.index_cast %c0_i32_162 : i32 to index
    %c0_167 = arith.constant 0 : index
    %c0_168 = arith.constant 0 : index
    %250 = vector.load %arg14[%249, %c0_167, %c0_168] : memref<6x8x128xf32, #tpu.memory_space<vmem>>, vector<1x8x128xf32>
    %251 = vector.shape_cast %250 : vector<1x8x128xf32> to vector<8x128xf32>
    %cst_169 = arith.constant dense<0.000000e+00> : vector<8x128xf32>
    %252 = tpu.matmul %247, %231, %cst_169 {dimension_numbers = #tpu.dot_dimension_numbers<[1], [0], [0], [1], [0, 0, 1, 1], [], []>} : vector<8x32xf32>, vector<32x128xf32>, vector<8x128xf32> -> vector<8x128xf32>
    %253 = arith.addf %251, %252 : vector<8x128xf32>
    %cst_170 = arith.constant 0.000000e+00 : f32
    %254 = vector.broadcast %cst_170 : f32 to vector<8x128xf32>
    %255 = arith.subf %254, %253 : vector<8x128xf32>
    %256 = math.exp %255 : vector<8x128xf32>
    %cst_171 = arith.constant 1.000000e+00 : f32
    %257 = vector.broadcast %cst_171 : f32 to vector<8x128xf32>
    %258 = arith.addf %257, %256 : vector<8x128xf32>
    %cst_172 = arith.constant 1.000000e+00 : f32
    %259 = vector.broadcast %cst_172 : f32 to vector<8x128xf32>
    %260 = arith.divf %259, %258 : vector<8x128xf32>
    %261 = math.tanh %253 : vector<8x128xf32>
    %262 = vector.extract_strided_slice %260 {offsets = [0, 0], sizes = [8, 32], strides = [1, 1]} : vector<8x128xf32> to vector<8x32xf32>
    %263 = vector.extract_strided_slice %260 {offsets = [0, 32], sizes = [8, 32], strides = [1, 1]} : vector<8x128xf32> to vector<8x32xf32>
    %264 = vector.extract_strided_slice %261 {offsets = [0, 64], sizes = [8, 32], strides = [1, 1]} : vector<8x128xf32> to vector<8x32xf32>
    %265 = vector.extract_strided_slice %260 {offsets = [0, 96], sizes = [8, 32], strides = [1, 1]} : vector<8x128xf32> to vector<8x32xf32>
    %266 = arith.mulf %263, %248 : vector<8x32xf32>
    %267 = arith.mulf %262, %264 : vector<8x32xf32>
    %268 = arith.addf %266, %267 : vector<8x32xf32>
    %269 = math.tanh %268 : vector<8x32xf32>
    %270 = arith.mulf %265, %269 : vector<8x32xf32>
    %271 = arith.cmpi slt, %c0_i32_162, %1 : i32
    %272 = arith.select %271, %270, %247 : vector<8x32xf32>
    %273 = arith.select %271, %268, %248 : vector<8x32xf32>
    %c0_173 = arith.constant 0 : index
    %c0_174 = arith.constant 0 : index
    %274 = vector.load %arg15[%c0_173, %c0_174] : memref<8x32xf32, #tpu.memory_space<vmem>>, vector<8x32xf32>
    tpu.vector_store %arg15[%c0_173, %c0_174], %272 {strides = array<i32>} : memref<8x32xf32, #tpu.memory_space<vmem>>, vector<8x32xf32>,
    %c0_175 = arith.constant 0 : index
    %c0_176 = arith.constant 0 : index
    %275 = vector.load %arg16[%c0_175, %c0_176] : memref<8x32xf32, #tpu.memory_space<vmem>>, vector<8x32xf32>
    tpu.vector_store %arg16[%c0_175, %c0_176], %273 {strides = array<i32>} : memref<8x32xf32, #tpu.memory_space<vmem>>, vector<8x32xf32>,
    %c1_i32_177 = arith.constant 1 : i32
    %c0_178 = arith.constant 0 : index
    %c0_179 = arith.constant 0 : index
    %276 = vector.load %arg15[%c0_178, %c0_179] : memref<8x32xf32, #tpu.memory_space<vmem>>, vector<8x32xf32>
    %c0_180 = arith.constant 0 : index
    %c0_181 = arith.constant 0 : index
    %277 = vector.load %arg16[%c0_180, %c0_181] : memref<8x32xf32, #tpu.memory_space<vmem>>, vector<8x32xf32>
    %278 = arith.index_cast %c1_i32_177 : i32 to index
    %c0_182 = arith.constant 0 : index
    %c0_183 = arith.constant 0 : index
    %279 = vector.load %arg14[%278, %c0_182, %c0_183] : memref<6x8x128xf32, #tpu.memory_space<vmem>>, vector<1x8x128xf32>
    %280 = vector.shape_cast %279 : vector<1x8x128xf32> to vector<8x128xf32>
    %cst_184 = arith.constant dense<0.000000e+00> : vector<8x128xf32>
    %281 = tpu.matmul %276, %231, %cst_184 {dimension_numbers = #tpu.dot_dimension_numbers<[1], [0], [0], [1], [0, 0, 1, 1], [], []>} : vector<8x32xf32>, vector<32x128xf32>, vector<8x128xf32> -> vector<8x128xf32>
    %282 = arith.addf %280, %281 : vector<8x128xf32>
    %cst_185 = arith.constant 0.000000e+00 : f32
    %283 = vector.broadcast %cst_185 : f32 to vector<8x128xf32>
    %284 = arith.subf %283, %282 : vector<8x128xf32>
    %285 = math.exp %284 : vector<8x128xf32>
    %cst_186 = arith.constant 1.000000e+00 : f32
    %286 = vector.broadcast %cst_186 : f32 to vector<8x128xf32>
    %287 = arith.addf %286, %285 : vector<8x128xf32>
    %cst_187 = arith.constant 1.000000e+00 : f32
    %288 = vector.broadcast %cst_187 : f32 to vector<8x128xf32>
    %289 = arith.divf %288, %287 : vector<8x128xf32>
    %290 = math.tanh %282 : vector<8x128xf32>
    %291 = vector.extract_strided_slice %289 {offsets = [0, 0], sizes = [8, 32], strides = [1, 1]} : vector<8x128xf32> to vector<8x32xf32>
    %292 = vector.extract_strided_slice %289 {offsets = [0, 32], sizes = [8, 32], strides = [1, 1]} : vector<8x128xf32> to vector<8x32xf32>
    %293 = vector.extract_strided_slice %290 {offsets = [0, 64], sizes = [8, 32], strides = [1, 1]} : vector<8x128xf32> to vector<8x32xf32>
    %294 = vector.extract_strided_slice %289 {offsets = [0, 96], sizes = [8, 32], strides = [1, 1]} : vector<8x128xf32> to vector<8x32xf32>
    %295 = arith.mulf %292, %277 : vector<8x32xf32>
    %296 = arith.mulf %291, %293 : vector<8x32xf32>
    %297 = arith.addf %295, %296 : vector<8x32xf32>
    %298 = math.tanh %297 : vector<8x32xf32>
    %299 = arith.mulf %294, %298 : vector<8x32xf32>
    %300 = arith.cmpi slt, %c1_i32_177, %1 : i32
    %301 = arith.select %300, %299, %276 : vector<8x32xf32>
    %302 = arith.select %300, %297, %277 : vector<8x32xf32>
    %c0_188 = arith.constant 0 : index
    %c0_189 = arith.constant 0 : index
    %303 = vector.load %arg15[%c0_188, %c0_189] : memref<8x32xf32, #tpu.memory_space<vmem>>, vector<8x32xf32>
    tpu.vector_store %arg15[%c0_188, %c0_189], %301 {strides = array<i32>} : memref<8x32xf32, #tpu.memory_space<vmem>>, vector<8x32xf32>,
    %c0_190 = arith.constant 0 : index
    %c0_191 = arith.constant 0 : index
    %304 = vector.load %arg16[%c0_190, %c0_191] : memref<8x32xf32, #tpu.memory_space<vmem>>, vector<8x32xf32>
    tpu.vector_store %arg16[%c0_190, %c0_191], %302 {strides = array<i32>} : memref<8x32xf32, #tpu.memory_space<vmem>>, vector<8x32xf32>,
    %c2_i32_192 = arith.constant 2 : i32
    %c0_193 = arith.constant 0 : index
    %c0_194 = arith.constant 0 : index
    %305 = vector.load %arg15[%c0_193, %c0_194] : memref<8x32xf32, #tpu.memory_space<vmem>>, vector<8x32xf32>
    %c0_195 = arith.constant 0 : index
    %c0_196 = arith.constant 0 : index
    %306 = vector.load %arg16[%c0_195, %c0_196] : memref<8x32xf32, #tpu.memory_space<vmem>>, vector<8x32xf32>
    %307 = arith.index_cast %c2_i32_192 : i32 to index
    %c0_197 = arith.constant 0 : index
    %c0_198 = arith.constant 0 : index
    %308 = vector.load %arg14[%307, %c0_197, %c0_198] : memref<6x8x128xf32, #tpu.memory_space<vmem>>, vector<1x8x128xf32>
    %309 = vector.shape_cast %308 : vector<1x8x128xf32> to vector<8x128xf32>
    %cst_199 = arith.constant dense<0.000000e+00> : vector<8x128xf32>
    %310 = tpu.matmul %305, %231, %cst_199 {dimension_numbers = #tpu.dot_dimension_numbers<[1], [0], [0], [1], [0, 0, 1, 1], [], []>} : vector<8x32xf32>, vector<32x128xf32>, vector<8x128xf32> -> vector<8x128xf32>
    %311 = arith.addf %309, %310 : vector<8x128xf32>
    %cst_200 = arith.constant 0.000000e+00 : f32
    %312 = vector.broadcast %cst_200 : f32 to vector<8x128xf32>
    %313 = arith.subf %312, %311 : vector<8x128xf32>
    %314 = math.exp %313 : vector<8x128xf32>
    %cst_201 = arith.constant 1.000000e+00 : f32
    %315 = vector.broadcast %cst_201 : f32 to vector<8x128xf32>
    %316 = arith.addf %315, %314 : vector<8x128xf32>
    %cst_202 = arith.constant 1.000000e+00 : f32
    %317 = vector.broadcast %cst_202 : f32 to vector<8x128xf32>
    %318 = arith.divf %317, %316 : vector<8x128xf32>
    %319 = math.tanh %311 : vector<8x128xf32>
    %320 = vector.extract_strided_slice %318 {offsets = [0, 0], sizes = [8, 32], strides = [1, 1]} : vector<8x128xf32> to vector<8x32xf32>
    %321 = vector.extract_strided_slice %318 {offsets = [0, 32], sizes = [8, 32], strides = [1, 1]} : vector<8x128xf32> to vector<8x32xf32>
    %322 = vector.extract_strided_slice %319 {offsets = [0, 64], sizes = [8, 32], strides = [1, 1]} : vector<8x128xf32> to vector<8x32xf32>
    %323 = vector.extract_strided_slice %318 {offsets = [0, 96], sizes = [8, 32], strides = [1, 1]} : vector<8x128xf32> to vector<8x32xf32>
    %324 = arith.mulf %321, %306 : vector<8x32xf32>
    %325 = arith.mulf %320, %322 : vector<8x32xf32>
    %326 = arith.addf %324, %325 : vector<8x32xf32>
    %327 = math.tanh %326 : vector<8x32xf32>
    %328 = arith.mulf %323, %327 : vector<8x32xf32>
    %329 = arith.cmpi slt, %c2_i32_192, %1 : i32
    %330 = arith.select %329, %328, %305 : vector<8x32xf32>
    %331 = arith.select %329, %326, %306 : vector<8x32xf32>
    %c0_203 = arith.constant 0 : index
    %c0_204 = arith.constant 0 : index
    %332 = vector.load %arg15[%c0_203, %c0_204] : memref<8x32xf32, #tpu.memory_space<vmem>>, vector<8x32xf32>
    tpu.vector_store %arg15[%c0_203, %c0_204], %330 {strides = array<i32>} : memref<8x32xf32, #tpu.memory_space<vmem>>, vector<8x32xf32>,
    %c0_205 = arith.constant 0 : index
    %c0_206 = arith.constant 0 : index
    %333 = vector.load %arg16[%c0_205, %c0_206] : memref<8x32xf32, #tpu.memory_space<vmem>>, vector<8x32xf32>
    tpu.vector_store %arg16[%c0_205, %c0_206], %331 {strides = array<i32>} : memref<8x32xf32, #tpu.memory_space<vmem>>, vector<8x32xf32>,
    %c3_i32_207 = arith.constant 3 : i32
    %c0_208 = arith.constant 0 : index
    %c0_209 = arith.constant 0 : index
    %334 = vector.load %arg15[%c0_208, %c0_209] : memref<8x32xf32, #tpu.memory_space<vmem>>, vector<8x32xf32>
    %c0_210 = arith.constant 0 : index
    %c0_211 = arith.constant 0 : index
    %335 = vector.load %arg16[%c0_210, %c0_211] : memref<8x32xf32, #tpu.memory_space<vmem>>, vector<8x32xf32>
    %336 = arith.index_cast %c3_i32_207 : i32 to index
    %c0_212 = arith.constant 0 : index
    %c0_213 = arith.constant 0 : index
    %337 = vector.load %arg14[%336, %c0_212, %c0_213] : memref<6x8x128xf32, #tpu.memory_space<vmem>>, vector<1x8x128xf32>
    %338 = vector.shape_cast %337 : vector<1x8x128xf32> to vector<8x128xf32>
    %cst_214 = arith.constant dense<0.000000e+00> : vector<8x128xf32>
    %339 = tpu.matmul %334, %231, %cst_214 {dimension_numbers = #tpu.dot_dimension_numbers<[1], [0], [0], [1], [0, 0, 1, 1], [], []>} : vector<8x32xf32>, vector<32x128xf32>, vector<8x128xf32> -> vector<8x128xf32>
    %340 = arith.addf %338, %339 : vector<8x128xf32>
    %cst_215 = arith.constant 0.000000e+00 : f32
    %341 = vector.broadcast %cst_215 : f32 to vector<8x128xf32>
    %342 = arith.subf %341, %340 : vector<8x128xf32>
    %343 = math.exp %342 : vector<8x128xf32>
    %cst_216 = arith.constant 1.000000e+00 : f32
    %344 = vector.broadcast %cst_216 : f32 to vector<8x128xf32>
    %345 = arith.addf %344, %343 : vector<8x128xf32>
    %cst_217 = arith.constant 1.000000e+00 : f32
    %346 = vector.broadcast %cst_217 : f32 to vector<8x128xf32>
    %347 = arith.divf %346, %345 : vector<8x128xf32>
    %348 = math.tanh %340 : vector<8x128xf32>
    %349 = vector.extract_strided_slice %347 {offsets = [0, 0], sizes = [8, 32], strides = [1, 1]} : vector<8x128xf32> to vector<8x32xf32>
    %350 = vector.extract_strided_slice %347 {offsets = [0, 32], sizes = [8, 32], strides = [1, 1]} : vector<8x128xf32> to vector<8x32xf32>
    %351 = vector.extract_strided_slice %348 {offsets = [0, 64], sizes = [8, 32], strides = [1, 1]} : vector<8x128xf32> to vector<8x32xf32>
    %352 = vector.extract_strided_slice %347 {offsets = [0, 96], sizes = [8, 32], strides = [1, 1]} : vector<8x128xf32> to vector<8x32xf32>
    %353 = arith.mulf %350, %335 : vector<8x32xf32>
    %354 = arith.mulf %349, %351 : vector<8x32xf32>
    %355 = arith.addf %353, %354 : vector<8x32xf32>
    %356 = math.tanh %355 : vector<8x32xf32>
    %357 = arith.mulf %352, %356 : vector<8x32xf32>
    %358 = arith.cmpi slt, %c3_i32_207, %1 : i32
    %359 = arith.select %358, %357, %334 : vector<8x32xf32>
    %360 = arith.select %358, %355, %335 : vector<8x32xf32>
    %c0_218 = arith.constant 0 : index
    %c0_219 = arith.constant 0 : index
    %361 = vector.load %arg15[%c0_218, %c0_219] : memref<8x32xf32, #tpu.memory_space<vmem>>, vector<8x32xf32>
    tpu.vector_store %arg15[%c0_218, %c0_219], %359 {strides = array<i32>} : memref<8x32xf32, #tpu.memory_space<vmem>>, vector<8x32xf32>,
    %c0_220 = arith.constant 0 : index
    %c0_221 = arith.constant 0 : index
    %362 = vector.load %arg16[%c0_220, %c0_221] : memref<8x32xf32, #tpu.memory_space<vmem>>, vector<8x32xf32>
    tpu.vector_store %arg16[%c0_220, %c0_221], %360 {strides = array<i32>} : memref<8x32xf32, #tpu.memory_space<vmem>>, vector<8x32xf32>,
    %c4_i32_222 = arith.constant 4 : i32
    %c0_223 = arith.constant 0 : index
    %c0_224 = arith.constant 0 : index
    %363 = vector.load %arg15[%c0_223, %c0_224] : memref<8x32xf32, #tpu.memory_space<vmem>>, vector<8x32xf32>
    %c0_225 = arith.constant 0 : index
    %c0_226 = arith.constant 0 : index
    %364 = vector.load %arg16[%c0_225, %c0_226] : memref<8x32xf32, #tpu.memory_space<vmem>>, vector<8x32xf32>
    %365 = arith.index_cast %c4_i32_222 : i32 to index
    %c0_227 = arith.constant 0 : index
    %c0_228 = arith.constant 0 : index
    %366 = vector.load %arg14[%365, %c0_227, %c0_228] : memref<6x8x128xf32, #tpu.memory_space<vmem>>, vector<1x8x128xf32>
    %367 = vector.shape_cast %366 : vector<1x8x128xf32> to vector<8x128xf32>
    %cst_229 = arith.constant dense<0.000000e+00> : vector<8x128xf32>
    %368 = tpu.matmul %363, %231, %cst_229 {dimension_numbers = #tpu.dot_dimension_numbers<[1], [0], [0], [1], [0, 0, 1, 1], [], []>} : vector<8x32xf32>, vector<32x128xf32>, vector<8x128xf32> -> vector<8x128xf32>
    %369 = arith.addf %367, %368 : vector<8x128xf32>
    %cst_230 = arith.constant 0.000000e+00 : f32
    %370 = vector.broadcast %cst_230 : f32 to vector<8x128xf32>
    %371 = arith.subf %370, %369 : vector<8x128xf32>
    %372 = math.exp %371 : vector<8x128xf32>
    %cst_231 = arith.constant 1.000000e+00 : f32
    %373 = vector.broadcast %cst_231 : f32 to vector<8x128xf32>
    %374 = arith.addf %373, %372 : vector<8x128xf32>
    %cst_232 = arith.constant 1.000000e+00 : f32
    %375 = vector.broadcast %cst_232 : f32 to vector<8x128xf32>
    %376 = arith.divf %375, %374 : vector<8x128xf32>
    %377 = math.tanh %369 : vector<8x128xf32>
    %378 = vector.extract_strided_slice %376 {offsets = [0, 0], sizes = [8, 32], strides = [1, 1]} : vector<8x128xf32> to vector<8x32xf32>
    %379 = vector.extract_strided_slice %376 {offsets = [0, 32], sizes = [8, 32], strides = [1, 1]} : vector<8x128xf32> to vector<8x32xf32>
    %380 = vector.extract_strided_slice %377 {offsets = [0, 64], sizes = [8, 32], strides = [1, 1]} : vector<8x128xf32> to vector<8x32xf32>
    %381 = vector.extract_strided_slice %376 {offsets = [0, 96], sizes = [8, 32], strides = [1, 1]} : vector<8x128xf32> to vector<8x32xf32>
    %382 = arith.mulf %379, %364 : vector<8x32xf32>
    %383 = arith.mulf %378, %380 : vector<8x32xf32>
    %384 = arith.addf %382, %383 : vector<8x32xf32>
    %385 = math.tanh %384 : vector<8x32xf32>
    %386 = arith.mulf %381, %385 : vector<8x32xf32>
    %387 = arith.cmpi slt, %c4_i32_222, %1 : i32
    %388 = arith.select %387, %386, %363 : vector<8x32xf32>
    %389 = arith.select %387, %384, %364 : vector<8x32xf32>
    %c0_233 = arith.constant 0 : index
    %c0_234 = arith.constant 0 : index
    %390 = vector.load %arg15[%c0_233, %c0_234] : memref<8x32xf32, #tpu.memory_space<vmem>>, vector<8x32xf32>
    tpu.vector_store %arg15[%c0_233, %c0_234], %388 {strides = array<i32>} : memref<8x32xf32, #tpu.memory_space<vmem>>, vector<8x32xf32>,
    %c0_235 = arith.constant 0 : index
    %c0_236 = arith.constant 0 : index
    %391 = vector.load %arg16[%c0_235, %c0_236] : memref<8x32xf32, #tpu.memory_space<vmem>>, vector<8x32xf32>
    tpu.vector_store %arg16[%c0_235, %c0_236], %389 {strides = array<i32>} : memref<8x32xf32, #tpu.memory_space<vmem>>, vector<8x32xf32>,
    %c5_i32_237 = arith.constant 5 : i32
    %c0_238 = arith.constant 0 : index
    %c0_239 = arith.constant 0 : index
    %392 = vector.load %arg15[%c0_238, %c0_239] : memref<8x32xf32, #tpu.memory_space<vmem>>, vector<8x32xf32>
    %c0_240 = arith.constant 0 : index
    %c0_241 = arith.constant 0 : index
    %393 = vector.load %arg16[%c0_240, %c0_241] : memref<8x32xf32, #tpu.memory_space<vmem>>, vector<8x32xf32>
    %394 = arith.index_cast %c5_i32_237 : i32 to index
    %c0_242 = arith.constant 0 : index
    %c0_243 = arith.constant 0 : index
    %395 = vector.load %arg14[%394, %c0_242, %c0_243] : memref<6x8x128xf32, #tpu.memory_space<vmem>>, vector<1x8x128xf32>
    %396 = vector.shape_cast %395 : vector<1x8x128xf32> to vector<8x128xf32>
    %cst_244 = arith.constant dense<0.000000e+00> : vector<8x128xf32>
    %397 = tpu.matmul %392, %231, %cst_244 {dimension_numbers = #tpu.dot_dimension_numbers<[1], [0], [0], [1], [0, 0, 1, 1], [], []>} : vector<8x32xf32>, vector<32x128xf32>, vector<8x128xf32> -> vector<8x128xf32>
    %398 = arith.addf %396, %397 : vector<8x128xf32>
    %cst_245 = arith.constant 0.000000e+00 : f32
    %399 = vector.broadcast %cst_245 : f32 to vector<8x128xf32>
    %400 = arith.subf %399, %398 : vector<8x128xf32>
    %401 = math.exp %400 : vector<8x128xf32>
    %cst_246 = arith.constant 1.000000e+00 : f32
    %402 = vector.broadcast %cst_246 : f32 to vector<8x128xf32>
    %403 = arith.addf %402, %401 : vector<8x128xf32>
    %cst_247 = arith.constant 1.000000e+00 : f32
    %404 = vector.broadcast %cst_247 : f32 to vector<8x128xf32>
    %405 = arith.divf %404, %403 : vector<8x128xf32>
    %406 = math.tanh %398 : vector<8x128xf32>
    %407 = vector.extract_strided_slice %405 {offsets = [0, 0], sizes = [8, 32], strides = [1, 1]} : vector<8x128xf32> to vector<8x32xf32>
    %408 = vector.extract_strided_slice %405 {offsets = [0, 32], sizes = [8, 32], strides = [1, 1]} : vector<8x128xf32> to vector<8x32xf32>
    %409 = vector.extract_strided_slice %406 {offsets = [0, 64], sizes = [8, 32], strides = [1, 1]} : vector<8x128xf32> to vector<8x32xf32>
    %410 = vector.extract_strided_slice %405 {offsets = [0, 96], sizes = [8, 32], strides = [1, 1]} : vector<8x128xf32> to vector<8x32xf32>
    %411 = arith.mulf %408, %393 : vector<8x32xf32>
    %412 = arith.mulf %407, %409 : vector<8x32xf32>
    %413 = arith.addf %411, %412 : vector<8x32xf32>
    %414 = math.tanh %413 : vector<8x32xf32>
    %415 = arith.mulf %410, %414 : vector<8x32xf32>
    %416 = arith.cmpi slt, %c5_i32_237, %1 : i32
    %417 = arith.select %416, %415, %392 : vector<8x32xf32>
    %418 = arith.select %416, %413, %393 : vector<8x32xf32>
    %c0_248 = arith.constant 0 : index
    %c0_249 = arith.constant 0 : index
    %419 = vector.load %arg15[%c0_248, %c0_249] : memref<8x32xf32, #tpu.memory_space<vmem>>, vector<8x32xf32>
    tpu.vector_store %arg15[%c0_248, %c0_249], %417 {strides = array<i32>} : memref<8x32xf32, #tpu.memory_space<vmem>>, vector<8x32xf32>,
    %c0_250 = arith.constant 0 : index
    %c0_251 = arith.constant 0 : index
    %420 = vector.load %arg16[%c0_250, %c0_251] : memref<8x32xf32, #tpu.memory_space<vmem>>, vector<8x32xf32>
    tpu.vector_store %arg16[%c0_250, %c0_251], %418 {strides = array<i32>} : memref<8x32xf32, #tpu.memory_space<vmem>>, vector<8x32xf32>,
    %c6_i32_252 = arith.constant 6 : i32
    %c0_253 = arith.constant 0 : index
    %c0_254 = arith.constant 0 : index
    %421 = vector.load %arg15[%c0_253, %c0_254] : memref<8x32xf32, #tpu.memory_space<vmem>>, vector<8x32xf32>
    %c0_255 = arith.constant 0 : index
    %c1_256 = arith.constant 1 : index
    %c0_257 = arith.constant 0 : index
    %c0_258 = arith.constant 0 : index
    %422 = vector.load %arg11[%c0_255, %c1_256, %c0_257, %c0_258] : memref<1x2x8x32xf32, #tpu.memory_space<vmem>>, vector<1x1x8x32xf32>
    %423 = vector.shape_cast %422 : vector<1x1x8x32xf32> to vector<8x32xf32>
    %424 = vector.shape_cast %421 : vector<8x32xf32> to vector<1x1x8x32xf32>
    tpu.vector_store %arg11[%c0_255, %c1_256, %c0_257, %c0_258], %424 {strides = array<i32>} : memref<1x2x8x32xf32, #tpu.memory_space<vmem>>, vector<1x1x8x32xf32>,
    %c0_259 = arith.constant 0 : index
    %c0_260 = arith.constant 0 : index
    %425 = vector.load %arg16[%c0_259, %c0_260] : memref<8x32xf32, #tpu.memory_space<vmem>>, vector<8x32xf32>
    %c0_261 = arith.constant 0 : index
    %c1_262 = arith.constant 1 : index
    %c0_263 = arith.constant 0 : index
    %c0_264 = arith.constant 0 : index
    %426 = vector.load %arg12[%c0_261, %c1_262, %c0_263, %c0_264] : memref<1x2x8x32xf32, #tpu.memory_space<vmem>>, vector<1x1x8x32xf32>
    %427 = vector.shape_cast %426 : vector<1x1x8x32xf32> to vector<8x32xf32>
    %428 = vector.shape_cast %425 : vector<8x32xf32> to vector<1x1x8x32xf32>
    tpu.vector_store %arg12[%c0_261, %c1_262, %c0_263, %c0_264], %428 {strides = array<i32>} : memref<1x2x8x32xf32, #tpu.memory_space<vmem>>, vector<1x1x8x32xf32>,
    return
  }
  func.func @transform_0(%arg0: i32, %arg1: memref<2xi32, #tpu.memory_space<smem>>) -> (i32, i32, i32, i32) {
    %c0_i32 = arith.constant 0 : i32
    %c0_i32_0 = arith.constant 0 : i32
    %c0_i32_1 = arith.constant 0 : i32
    %c0_i32_2 = arith.constant 0 : i32
    return %arg0, %c0_i32, %c0_i32_0, %c0_i32_1 : i32, i32, i32, i32
  }
  func.func @transform_1(%arg0: i32, %arg1: memref<2xi32, #tpu.memory_space<smem>>) -> (i32, i32, i32, i32) {
    %c0_i32 = arith.constant 0 : i32
    %c0_i32_0 = arith.constant 0 : i32
    %c0_i32_1 = arith.constant 0 : i32
    %c0_i32_2 = arith.constant 0 : i32
    return %arg0, %c0_i32, %c0_i32_0, %c0_i32_1 : i32, i32, i32, i32
  }
  func.func @transform_2(%arg0: i32, %arg1: memref<2xi32, #tpu.memory_space<smem>>) -> (i32, i32, i32, i32) {
    %c0_i32 = arith.constant 0 : i32
    %c0_i32_0 = arith.constant 0 : i32
    %c0_i32_1 = arith.constant 0 : i32
    %c0_i32_2 = arith.constant 0 : i32
    return %arg0, %c0_i32, %c0_i32_0, %c0_i32_1 : i32, i32, i32, i32
  }
  func.func @transform_3(%arg0: i32, %arg1: memref<2xi32, #tpu.memory_space<smem>>) -> (i32, i32, i32) {
    %c0_i32 = arith.constant 0 : i32
    %c0_i32_0 = arith.constant 0 : i32
    %c0_i32_1 = arith.constant 0 : i32
    return %arg0, %c0_i32, %c0_i32_0 : i32, i32, i32
  }
  func.func @transform_4(%arg0: i32, %arg1: memref<2xi32, #tpu.memory_space<smem>>) -> (i32, i32, i32) {
    %c0_i32 = arith.constant 0 : i32
    %c0_i32_0 = arith.constant 0 : i32
    %c0_i32_1 = arith.constant 0 : i32
    return %arg0, %c0_i32, %c0_i32_0 : i32, i32, i32
  }
  func.func @transform_5(%arg0: i32, %arg1: memref<2xi32, #tpu.memory_space<smem>>) -> (i32, i32, i32) {
    %c0_i32 = arith.constant 0 : i32
    %c0_i32_0 = arith.constant 0 : i32
    %c0_i32_1 = arith.constant 0 : i32
    return %arg0, %c0_i32, %c0_i32_0 : i32, i32, i32
  }
  func.func @transform_6(%arg0: i32, %arg1: memref<2xi32, #tpu.memory_space<smem>>) -> (i32, i32, i32) {
    %c0_i32 = arith.constant 0 : i32
    %c0_i32_0 = arith.constant 0 : i32
    %c0_i32_1 = arith.constant 0 : i32
    return %arg0, %c0_i32, %c0_i32_0 : i32, i32, i32
  }
  func.func @transform_7(%arg0: i32, %arg1: memref<2xi32, #tpu.memory_space<smem>>) -> (i32, i32, i32) {
    %c0_i32 = arith.constant 0 : i32
    %c0_i32_0 = arith.constant 0 : i32
    %c0_i32_1 = arith.constant 0 : i32
    return %arg0, %c0_i32, %c0_i32_0 : i32, i32, i32
  }
  func.func @transform_8(%arg0: i32, %arg1: memref<2xi32, #tpu.memory_space<smem>>) -> (i32, i32, i32) {
    %c0_i32 = arith.constant 0 : i32
    %c0_i32_0 = arith.constant 0 : i32
    %c0_i32_1 = arith.constant 0 : i32
    return %arg0, %c0_i32, %c0_i32_0 : i32, i32, i32
  }
  func.func @transform_9(%arg0: i32, %arg1: memref<2xi32, #tpu.memory_space<smem>>) -> (i32, i32, i32, i32) {
    %c0_i32 = arith.constant 0 : i32
    %c0_i32_0 = arith.constant 0 : i32
    %c0_i32_1 = arith.constant 0 : i32
    %c0_i32_2 = arith.constant 0 : i32
    return %arg0, %c0_i32, %c0_i32_0, %c0_i32_1 : i32, i32, i32, i32
  }
  func.func @transform_10(%arg0: i32, %arg1: memref<2xi32, #tpu.memory_space<smem>>) -> (i32, i32, i32, i32) {
    %c0_i32 = arith.constant 0 : i32
    %c0_i32_0 = arith.constant 0 : i32
    %c0_i32_1 = arith.constant 0 : i32
    %c0_i32_2 = arith.constant 0 : i32
    return %arg0, %c0_i32, %c0_i32_0, %c0_i32_1 : i32, i32, i32, i32
  }
}

</mosaic_0001>

<bundles_post_ra>
// kernel: tpu_custom_call.1
= control target key start
LH: loop header
LB: loop body
LE: loop exit
PB: predicated region body
PF: predicated region fallthrough
CT: control target
= control target key end

     0   :  { %s3549_s17 = smov [#allocation7]   ;;  %s4515_s0 = inlined_call_operand.hbm [shape: s32[2], index: 0, kind: input, shape index: {}]   ;;  %s4516_s1 = inlined_call_operand.hbm [shape: f32[2,6,8,32], index: 1, kind: input, shape index: {}]   ;;  %s4517_s2 = inlined_call_operand.hbm [shape: f32[2,2,8,32], index: 2, kind: input, shape index: {}]   ;;  %s4518_s3 = inlined_call_operand.hbm [shape: f32[2,2,8,32], index: 3, kind: input, shape index: {}]   ;;  %s4519_s4 = inlined_call_operand.hbm [shape: f32[2,32,128], index: 4, kind: input, shape index: {}]   ;;  %s4520_s5 = inlined_call_operand.hbm [shape: f32[2,32,128], index: 5, kind: input, shape index: {}]   ;;  %s4521_s6 = inlined_call_operand.vmem [shape: f32[2,1,128], index: 6, kind: input, shape index: {}]   ;;  %s4522_s7 = inlined_call_operand.hbm [shape: f32[2,32,128], index: 7, kind: input, shape index: {}]   ;;  %s4523_s8 = inlined_call_operand.hbm [shape: f32[2,32,128], index: 8, kind: input, shape index: {}]   ;;  %s4524_s9 = inlined_call_operand.vmem [shape: f32[2,1,128], index: 9, kind: input, shape index: {}]   ;;  %s4525_s10 = inlined_call_operand.hbm [shape: f32[2,2,8,32], index: 10, kind: output, shape index: {0}]   ;;  %s4526_s11 = inlined_call_operand.hbm [shape: f32[2,2,8,32], index: 11, kind: output, shape index: {1}]  }
   0x1   :  { %4545 = sst [smem:[#allocation36_spill]] %s4517_s2 }
   0x2   :  { %4546 = sst [smem:[#allocation37_spill]] %s4519_s4 }
   0x3   :  { %4547 = sst [smem:[#allocation38_spill]] %s4521_s6 }
   0x4   :  { %4548 = sst [smem:[#allocation39_spill]] %s4522_s7 }
   0x5   :  { %4549 = sst [smem:[#allocation40_spill]] %s4524_s9 }
   0x6   :  { %4550 = sst [smem:[#allocation41_spill]] %s4525_s10 }
   0x7   :  { %4551 = sst [smem:[#allocation42_spill]] %s4526_s11 }
   0x8   :  { %18 = dma.hbm_to_smem %s4515_s0, 16, %s3549_s17, [#allocation6] }
   0x9   :  { %3507 = dma.done.wait [#allocation6], 16 }
   0xa   :  { %3508 = vsyncadd [#allocation6], 4294967280 }
   0xb   :  { %20 = sfence }
   0xc   :  { %21 = vsyncpa [#allocation9], 0 }
   0xd   :  { %23 = vsyncpa [#allocation9 + $0x1], 0 }
   0xe   :  { %24 = vsyncpa [#allocation12], 0 }
   0xf   :  { %26 = vsyncpa [#allocation12 + $0x1], 0 }
  0x10   :  { %27 = vsyncpa [#allocation15], 0 }
  0x11   :  { %29 = vsyncpa [#allocation15 + $0x1], 0 }
  0x12   :  { %30 = vsyncpa [#allocation18], 0 }
  0x13   :  { %32 = vsyncpa [#allocation18 + $0x1], 0 }
  0x14   :  { %33 = vsyncpa [#allocation10], 0 }
  0x15   :  { %35 = vsyncpa [#allocation10 + $0x1], 0 }
  0x16   :  { %36 = vsyncpa [#allocation22], 0 }
  0x17   :  { %38 = vsyncpa [#allocation22 + $0x1], 0  ;;  %s3631_s20 = smov 0   ;;  %s3633_s21 = smov 0  }
  0x18   :  { %s3635_s0 = smov 0   ;;  %s3637_s22 = smov 0  }
  0x19 LB: > { %4552 = sst [smem:[#allocation30_spill]] %s3535_s20  ;;  %s3652_s23 = sadd.s32 4294967295, %s3547_s22   ;;  %s3547_s22 = sphi %s3637_s22, %s4601_s22   ;;  %s3543_s0 = sphi %s3635_s0, %s4603_s0   ;;  %s3539_s21 = sphi %s3633_s21, %s4605_s21   ;;  %s3535_s20 = sphi %s3631_s20, %s4604_s20  }
  0x1a   : > { %4553 = sst [smem:[#allocation31_spill]] %s3543_s0  ;;  %s2722_s24 = sadd.s32 4294967294, %s3547_s22  }
  0x1b   : > { %s3656_s25 = sadd.s32 1, %s3547_s22   ;;  %s51_s26 = sadd.s32 1, %s3543_s0 }
  0x1c   : > { %4554 = sst [smem:[#allocation32_spill]] %s3656_s25  ;;  %s48_s27 = ssub.s32 %s3547_s22, %s3656_s25 }
  0x1d   : > { %p58_p0 = scmp.ne.s32.totalorder %s3543_s0, %s3539_s21  ;;  %p49_p1 = scmp.eq.s32.totalorder %s48_s27, 0 }
  0x1e   : > { %p59_p2 = scmp.eq.s32.totalorder %s3547_s22, 0  ;;  %p64_p3 = scmp.ne.s32.totalorder %s3539_s21, %s3535_s20 }
  0x1f   : > { %p65_p4 = scmp.eq.s32.totalorder %s3652_s23, 0  ;;  %p296_p7 = scmp.eq.s32.totalorder %s3652_s23, 1 }
  0x20   : > { %s3668_s28 = scalar_select %p49_p1, %s3543_s0, %s51_s26  }
  0x21   : > { %p60_p5 = por %p59_p2, %p58_p0  ;;  %p3670_p6 = por %p65_p4, %p64_p3 }
  0x22   : > { %4555 = sst [smem:[#allocation33_spill]] %s3668_s28  ;;  %p302_p8 = scmp.eq.s32.totalorder %s2722_s24, 1 }
  0x23   : > { %s4556_s29 = scalar_select %p3670_p6, 1, 0 }
  0x24   : > { %p3095_p10 = scmp.lt.s32.totalorder %s3547_s22, 2  ;;  %p3677_p11 = por %p296_p7, %p58_p0 }
  0x25   : > { %p3681_p12 = por %p302_p8, %p64_p3  ;;  %s3686_s13 = sand.u32 1, %s3543_s0  }
  0x26   : > { %s4557_s30 = scalar_select %p3677_p11, 1, 0 }
  0x27   : > { %s4559_s12 = scalar_select %p3681_p12, 1, 0 }
  0x28   : > { %4558 = sst [smem:[#allocation34_spill]] %s4557_s30  ;;  %p3688_p13 = pnand %p3095_p10, %p60_p5 }
  0x29   : > { %4560 = sst [smem:[#allocation35_spill]] %s4559_s12  ;;  %s3693_s15 = sand.u32 1, %s3547_s22  }
  0x2a   : > { %s4531_s16 = sshll.u32 %s3686_s13, 4  ;;  %s4530_s17 = sshll.u32 %s3547_s22, 8 }
  0x2b   : > { %s4562_s2 = sld [smem:[#allocation36_spill]]  ;;  %s373_s26 = scalar_lea.vmem [#allocation11], %s4531_s16 }
  0x2c   : > { %s380_s27 = sshll.u32 %s373_s26, 4  ;;  %p3713_p1 = pneg %p3688_p13  ;;  %s3706_s27 = int_to_ptr.vmem [resolvable:$true] %s380_s27 }
  0x31   : > { %s3702_s24 = scalar_lea.hbm %s4562_s2, %s4530_s17  ;;  %s3248_s17 = scalar_lea.hbm %s4562_s2, 512 }
  0x32   : > { %s3243_s0 = scalar_lea.hbm %s3702_s24, 256  ;;  %p3249_p4 = scmp.lt.s32.totalorder %s3702_s24, %s4562_s2 }
  0x33   : > { %p3244_p0 = scmp.ne.s32.totalorder %s3702_s24, %s3243_s0  ;;  %p3250_p5 = scmp.lt.s32.totalorder %s3248_s17, %s3243_s0 }
  0x35   : > { %p3246_p2 = pnand %p3713_p1, %p3244_p0  ;;  %p3251_p7 = por %p3250_p5, %p3249_p4 }
  0x37   : > { %p3247_p3 = pneg %p3246_p2 }
  0x39   : > { %p3252_p8 = pnand %p3251_p7, %p3247_p3 }
  0x3b   : > { %3255 = shalt.err (!%p3252_p8)
}
  0x3c   : > { %s3256_s28 = scalar_lea.vmem %s3706_s27, 256  ;;  %s3550_s12 = smov [#allocation11]  }
  0x3d   : > { %p3257_p10 = scmp.ne.s32.totalorder %s3706_s27, %s3256_s28  ;;  %s3261_s18 = sshll.u32 %s3550_s12, 4  ;;  %s3262_s18 = int_to_ptr.vmem [resolvable:$false] %s3261_s18 }
  0x3e   : > { %s3263_s19 = scalar_lea.vmem %s3262_s18, 512  ;;  %p3264_p9 = scmp.lt.s32.totalorder %s3706_s27, %s3262_s18 }
  0x3f   : > { %p3259_p0 = pnand %p3257_p10, %p3713_p1  ;;  %p3265_p12 = scmp.lt.s32.totalorder %s3263_s19, %s3256_s28 }
  0x41   : > { %p3260_p2 = pneg %p3259_p0  ;;  %p3266_p11 = por %p3265_p12, %p3264_p9 }
  0x43   : > { %p3267_p6 = pnand %p3266_p11, %p3260_p2 }
  0x45   : > { %3270 = shalt.err (!%p3267_p6)
}
  0x46   : > { %s4538_s0 = smov 128   ;;  %s4540_s12 = smov 8  }
  0x47   : > { %s4564_s28 = scalar_lea.sflag [#allocation12], %s3693_s15  ;;  %s4565_s16 = sshll.u32 %s3547_s22, 8 }
  0x48   : > { %3072 = dma.hbm_to_vmem [thread:$0]  (!%p3688_p13), %s3702_s24, 256, %s3706_s27, %s4564_s28, %s4538_s0, %s4538_s0, %s4540_s12  }
  0x49   : > { %s3745_s18 = scalar_lea.hbm %s4518_s3, %s4565_s16  ;;  %s4566_s19 = sshll.u32 %s3686_s13, 4 }
  0x4a   : > { %s394_s2 = scalar_lea.vmem [#allocation13], %s4566_s19  ;;  %p2744_p6 = scmp.ge.s32.totalorder %s3547_s22, 1 }
  0x4b   : > { %s401_s20 = sshll.u32 %s394_s2, 4  ;;  %p505_p9 = scmp.lt.s32.totalorder %s3547_s22, 3  ;;  %s3749_s20 = int_to_ptr.vmem [resolvable:$true] %s401_s20 }
  0x4c   : > { %s3754_s10 = sshll.u32 %s3686_s13, 5  ;;  %s3757_s11 = sshll.u32 %s3547_s22, 9 }
  0x4d   : > { %p3759_p11 = pnand %p2744_p6, %p505_p9  ;;  %s4568_s4 = sld [smem:[#allocation37_spill]] }
  0x4e   : > { %s415_s2 = scalar_lea.vmem [#allocation14], %s3754_s10 }
  0x4f   : > { %s4567_s24 = scalar_select %p3759_p11, 1, 0 }
  0x50   : > { %s422_s17 = sshll.u32 %s415_s2, 4  ;;  %s3770_s17 = int_to_ptr.vmem [resolvable:$true] %s422_s17 }
  0x53   : > { %s3767_s16 = scalar_lea.hbm %s4568_s4, %s3757_s11  ;;  %s3276_s30 = scalar_lea.hbm %s4568_s4, 1024 }
  0x54   : > { %s3271_s19 = scalar_lea.hbm %s3767_s16, 512  ;;  %p3277_p5 = scmp.lt.s32.totalorder %s3767_s16, %s4568_s4 }
  0x55   : > { %p3272_p12 = scmp.ne.s32.totalorder %s3767_s16, %s3271_s19  ;;  %p3278_p7 = scmp.lt.s32.totalorder %s3276_s30, %s3271_s19 }
  0x57   : > { %p3274_p3 = pnand %p3272_p12, %p3713_p1  ;;  %p3279_p8 = por %p3278_p7, %p3277_p5 }
  0x59   : > { %p3275_p4 = pneg %p3274_p3 }
  0x5b   : > { %p3280_p10 = pnand %p3279_p8, %p3275_p4 }
  0x5d   : > { %3283 = shalt.err (!%p3280_p10)
}
  0x5e   : > { %s3284_s2 = scalar_lea.vmem %s3770_s17, 512  ;;  %s3553_s26 = smov [#allocation14]  }
  0x5f   : > { %p3285_p0 = scmp.ne.s32.totalorder %s3770_s17, %s3284_s2  ;;  %s3289_s0 = sshll.u32 %s3553_s26, 4  ;;  %s3290_s0 = int_to_ptr.vmem [resolvable:$false] %s3289_s0 }
  0x60   : > { %s3291_s12 = scalar_lea.vmem %s3290_s0, 1024  ;;  %p3292_p9 = scmp.lt.s32.totalorder %s3770_s17, %s3290_s0 }
  0x61   : > { %p3287_p2 = pnand %p3285_p0, %p3713_p1  ;;  %p3293_p12 = scmp.lt.s32.totalorder %s3291_s12, %s3284_s2 }
  0x63   : > { %p3288_p6 = pneg %p3287_p2  ;;  %p3294_p3 = por %p3293_p12, %p3292_p9 }
  0x65   : > { %p3295_p11 = pnand %p3294_p3, %p3288_p6 }
  0x67   : > { %3298 = shalt.err (!%p3295_p11)
}
  0x68   : > { %s4569_s30 = smov 8   ;;  %s4570_s19 = smov 128  }
  0x69   : > { %s4571_s27 = scalar_lea.sflag [#allocation15], %s3693_s15  ;;  %s4572_s7 = sld [smem:[#allocation39_spill]] }
  0x6a   : > { %3078 = dma.hbm_to_vmem [thread:$0]  (!%p3688_p13), %s3767_s16, 512, %s3770_s17, %s4571_s27, %s4570_s19, %s4570_s19, %s4569_s30  }
  0x6b   : > { %s463_s0 = scalar_lea.vmem [#allocation17], %s3754_s10  ;;  %s4544_s9 = scalar_lea.sflag [#allocation18], %s3693_s15 }
  0x6c   : > { %s470_s12 = sshll.u32 %s463_s0, 4  ;;  %s3805_s12 = int_to_ptr.vmem [resolvable:$true] %s470_s12 }
  0x6f   : > { %s3802_s2 = scalar_lea.hbm %s4572_s7, %s3757_s11  ;;  %s3304_s27 = scalar_lea.hbm %s4572_s7, 1024 }
  0x70   : > { %s3299_s6 = scalar_lea.hbm %s3802_s2, 512  ;;  %p3305_p7 = scmp.lt.s32.totalorder %s3802_s2, %s4572_s7 }
  0x71   : > { %p3300_p11 = scmp.ne.s32.totalorder %s3802_s2, %s3299_s6  ;;  %p3306_p8 = scmp.lt.s32.totalorder %s3304_s27, %s3299_s6 }
  0x73   : > { %p3302_p4 = pnand %p3300_p11, %p3713_p1  ;;  %p3307_p10 = por %p3306_p8, %p3305_p7 }
  0x75   : > { %p3303_p5 = pneg %p3302_p4 }
  0x77   : > { %p3308_p0 = pnand %p3307_p10, %p3303_p5 }
  0x79   : > { %3311 = shalt.err (!%p3308_p0)
}
  0x7a   : > { %s3312_s0 = scalar_lea.vmem %s3805_s12, 512  ;;  %s3554_s4 = smov [#allocation17]  }
  0x7b   : > { %p3313_p2 = scmp.ne.s32.totalorder %s3805_s12, %s3312_s0  ;;  %s3317_s16 = sshll.u32 %s3554_s4, 4  ;;  %s3318_s16 = int_to_ptr.vmem [resolvable:$false] %s3317_s16 }
  0x7c   : > { %s3319_s17 = scalar_lea.vmem %s3318_s16, 1024  ;;  %p3320_p12 = scmp.lt.s32.totalorder %s3805_s12, %s3318_s16 }
  0x7d   : > { %p3315_p6 = pnand %p3313_p2, %p3713_p1  ;;  %p3321_p3 = scmp.lt.s32.totalorder %s3319_s17, %s3312_s0 }
  0x7f   : > { %p3316_p9 = pneg %p3315_p6  ;;  %p3322_p11 = por %p3321_p3, %p3320_p12 }
  0x81   : > { %p3323_p4 = pnand %p3322_p11, %p3316_p9 }
  0x83   : > { %3326 = shalt.err (!%p3323_p4)
}
  0x84   : > { %3084 = dma.hbm_to_vmem [thread:$0]  (!%p3688_p13), %s3802_s2, 512, %s3805_s12, %s4544_s9, %s4570_s19, %s4570_s19, %s4569_s30  }
  0x85   : > { %s3046_s4 = smul.u32 768, %s3547_s22  ;;  %s349_s17 = scalar_lea.sflag [#allocation9], %s3686_s13 }
  0x86   : > { %s4573_s6 = smul.u32 48, %s3686_s13 }
  0x87   : > { %s3840_s16 = scalar_lea.hbm %s4516_s1, %s3046_s4 }
  0x88   : > { %s352_s27 = scalar_lea.vmem [#allocation8], %s4573_s6  ;;  %s3327_s7 = scalar_lea.hbm %s3840_s16, 768 }
  0x89   : > { %s359_s26 = sshll.u32 %s352_s27, 4  ;;  %p3328_p5 = scmp.ne.s32.totalorder %s3840_s16, %s3327_s7  ;;  %s3842_s26 = int_to_ptr.vmem [resolvable:$true] %s359_s26 }
  0x8a   : > { %s3332_s6 = scalar_lea.hbm %s4516_s1, 1536  ;;  %p3333_p10 = scmp.lt.s32.totalorder %s3840_s16, %s4516_s1 }
  0x8b   : > { %p3330_p7 = pnand %p3328_p5, %p3713_p1  ;;  %p3334_p0 = scmp.lt.s32.totalorder %s3332_s6, %s3327_s7 }
  0x8d   : > { %p3331_p8 = pneg %p3330_p7  ;;  %p3335_p2 = por %p3334_p0, %p3333_p10 }
  0x8f   : > { %p3336_p6 = pnand %p3335_p2, %p3331_p8 }
  0x91   : > { %3339 = shalt.err (!%p3336_p6)
}
  0x92   : > { %s3340_s13 = scalar_lea.vmem %s3842_s26, 768  ;;  %s3555_s4 = smov [#allocation8]  }
  0x93   : > { %p3341_p9 = scmp.ne.s32.totalorder %s3842_s26, %s3340_s13  ;;  %s3345_s28 = sshll.u32 %s3555_s4, 4  ;;  %s3346_s28 = int_to_ptr.vmem [resolvable:$false] %s3345_s28 }
  0x94   : > { %s3347_s0 = scalar_lea.vmem %s3346_s28, 1536  ;;  %p3348_p11 = scmp.lt.s32.totalorder %s3842_s26, %s3346_s28 }
  0x95   : > { %p3343_p12 = pnand %p3341_p9, %p3713_p1  ;;  %p3349_p4 = scmp.lt.s32.totalorder %s3347_s0, %s3340_s13 }
  0x97   : > { %p3344_p3 = pneg %p3343_p12  ;;  %p3350_p5 = por %p3349_p4, %p3348_p11 }
  0x99   : > { %p3351_p7 = pnand %p3350_p5, %p3344_p3 }
  0x9b   : > { %3354 = shalt.err (!%p3351_p7)
}
  0x9c   : > { %3069 = dma.hbm_to_vmem [thread:$0]  (!%p3688_p13), %s3840_s16, 768, %s3842_s26, %s349_s17, %s4570_s19, %s4570_s19, %s4569_s30  }
  0x9d   : > { %s3355_s7 = scalar_lea.hbm %s3745_s18, 256  ;;  %s3360_s12 = scalar_lea.hbm %s4518_s3, 512 }
  0x9e   : > { %p3356_p8 = scmp.ne.s32.totalorder %s3745_s18, %s3355_s7  ;;  %p3361_p2 = scmp.lt.s32.totalorder %s3745_s18, %s4518_s3 }
  0x9f   : > { %p3362_p6 = scmp.lt.s32.totalorder %s3360_s12, %s3355_s7 }
  0xa0   : > { %p3358_p10 = pnand %p3356_p8, %p3713_p1 }
  0xa1   : > { %p3363_p9 = por %p3362_p6, %p3361_p2 }
  0xa2   : > { %p3359_p0 = pneg %p3358_p10 }
  0xa4   : > { %p3364_p12 = pnand %p3363_p9, %p3359_p0 }
  0xa6   : > { %3367 = shalt.err (!%p3364_p12)
}
  0xa7   : > { %s3368_s26 = scalar_lea.vmem %s3749_s20, 256  ;;  %s3556_s16 = smov [#allocation13]  }
  0xa8   : > { %p3369_p3 = scmp.ne.s32.totalorder %s3749_s20, %s3368_s26  ;;  %s3373_s17 = sshll.u32 %s3556_s16, 4  ;;  %s3374_s17 = int_to_ptr.vmem [resolvable:$false] %s3373_s17 }
  0xa9   : > { %s3375_s13 = scalar_lea.vmem %s3374_s17, 512  ;;  %p3376_p5 = scmp.lt.s32.totalorder %s3749_s20, %s3374_s17 }
  0xaa   : > { %p3371_p11 = pnand %p3369_p3, %p3713_p1  ;;  %p3377_p7 = scmp.lt.s32.totalorder %s3375_s13, %s3368_s26 }
  0xac   : > { %p3372_p4 = pneg %p3371_p11  ;;  %p3378_p8 = por %p3377_p7, %p3376_p5 }
  0xae   : > { %p3379_p10 = pnand %p3378_p8, %p3372_p4 }
  0xb0   : > { %3382 = shalt.err (!%p3379_p10)
}
  0xb1   : > { %s4574_s4 = scalar_lea.sflag [#allocation12], %s3693_s15  ;;  %s3897_s7 = scalar_lea.hbm %s4520_s5, %s3757_s11 }
  0xb2   : > { %3075 = dma.hbm_to_vmem [thread:$0]  (!%p3688_p13), %s3745_s18, 256, %s3749_s20, %s4574_s4, %s4570_s19, %s4570_s19, %s4569_s30  }
  0xb3   : > { %s436_s9 = scalar_lea.vmem [#allocation16], %s3754_s10  ;;  %s3383_s12 = scalar_lea.hbm %s3897_s7, 512 }
  0xb4   : > { %s443_s2 = sshll.u32 %s436_s9, 4  ;;  %p3384_p0 = scmp.ne.s32.totalorder %s3897_s7, %s3383_s12  ;;  %s444_s2 = int_to_ptr.vmem [resolvable:$true] %s443_s2 }
  0xb5   : > { %s3388_s20 = scalar_lea.hbm %s4520_s5, 1024  ;;  %p3389_p9 = scmp.lt.s32.totalorder %s3897_s7, %s4520_s5 }
  0xb6   : > { %p3386_p2 = pnand %p3384_p0, %p3713_p1  ;;  %p3390_p12 = scmp.lt.s32.totalorder %s3388_s20, %s3383_s12 }
  0xb8   : > { %p3387_p6 = pneg %p3386_p2  ;;  %p3391_p3 = por %p3390_p12, %p3389_p9 }
  0xba   : > { %p3392_p11 = pnand %p3391_p3, %p3387_p6 }
  0xbc   : > { %3395 = shalt.err (!%p3392_p11)
}
  0xbd   : > { %s3396_s16 = scalar_lea.vmem %s444_s2, 512  ;;  %s3557_s17 = smov [#allocation16]  }
  0xbe   : > { %p3397_p4 = scmp.ne.s32.totalorder %s444_s2, %s3396_s16  ;;  %s3401_s13 = sshll.u32 %s3557_s17, 4  ;;  %s3402_s13 = int_to_ptr.vmem [resolvable:$false] %s3401_s13 }
  0xbf   : > { %s3403_s4 = scalar_lea.vmem %s3402_s13, 1024  ;;  %p3404_p8 = scmp.lt.s32.totalorder %s444_s2, %s3402_s13 }
  0xc0   : > { %p3399_p5 = pnand %p3397_p4, %p3713_p1  ;;  %p3405_p10 = scmp.lt.s32.totalorder %s3403_s4, %s3396_s16 }
  0xc2   : > { %p3400_p7 = pneg %p3399_p5  ;;  %p3406_p0 = por %p3405_p10, %p3404_p8 }
  0xc4   : > { %p3407_p2 = pnand %p3406_p0, %p3400_p7 }
  0xc6   : > { %3410 = shalt.err (!%p3407_p2)
}
  0xc7   : > { %s4575_s28 = scalar_lea.sflag [#allocation15], %s3693_s15  ;;  %s3925_s12 = scalar_lea.hbm %s4523_s8, %s3757_s11 }
  0xc8   : > { %3081 = dma.hbm_to_vmem [thread:$0]  (!%p3688_p13), %s3897_s7, 512, %s444_s2, %s4575_s28, %s4570_s19, %s4570_s19, %s4569_s30  }
  0xc9   : > { %s484_s6 = scalar_lea.vmem [#allocation19], %s3754_s10  ;;  %s3411_s20 = scalar_lea.hbm %s3925_s12, 512 }
  0xca   : > { %s491_s27 = sshll.u32 %s484_s6, 4  ;;  %p3412_p6 = scmp.ne.s32.totalorder %s3925_s12, %s3411_s20  ;;  %s492_s27 = int_to_ptr.vmem [resolvable:$true] %s491_s27 }
  0xcb   : > { %s3416_s7 = scalar_lea.hbm %s4523_s8, 1024  ;;  %p3417_p3 = scmp.lt.s32.totalorder %s3925_s12, %s4523_s8 }
  0xcc   : > { %p3414_p9 = pnand %p3412_p6, %p3713_p1  ;;  %p3418_p11 = scmp.lt.s32.totalorder %s3416_s7, %s3411_s20 }
  0xce   : > { %p3415_p12 = pneg %p3414_p9  ;;  %p3419_p4 = por %p3418_p11, %p3417_p3 }
  0xd0   : > { %p3420_p5 = pnand %p3419_p4, %p3415_p12 }
  0xd2   : > { %3423 = shalt.err (!%p3420_p5)
}
  0xd3   : > { %s3424_s10 = scalar_lea.vmem %s492_s27, 512  ;;  %s3558_s11 = smov [#allocation19]  }
  0xd4   : > { %p3425_p7 = scmp.ne.s32.totalorder %s492_s27, %s3424_s10  ;;  %s3429_s17 = sshll.u32 %s3558_s11, 4  ;;  %s3430_s17 = int_to_ptr.vmem [resolvable:$false] %s3429_s17 }
  0xd5   : > { %s3431_s13 = scalar_lea.vmem %s3430_s17, 1024  ;;  %p3432_p0 = scmp.lt.s32.totalorder %s492_s27, %s3430_s17 }
  0xd6   : > { %p3427_p8 = pnand %p3425_p7, %p3713_p1  ;;  %p3433_p2 = scmp.lt.s32.totalorder %s3431_s13, %s3424_s10 }
  0xd8   : > { %p3428_p10 = pneg %p3427_p8  ;;  %p3434_p6 = por %p3433_p2, %p3432_p0 }
  0xda   : > { %p3435_p9 = pnand %p3434_p6, %p3428_p10 }
  0xdc   : > { %3438 = shalt.err (!%p3435_p9)
}
  0xdd   : > { %s4576_s4 = scalar_lea.sflag [#allocation18], %s3693_s15  ;;  %p4577_p1 = scmp.ne.s32.totalorder %s4567_s24, 0 }
  0xde   : > { %3087 = dma.hbm_to_vmem [thread:$0]  (!%p3688_p13), %s3925_s12, 512, %s492_s27, %s4576_s4, %s4570_s19, %s4570_s19, %s4569_s30  }
  0xdf   : > { %509 = sbr.rel (%p4577_p1) target bundleno = 8649 (0x21c9), region = 56  ;;  %s3952_s25 = sand.u32 (!%p4577_p1), 1, %s3539_s21  }
  0xe0   : > { %s3047_s28 = smul.u32 (!%p4577_p1), 48, %s3952_s25  ;;  %s512_s0 = scalar_lea.sflag (!%p4577_p1), [#allocation9], %s3952_s25 }
  0xe1   : > { %p4578_p12 = scmp.ne.s32.totalorder (!%p4577_p1), %s4556_s29, 0 }
  0xe2   : > { %s3956_s9 = scalar_lea.vmem (!%p4577_p1), [#allocation8], %s3047_s28 }
  0xe4   : > { %3510 = dma.done.wait (%p4578_p12), %s512_s0, 768  }
  0xe5   : > { %3512 = vsyncadd (%p4578_p12), %s512_s0, 4294966528  ;;  %s520_s14 = sand.u32 1, %s3652_s23   ;;  %s3964_s15 = sshll.u32 %s3952_s25, 4 }
  0xe6   : > { %s521_s24 = scalar_lea.sflag [#allocation12], %s520_s14  ;;  %s524_s30 = scalar_lea.vmem [#allocation11], %s3964_s15 }
  0xe7   : > { %3514 = dma.done.wait (%p4578_p12), %s521_s24, 512  }
  0xe8   : > { %3516 = vsyncadd (%p4578_p12), %s521_s24, 4294966784  ;;  %s3972_s19 = sshll.u32 %s3952_s25, 5  ;;  %s533_s12 = scalar_lea.vmem [#allocation13], %s3964_s15 }
  0xe9   : > { %s539_s6 = scalar_lea.sflag [#allocation15], %s520_s14  ;;  %s542_s27 = scalar_lea.vmem [#allocation14], %s3972_s19 }
  0xea   : > { %3518 = dma.done.wait (%p4578_p12), %s539_s6, 1024  }
  0xeb   : > { %3520 = vsyncadd (%p4578_p12), %s539_s6, 4294966272  ;;  %s551_s20 = scalar_lea.vmem [#allocation16], %s3972_s19  ;;  %s557_s18 = scalar_lea.sflag [#allocation18], %s520_s14 }
  0xec   : > { %s3982_s26 = scalar_lea.vmem [#allocation17], %s3972_s19 }
  0xed   : > { %3522 = dma.done.wait (%p4578_p12), %s557_s18, 1024  }
  0xee   : > { %3524 = vsyncadd (%p4578_p12), %s557_s18, 4294966272  ;;  %v3559_v0 = vmov 0.0   ;;  %vm3560_vm0 = vmmov 0   ;;  %v657_v1 = vld [vmem:[%s542_s27 + $0x18] sm:$0xff]  ;;  %v656_v2 = vld [vmem:[%s542_s27 + $0x10] sm:$0xff]  ;;  %vm675_vm1 = vcmask 261120  }
  0xef   : > { %2896 = vmatprep.subr.mxu1 %v3559_v0  ;;  %2904 = vmatprep.mubr.msk.f32.mxu1 %vm3560_vm0, %v3559_v0  ;;  %v3991_v3 = vld [vmem:[%s551_s20 + $0x18] sm:$0xff]  ;;  %v3994_v4 = vld [vmem:[%s551_s20 + $0x10] sm:$0xff]  ;;  %v655_v5 = vld [vmem:[%s542_s27 + $0x8] sm:$0xff]  ;;  %p647_p13 = scmp.lt.s32.totalorder %s3652_s23, 1  ;;  %s4579_s16 = sld [smem:[#allocation38_spill]] }
  0xf0   : > { %2879 = vmatprep.subr.mxu0 %v657_v1  ;;  %2897 = vmatpush3.msra.mxu1 %v3991_v3  ;;  %v663_v6 = vld [vmem:[%s3956_s9] sm:$0xff]  ;;  %v3999_v7 = vld [vmem:[%s551_s20 + $0x8] sm:$0xff]  ;;  %s3561_s11 = smov 64   ;;  %s3562_s17 = smov 32  }
  0xf1   : > { %2880 = vmatpush3.msra.mxu0 %v657_v1  ;;  %2898 = vmatprep.subr.mxu1 %v3559_v0  ;;  %v795_v8 = vld [vmem:[%s524_s30] sm:$0xff]  ;;  %v664_v11 = vld [vmem:[%s3956_s9 + $0x8] sm:$0xff]  ;;  %s4039_s29 = scalar_select %p647_p13, %s3652_s23, 1 }
  0xf2   : > { %2881 = vmatprep.subr.mxu0 %v656_v2  ;;  %2899 = vmatpush3.msra.mxu1 %v3994_v4  ;;  %v654_v9 = vld [vmem:[%s542_s27] sm:$0xff]  ;;  %796 = vst.msk [vmem:[#allocation4] sm:$0xff] %vm675_vm1, %v795_v8  ;;  %s3563_s13 = smov 96   ;;  %s4055_s4 = sld [smem:[#allocation7 + %s3652_s23]] }
  0xf3   : > { %2882 = vmatpush3.msra.mxu0 %v656_v2  ;;  %2900 = vmatprep.subr.mxu1 %v3559_v0  ;;  %v4006_v10 = vld [vmem:[%s551_s20] sm:$0xff]  ;;  %s4234_s27 = scalar_lea.vmem [#allocation21], %s3964_s15  ;;  %s569_s20 = scalar_lea.vmem [#allocation19], %s3972_s19 }
  0xf4   : > { %2883 = vmatprep.subr.mxu0 %v655_v5  ;;  %2887 = vmatprep.mubr.msk.f32.mxu0 %vm675_vm1, %v663_v6  ;;  %v797_v13 = vld [vmem:[%s533_s12] sm:$0xff]  ;;  %v666_v6 = vld [vmem:[%s3956_s9 + $0x18] sm:$0xff]  ;;  %s4274_s19 = scalar_lea.vmem [#allocation20], %s3964_s15 }
  0xf5   : > { %2884 = vmatpush3.msra.mxu0 %v655_v5  ;;  %2901 = vmatpush3.msra.mxu1 %v3999_v7  ;;  %798 = vst.msk [vmem:[#allocation5] sm:$0xff] %vm675_vm1, %v797_v13  ;;  %s649_s10 = scalar_lea.vmem %s4579_s16, %s4039_s29  ;;  %v665_v5 = vld [vmem:[%s3956_s9 + $0x10] sm:$0xff]  ;;  %s4594_s16 = sld [smem:[#allocation42_spill]] }
  0xf6   : > { %2885 = vmatprep.subr.mxu0 %v654_v9  ;;  %2902 = vmatprep.subr.mxu1 %v3559_v0  ;;  %v4047_v15 = vld [vmem:[%s649_s10] ss:$0 sm:$0xff] }
  0xf7   : > { %2886 = vmatpush3.msra.mxu0 %v654_v9  ;;  %2903 = vmatpush3.msra.mxu1 %v4006_v10 }
  0xf8   : > { %2888 = vmatmul.mubr.msk.f32.vlgmr.msra.gmra.mxu0 %vm675_vm1, %v664_v11  ;;  %2907 = vmatprep.subr.mxu1 %v3559_v0  ;;  %p904_p3 = scmp.gt.s32.totalorder %s4055_s4, 0  ;;  %p1030_p11 = scmp.gt.s32.totalorder %s4055_s4, 1  ;;  %v667_v11 = vld [vmem:[%s3956_s9 + $0x20] sm:$0xff] }
  0xf9   : > { %2918 = vmatprep.subr.mxu0 %v3559_v0  ;;  %v799_v12 = vld [vmem:[#allocation4] sm:$0xff]  ;;  %2890 = vmatprep.mubr.msk.f32.mxu0 %vm675_vm1, %v665_v5  ;;  %p1157_p4 = scmp.gt.s32.totalorder %s4055_s4, 2  ;;  %p1284_p5 = scmp.gt.s32.totalorder %s4055_s4, 3 }
  0xfa   : > { %2919 = vmatpush3.msra.mxu0 %v3991_v3  ;;  %2905 = vmatmul.mubr.msk.f32.vlgmr.msra.gmra.mxu1 %vm675_vm1, %v799_v12  ;;  %s905_s28 = scalar_select %p904_p3, 1, 0 }
  0xfb   : > { %2920 = vmatprep.subr.mxu0 %v3559_v0  ;;  %2908 = vmatpush3.msra.mxu1 %v3991_v3  ;;  %s1031_s0 = scalar_select %p1030_p11, 1, 0 }
  0xfc   : > { %2915 = vmatprep.mubr.msk.f32.mxu1 %vm3560_vm0, %v3559_v0  ;;  %2909 = vmatprep.subr.mxu1 %v3559_v0  ;;  %v800_v22 = vld [vmem:[#allocation5] sm:$0xff]  ;;  %v906_v31 = vstv %s905_s28  ;;  %s1285_s14 = scalar_select %p1284_p5, 1, 0 }
  0xfd   : > { %2921 = vmatpush3.msra.mxu0 %v3994_v4  ;;  %2910 = vmatpush3.msra.mxu1 %v3994_v4  ;;  %vm4058_vm2 = vcmp.eq.s32.totalorder %v906_v31, 1  ;;  %v1032_v58 = vstv %s1031_s0  ;;  %p1411_p7 = scmp.gt.s32.totalorder %s4055_s4, 4  ;;  %p1538_p8 = scmp.gt.s32.totalorder %s4055_s4, 5 }
  0xfe   : > { %2922 = vmatprep.subr.mxu0 %v3559_v0  ;;  %2911 = vmatprep.subr.mxu1 %v3559_v0  ;;  %vm4090_vm3 = vcmp.eq.s32.totalorder %v1032_v58, 1  ;;  %s3564_s28 = smov [#allocation21]  }
  0xff   : > { %2923 = vmatpush3.msra.mxu0 %v3999_v7  ;;  %2912 = vmatpush3.msra.mxu1 %v3999_v7  ;;  %s1412_s24 = scalar_select %p1411_p7, 1, 0 }
 0x100   : > { %2924 = vmatprep.subr.mxu0 %v3559_v0  ;;  %2913 = vmatprep.subr.mxu1 %v3559_v0  ;;  %s1539_s6 = scalar_select %p1538_p8, 1, 0 }
 0x101   : > { %2925 = vmatpush3.msra.mxu0 %v4006_v10  ;;  %2914 = vmatpush3.msra.mxu1 %v4006_v10  ;;  %s3443_s0 = sshll.u32 %s3564_s28, 4  ;;  %s3444_s0 = int_to_ptr.vmem [resolvable:$false] %s3443_s0 }
 0x102   : > { %2940 = vmatprep.subr.mxu0 %v3559_v0  ;;  %2929 = vmatprep.subr.mxu1 %v3559_v0 }
 0x103   : > { %2891 = vmatmul.mubr.msk.f32.gmra.mxu0 %vm675_vm1, %v666_v6 }
 0x104   : > { %2893 = vmatprep.mubr.msk.f32.mxu0 %vm675_vm1, %v667_v11 }
 0x1b8   : > { %v4045_v14 = vpop.f32.mrf.mxu0 }
 0x1b9   : > { %v766_v46 = vadd.f32 %v4045_v14, %v4047_v15 }
 0x1ba   : > { %v760_v16 = vpop.f32.mrf.mxu0  ;;  %v871_v18 = vpop.f32.mrf.mxu1 }
 0x1bb   : > { %v761_v17 = vadd.f32 %v4047_v15, %v760_v16 }
 0x1bc   : > { %v2906_v20 = vpop.f32.mrf.mxu1 }
 0x1bd   : > { %v875_v19 = vadd.f32 %v871_v18, %v761_v17 }
 0x1bf   : > { %3139 = vtanh.f32 %v875_v19  ;;  %v876_v23 = vsub.f32 0.0, %v875_v19 }
 0x1c1   : > { %v877_v24 = vmul.f32 1.442695, %v876_v23 }
 0x1c3   : > { %3141 = vpow2.f32 %v877_v24  ;;  %v2892_v20 = vpop.f32.mrf.mxu0 }
 0x1cc   : > { %v3140_v21 = vpop.eup %3139 }
 0x1cd   : > { %889 = vrot.lane.b32.xlu0 %v3140_v21, %s3561_s11  ;;  %v770_v21 = vpop.f32.mrf.mxu0 }
 0x1ce   : > { %v771_v24 = vadd.f32 %v4047_v15, %v770_v21  ;;  %v1565_v21 = vld [vmem:[%s3982_s26 + $0x10] sm:$0xff] }
 0x1d0   : > { %v3142_v25 = vpop.eup %3141 }
 0x1d1   : > { %884 = vrot.lane.b32.xlu0 %v800_v22, %s3562_s17  ;;  %v879_v26 = vadd.f32 1.0, %v3142_v25 }
 0x1d3   : > { %3143 = vrcp.f32 %v879_v26 }
 0x1d5   : > { %908 = vrot.lane.b32.xlu0 %v799_v12, %s3563_s13  ;;  %v668_v12 = vld [vmem:[%s3956_s9 + $0x28] sm:$0xff]  ;;  %s1158_s9 = scalar_select %p1157_p4, 1, 0 }
 0x1d6   : > { %2894 = vmatmul.mubr.msk.f32.gmra.mxu0 %vm675_vm1, %v668_v12 }
 0x1d7   : > { %2926 = vmatprep.mubr.msk.f32.mxu0 %vm3560_vm0, %v3559_v0 }
 0x1e0   : > { %v3144_v27 = vpop.eup %3143 }
 0x23f   : > { %v890_v28 = vpop.permute.xlu0 %889 }
 0x240   : > { %v892_v29 = vmul.f32 %v3144_v27, %v890_v28 }
 0x242   : > { %894 = vrot.lane.b32.xlu1 %v892_v29, %s3562_s17 }
 0x243   : > { %v885_v30 = vpop.permute.xlu0 %884 }
 0x244   : > { %v887_v32 = vmul.f32 %v3144_v27, %v885_v30 }
 0x247   : > { %v909_v38 = vpop.permute.xlu0 %908 }
 0x296   : > { %v4125_v22 = vpop.f32.mrf.mxu0 }
 0x298   : > { %v4127_v23 = vpop.f32.mrf.mxu0 }
 0x2b4   : > { %v895_v33 = vpop.permute.xlu1 %894 }
 0x2b5   : > { %v897_v35 = vadd.f32 %v895_v33, %v887_v32 }
 0x2b7   : > { %3145 = vtanh.f32 %v897_v35  ;;  %v912_v36 = vsel %vm4058_vm2, %v897_v35, %v885_v30 }
 0x2b8   : > { %919 = vrot.lane.b32.xlu0 %v912_v36, %s3563_s13 }
 0x2c4   : > { %v3146_v37 = vpop.eup %3145 }
 0x2c5   : > { %900 = vrot.lane.b32.xlu1 %v3146_v37, %s3561_s11  ;;  %v1159_v37 = vstv %s1158_s9  ;;  %s3445_s9 = scalar_lea.vmem %s3444_s0, 512 }
 0x2c6   : > { %vm4134_vm4 = vcmp.eq.s32.totalorder %v1159_v37, 1 }
 0x32a   : > { %v920_v39 = vpop.permute.xlu0 %919 }
 0x32b   : > { %922 = vst.msk [vmem:[#allocation5] sm:$0xff] %vm675_vm1, %v920_v39 }
 0x332   : > { %v925_v40 = vld [vmem:[#allocation5] sm:$0xff] }
 0x333   : > { %1010 = vrot.lane.b32.xlu0 %v925_v40, %s3562_s17 }
 0x337   : > { %v901_v41 = vpop.permute.xlu1 %900 }
 0x338   : > { %v903_v42 = vmul.f32 %v3144_v27, %v901_v41 }
 0x33a   : > { %v911_v43 = vsel %vm4058_vm2, %v903_v42, %v909_v38 }
 0x33b   : > { %914 = vrot.lane.b32.xlu1 %v911_v43, %s3562_s17 }
 0x3a5   : > { %v1011_v59 = vpop.permute.xlu0 %1010 }
 0x3ad   : > { %v915_v44 = vpop.permute.xlu1 %914 }
 0x3ae   : > { %917 = vst.msk [vmem:[#allocation4] sm:$0xff] %vm675_vm1, %v915_v44  ;;  %923 = vst.msk [vmem:[#allocation2] sm:$0xff] %vm675_vm1, %v915_v44 }
 0x3b5   : > { %v924_v45 = vld [vmem:[#allocation4] sm:$0xff] }
 0x3b6   : > { %2916 = vmatmul.mubr.msk.f32.vlgmr.msra.gmra.mxu1 %vm675_vm1, %v924_v45 }
 0x3b7   : > { %2930 = vmatpush3.msra.mxu1 %v3991_v3  ;;  %2937 = vmatprep.mubr.msk.f32.mxu1 %vm3560_vm0, %v3559_v0 }
 0x3b8   : > { %2931 = vmatprep.subr.mxu1 %v3559_v0 }
 0x3b9   : > { %2932 = vmatpush3.msra.mxu1 %v3994_v4 }
 0x3ba   : > { %2933 = vmatprep.subr.mxu1 %v3559_v0 }
 0x3bb   : > { %2934 = vmatpush3.msra.mxu1 %v3999_v7 }
 0x3bc   : > { %2935 = vmatprep.subr.mxu1 %v3559_v0 }
 0x3bd   : > { %2936 = vmatpush3.msra.mxu1 %v4006_v10 }
 0x3be   : > { %2951 = vmatprep.subr.mxu1 %v3559_v0 }
 0x476   : > { %v997_v47 = vpop.f32.mrf.mxu1 }
 0x477   : > { %v1001_v48 = vadd.f32 %v997_v47, %v766_v46 }
 0x478   : > { %v2917_v49 = vpop.f32.mrf.mxu1 }
 0x479   : > { %3147 = vtanh.f32 %v1001_v48  ;;  %v1002_v51 = vsub.f32 0.0, %v1001_v48 }
 0x47b   : > { %v1003_v52 = vmul.f32 1.442695, %v1002_v51 }
 0x47d   : > { %3149 = vpow2.f32 %v1003_v52 }
 0x486   : > { %v3148_v50 = vpop.eup %3147 }
 0x487   : > { %1015 = vrot.lane.b32.xlu1 %v3148_v50, %s3561_s11 }
 0x48a   : > { %v3150_v53 = vpop.eup %3149 }
 0x48b   : > { %v1005_v54 = vadd.f32 1.0, %v3150_v53  ;;  %v776_v53 = vadd.f32 %v2892_v20, %v4047_v15 }
 0x48d   : > { %3151 = vrcp.f32 %v1005_v54 }
 0x49a   : > { %v3152_v55 = vpop.eup %3151 }
 0x49b   : > { %v1013_v60 = vmul.f32 %v3152_v55, %v1011_v59 }
 0x4f9   : > { %v1016_v56 = vpop.permute.xlu1 %1015 }
 0x4fa   : > { %v1018_v57 = vmul.f32 %v3152_v55, %v1016_v56 }
 0x4fc   : > { %1020 = vrot.lane.b32.xlu1 %v1018_v57, %s3562_s17 }
 0x500   : > { %1034 = vrot.lane.b32.xlu1 %v924_v45, %s3563_s13 }
 0x56e   : > { %v1021_v61 = vpop.permute.xlu1 %1020 }
 0x56f   : > { %v1023_v63 = vadd.f32 %v1021_v61, %v1013_v60  ;;  %v1286_v61 = vstv %s1285_s14 }
 0x570   : > { %vm4165_vm5 = vcmp.eq.s32.totalorder %v1286_v61, 1 }
 0x571   : > { %3153 = vtanh.f32 %v1023_v63  ;;  %v1038_v1 = vsel %vm4090_vm3, %v1023_v63, %v1011_v59 }
 0x572   : > { %1045 = vrot.lane.b32.xlu1 %v1038_v1, %s3563_s13  ;;  %v1035_v8 = vpop.permute.xlu1 %1034 }
 0x57e   : > { %v3154_v2 = vpop.eup %3153 }
 0x57f   : > { %1026 = vrot.lane.b32.xlu0 %v3154_v2, %s3561_s11 }
 0x5e4   : > { %v1046_v9 = vpop.permute.xlu1 %1045 }
 0x5e5   : > { %1048 = vst.msk [vmem:[#allocation5] sm:$0xff] %vm675_vm1, %v1046_v9 }
 0x5ec   : > { %v1052_v13 = vld [vmem:[#allocation5] sm:$0xff] }
 0x5ed   : > { %1137 = vrot.lane.b32.xlu1 %v1052_v13, %s3562_s17  ;;  %v1566_v13 = vld [vmem:[%s3982_s26 + $0x18] sm:$0xff] }
 0x5f1   : > { %v1027_v14 = vpop.permute.xlu0 %1026 }
 0x5f2   : > { %v1029_v16 = vmul.f32 %v3152_v55, %v1027_v14 }
 0x5f4   : > { %v1037_v17 = vsel %vm4090_vm3, %v1029_v16, %v1035_v8 }
 0x5f5   : > { %1040 = vrot.lane.b32.xlu0 %v1037_v17, %s3562_s17 }
 0x65f   : > { %v1138_v38 = vpop.permute.xlu1 %1137 }
 0x667   : > { %v1041_v18 = vpop.permute.xlu0 %1040 }
 0x668   : > { %1043 = vst.msk [vmem:[#allocation4] sm:$0xff] %vm675_vm1, %v1041_v18  ;;  %1050 = vst.msk [vmem:[#allocation2 + $0x8] sm:$0xff] %vm675_vm1, %v1041_v18 }
 0x66f   : > { %v1051_v19 = vld [vmem:[#allocation4] sm:$0xff] }
 0x670   : > { %2927 = vmatmul.mubr.msk.f32.vlgmr.msra.gmra.mxu0 %vm675_vm1, %v1051_v19 }
 0x671   : > { %2941 = vmatpush3.msra.mxu0 %v3991_v3  ;;  %2948 = vmatprep.mubr.msk.f32.mxu0 %vm3560_vm0, %v3559_v0 }
 0x672   : > { %2942 = vmatprep.subr.mxu0 %v3559_v0 }
 0x673   : > { %2943 = vmatpush3.msra.mxu0 %v3994_v4 }
 0x674   : > { %2944 = vmatprep.subr.mxu0 %v3559_v0 }
 0x675   : > { %2945 = vmatpush3.msra.mxu0 %v3999_v7 }
 0x676   : > { %2946 = vmatprep.subr.mxu0 %v3559_v0 }
 0x677   : > { %2947 = vmatpush3.msra.mxu0 %v4006_v10 }
 0x678   : > { %2962 = vmatprep.subr.mxu0 %v1566_v13 }
 0x730   : > { %v1124_v25 = vpop.f32.mrf.mxu0 }
 0x731   : > { %v1128_v26 = vadd.f32 %v1124_v25, %v771_v24  ;;  %v1572_v24 = vld [vmem:[#allocation2] sm:$0xff]  ;;  %v1564_v25 = vld [vmem:[%s3982_s26 + $0x8] sm:$0xff] }
 0x732   : > { %v2928_v27 = vpop.f32.mrf.mxu0 }
 0x733   : > { %3155 = vtanh.f32 %v1128_v26  ;;  %v1129_v29 = vsub.f32 0.0, %v1128_v26  ;;  %v1563_v26 = vld [vmem:[%s3982_s26] sm:$0xff]  ;;  %v1573_v27 = vld [vmem:[#allocation2 + $0x8] sm:$0xff]  ;;  %s4593_s26 = sld [smem:[#allocation34_spill]] }
 0x735   : > { %v1130_v30 = vmul.f32 1.442695, %v1129_v29 }
 0x737   : > { %3157 = vpow2.f32 %v1130_v30  ;;  %v781_v30 = vadd.f32 %v4047_v15, %v4127_v23  ;;  %v1413_v23 = vstv %s1412_s24 }
 0x738   : > { %vm4196_vm6 = vcmp.eq.s32.totalorder %v1413_v23, 1 }
 0x739   : > { %p4595_p0 = scmp.ne.s32.totalorder %s4593_s26, 0 }
 0x740   : > { %v3156_v28 = vpop.eup %3155 }
 0x741   : > { %1142 = vrot.lane.b32.xlu0 %v3156_v28, %s3561_s11 }
 0x744   : > { %v3158_v31 = vpop.eup %3157 }
 0x745   : > { %v1132_v32 = vadd.f32 1.0, %v3158_v31 }
 0x747   : > { %3159 = vrcp.f32 %v1132_v32 }
 0x754   : > { %v3160_v33 = vpop.eup %3159 }
 0x755   : > { %v1140_v39 = vmul.f32 %v3160_v33, %v1138_v38 }
 0x7b3   : > { %v1143_v35 = vpop.permute.xlu0 %1142 }
 0x7b4   : > { %v1145_v36 = vmul.f32 %v3160_v33, %v1143_v35 }
 0x7b6   : > { %1147 = vrot.lane.b32.xlu0 %v1145_v36, %s3562_s17 }
 0x7ba   : > { %1161 = vrot.lane.b32.xlu0 %v1051_v19, %s3563_s13 }
 0x828   : > { %v1148_v40 = vpop.permute.xlu0 %1147 }
 0x829   : > { %v1150_v42 = vadd.f32 %v1148_v40, %v1140_v39 }
 0x82b   : > { %3161 = vtanh.f32 %v1150_v42  ;;  %v1165_v43 = vsel %vm4134_vm4, %v1150_v42, %v1138_v38 }
 0x82c   : > { %1172 = vrot.lane.b32.xlu0 %v1165_v43, %s3563_s13  ;;  %v1162_v45 = vpop.permute.xlu0 %1161 }
 0x838   : > { %v3162_v44 = vpop.eup %3161 }
 0x839   : > { %1153 = vrot.lane.b32.xlu1 %v3162_v44, %s3561_s11 }
 0x89e   : > { %v1173_v46 = vpop.permute.xlu0 %1172 }
 0x89f   : > { %1175 = vst.msk [vmem:[#allocation5] sm:$0xff] %vm675_vm1, %v1173_v46 }
 0x8a6   : > { %v1179_v47 = vld [vmem:[#allocation5] sm:$0xff] }
 0x8a7   : > { %1264 = vrot.lane.b32.xlu0 %v1179_v47, %s3562_s17 }
 0x8ab   : > { %v1154_v48 = vpop.permute.xlu1 %1153 }
 0x8ac   : > { %v1156_v49 = vmul.f32 %v3160_v33, %v1154_v48 }
 0x8ae   : > { %v1164_v50 = vsel %vm4134_vm4, %v1156_v49, %v1162_v45 }
 0x8af   : > { %1167 = vrot.lane.b32.xlu1 %v1164_v50, %s3562_s17 }
 0x919   : > { %v1265_v63 = vpop.permute.xlu0 %1264 }
 0x921   : > { %v1168_v51 = vpop.permute.xlu1 %1167 }
 0x922   : > { %1170 = vst.msk [vmem:[#allocation4] sm:$0xff] %vm675_vm1, %v1168_v51  ;;  %1177 = vst.msk [vmem:[#allocation2 + $0x10] sm:$0xff] %vm675_vm1, %v1168_v51 }
 0x929   : > { %v1178_v52 = vld [vmem:[#allocation4] sm:$0xff] }
 0x92a   : > { %2938 = vmatmul.mubr.msk.f32.vlgmr.msra.gmra.mxu1 %vm675_vm1, %v1178_v52  ;;  %v1574_v28 = vld [vmem:[#allocation2 + $0x10] sm:$0xff] }
 0x92b   : > { %2952 = vmatpush3.msra.mxu1 %v3991_v3  ;;  %2959 = vmatprep.mubr.msk.f32.mxu1 %vm3560_vm0, %v3559_v0 }
 0x92c   : > { %2953 = vmatprep.subr.mxu1 %v3559_v0 }
 0x92d   : > { %2954 = vmatpush3.msra.mxu1 %v3994_v4 }
 0x92e   : > { %2955 = vmatprep.subr.mxu1 %v3559_v0 }
 0x92f   : > { %2956 = vmatpush3.msra.mxu1 %v3999_v7 }
 0x930   : > { %2957 = vmatprep.subr.mxu1 %v3559_v0 }
 0x931   : > { %2958 = vmatpush3.msra.mxu1 %v4006_v10 }
 0x932   : > { %2979 = vmatprep.subr.mxu1 %v3559_v0 }
 0x9ea   : > { %v1251_v3 = vpop.f32.mrf.mxu1 }
 0x9eb   : > { %v1255_v54 = vadd.f32 %v1251_v3, %v776_v53 }
 0x9ec   : > { %v2939_v55 = vpop.f32.mrf.mxu1 }
 0x9ed   : > { %3163 = vtanh.f32 %v1255_v54  ;;  %v1256_v4 = vsub.f32 0.0, %v1255_v54 }
 0x9ef   : > { %v1257_v57 = vmul.f32 1.442695, %v1256_v4 }
 0x9f1   : > { %3165 = vpow2.f32 %v1257_v57 }
 0x9fa   : > { %v3164_v56 = vpop.eup %3163 }
 0x9fb   : > { %1269 = vrot.lane.b32.xlu1 %v3164_v56, %s3561_s11 }
 0x9fe   : > { %v3166_v7 = vpop.eup %3165 }
 0x9ff   : > { %v1259_v58 = vadd.f32 1.0, %v3166_v7  ;;  %v786_v7 = vadd.f32 %v4125_v22, %v4047_v15  ;;  %v1540_v15 = vstv %s1539_s6 }
 0xa00   : > { %vm4221_vm7 = vcmp.eq.s32.totalorder %v1540_v15, 1 }
 0xa01   : > { %3167 = vrcp.f32 %v1259_v58 }
 0xa0e   : > { %v3168_v59 = vpop.eup %3167 }
 0xa0f   : > { %v1267_v1 = vmul.f32 %v3168_v59, %v1265_v63 }
 0xa6d   : > { %v1270_v10 = vpop.permute.xlu1 %1269 }
 0xa6e   : > { %v1272_v60 = vmul.f32 %v3168_v59, %v1270_v10 }
 0xa70   : > { %1274 = vrot.lane.b32.xlu1 %v1272_v60, %s3562_s17 }
 0xa74   : > { %1288 = vrot.lane.b32.xlu1 %v1178_v52, %s3563_s13 }
 0xae2   : > { %v1275_v2 = vpop.permute.xlu1 %1274 }
 0xae3   : > { %v1277_v6 = vadd.f32 %v1275_v2, %v1267_v1 }
 0xae5   : > { %3169 = vtanh.f32 %v1277_v6  ;;  %v1292_v8 = vsel %vm4165_vm5, %v1277_v6, %v1265_v63 }
 0xae6   : > { %1299 = vrot.lane.b32.xlu1 %v1292_v8, %s3563_s13  ;;  %v1289_v11 = vpop.permute.xlu1 %1288 }
 0xaf2   : > { %v3170_v9 = vpop.eup %3169 }
 0xaf3   : > { %1280 = vrot.lane.b32.xlu0 %v3170_v9, %s3561_s11 }
 0xb58   : > { %v1300_v12 = vpop.permute.xlu1 %1299 }
 0xb59   : > { %1302 = vst.msk [vmem:[#allocation5] sm:$0xff] %vm675_vm1, %v1300_v12 }
 0xb60   : > { %v1306_v14 = vld [vmem:[#allocation5] sm:$0xff] }
 0xb61   : > { %1391 = vrot.lane.b32.xlu1 %v1306_v14, %s3562_s17 }
 0xb65   : > { %v1281_v16 = vpop.permute.xlu0 %1280 }
 0xb66   : > { %v1283_v17 = vmul.f32 %v3168_v59, %v1281_v16 }
 0xb68   : > { %v1291_v18 = vsel %vm4165_vm5, %v1283_v17, %v1289_v11 }
 0xb69   : > { %1294 = vrot.lane.b32.xlu0 %v1291_v18, %s3562_s17 }
 0xbd3   : > { %v1392_v44 = vpop.permute.xlu1 %1391 }
 0xbdb   : > { %v1295_v19 = vpop.permute.xlu0 %1294 }
 0xbdc   : > { %1297 = vst.msk [vmem:[#allocation4] sm:$0xff] %vm675_vm1, %v1295_v19  ;;  %1304 = vst.msk [vmem:[#allocation2 + $0x18] sm:$0xff] %vm675_vm1, %v1295_v19 }
 0xbe3   : > { %v1305_v20 = vld [vmem:[#allocation4] sm:$0xff]  ;;  %v1575_v29 = vld [vmem:[#allocation2 + $0x18] sm:$0xff] }
 0xbe4   : > { %2949 = vmatmul.mubr.msk.f32.vlgmr.msra.gmra.mxu0 %vm675_vm1, %v1305_v20 }
 0xbe5   : > { %2963 = vmatpush3.msra.mxu0 %v1566_v13  ;;  %2970 = vmatprep.mubr.msk.f32.mxu0 %vm675_vm1, %v1572_v24 }
 0xbe6   : > { %2964 = vmatprep.subr.mxu0 %v1565_v21 }
 0xbe7   : > { %2965 = vmatpush3.msra.mxu0 %v1565_v21 }
 0xbe8   : > { %2966 = vmatprep.subr.mxu0 %v1564_v25 }
 0xbe9   : > { %2967 = vmatpush3.msra.mxu0 %v1564_v25  ;;  %v4239_v25 = vld [vmem:[%s569_s20 + $0x18] sm:$0xff] }
 0xbea   : > { %2968 = vmatprep.subr.mxu0 %v1563_v26 }
 0xbeb   : > { %2969 = vmatpush3.msra.mxu0 %v1563_v26  ;;  %v4241_v26 = vld [vmem:[%s569_s20 + $0x10] sm:$0xff] }
 0xbec   : > { %2971 = vmatmul.mubr.msk.f32.vlgmr.msra.gmra.mxu0 %vm675_vm1, %v1573_v27  ;;  %2990 = vmatprep.subr.mxu0 %v3559_v0 }
 0xbed   : > { %2973 = vmatprep.mubr.msk.f32.mxu0 %vm675_vm1, %v1574_v28  ;;  %2991 = vmatpush3.msra.mxu0 %v4239_v25  ;;  %v4246_v28 = vld [vmem:[%s569_s20 + $0x8] sm:$0xff] }
 0xbee   : > { %2992 = vmatprep.subr.mxu0 %v3559_v0 }
 0xbef   : > { %2993 = vmatpush3.msra.mxu0 %v4241_v26 }
 0xbf0   : > { %2974 = vmatmul.mubr.msk.f32.gmra.mxu0 %vm675_vm1, %v1575_v29  ;;  %2994 = vmatprep.subr.mxu0 %v3559_v0 }
 0xbf1   : > { %2995 = vmatpush3.msra.mxu0 %v4246_v28 }
 0xbf2   : > { %2996 = vmatprep.subr.mxu0 %v3559_v0 }
 0xca4   : > { %v1378_v31 = vpop.f32.mrf.mxu0 }
 0xca5   : > { %v1382_v32 = vadd.f32 %v1378_v31, %v781_v30  ;;  %v4255_v30 = vld [vmem:[%s569_s20] sm:$0xff] }
 0xca6   : > { %v2950_v33 = vpop.f32.mrf.mxu0  ;;  %2997 = vmatpush3.msra.mxu0 %v4255_v30 }
 0xca7   : > { %3171 = vtanh.f32 %v1382_v32  ;;  %v1383_v36 = vsub.f32 0.0, %v1382_v32  ;;  %3012 = vmatprep.subr.mxu0 %v3559_v0  ;;  %v2773_v33 = vld [vmem:[%s524_s30 + $0x8] sm:$0xff] }
 0xca9   : > { %v1384_v37 = vmul.f32 1.442695, %v1383_v36 }
 0xcab   : > { %3173 = vpow2.f32 %v1384_v37 }
 0xcb4   : > { %v3172_v35 = vpop.eup %3171 }
 0xcb5   : > { %1396 = vrot.lane.b32.xlu0 %v3172_v35, %s3561_s11 }
 0xcb8   : > { %v3174_v38 = vpop.eup %3173 }
 0xcb9   : > { %v1386_v39 = vadd.f32 1.0, %v3174_v38  ;;  %v2972_v38 = vpop.f32.mrf.mxu0 }
 0xcbb   : > { %3175 = vrcp.f32 %v1386_v39  ;;  %v1668_v39 = vpop.f32.mrf.mxu0 }
 0xcbd   : > { %v4322_v34 = vpop.f32.mrf.mxu0 }
 0xcc8   : > { %v3176_v40 = vpop.eup %3175 }
 0xcc9   : > { %v1394_v45 = vmul.f32 %v3176_v40, %v1392_v44 }
 0xd27   : > { %v1397_v42 = vpop.permute.xlu0 %1396 }
 0xd28   : > { %v1399_v43 = vmul.f32 %v3176_v40, %v1397_v42 }
 0xd2a   : > { %1401 = vrot.lane.b32.xlu0 %v1399_v43, %s3562_s17 }
 0xd2e   : > { %1415 = vrot.lane.b32.xlu0 %v1305_v20, %s3563_s13  ;;  %v2774_v20 = vld [vmem:[%s533_s12 + $0x8] sm:$0xff]  ;;  %s4592_s12 = sld [smem:[#allocation40_spill]] }
 0xd34   : > { %s652_s18 = scalar_lea.vmem %s4592_s12, %s4039_s29  ;;  %s2797_s29 = sshll.u32 %s3652_s23, 8 }
 0xd35   : > { %s4428_s10 = scalar_lea.hbm %s4594_s16, %s2797_s29 }
 0xd9c   : > { %v1402_v46 = vpop.permute.xlu0 %1401 }
 0xd9d   : > { %v1404_v48 = vadd.f32 %v1402_v46, %v1394_v45 }
 0xd9f   : > { %3177 = vtanh.f32 %v1404_v48  ;;  %v1419_v49 = vsel %vm4196_vm6, %v1404_v48, %v1392_v44 }
 0xda0   : > { %1426 = vrot.lane.b32.xlu0 %v1419_v49, %s3563_s13  ;;  %v1416_v51 = vpop.permute.xlu0 %1415 }
 0xdac   : > { %v3178_v50 = vpop.eup %3177 }
 0xdad   : > { %1407 = vrot.lane.b32.xlu1 %v3178_v50, %s3561_s11 }
 0xe12   : > { %v1427_v52 = vpop.permute.xlu0 %1426 }
 0xe13   : > { %1429 = vst.msk [vmem:[#allocation5] sm:$0xff] %vm675_vm1, %v1427_v52 }
 0xe1a   : > { %v1433_v53 = vld [vmem:[#allocation5] sm:$0xff] }
 0xe1b   : > { %1518 = vrot.lane.b32.xlu0 %v1433_v53, %s3562_s17 }
 0xe1f   : > { %v1408_v3 = vpop.permute.xlu1 %1407 }
 0xe20   : > { %v1410_v54 = vmul.f32 %v3176_v40, %v1408_v3  ;;  %v4295_v40 = vld [vmem:[%s652_s18] ss:$0 sm:$0xff] }
 0xe21   : > { %v1669_v42 = vadd.f32 %v4295_v40, %v1668_v39  ;;  %v1684_v41 = vadd.f32 %v4322_v34, %v4295_v40 }
 0xe22   : > { %v1418_v55 = vsel %vm4196_vm6, %v1410_v54, %v1416_v51 }
 0xe23   : > { %1421 = vrot.lane.b32.xlu1 %v1418_v55, %s3562_s17 }
 0xe8d   : > { %v1519_v22 = vpop.permute.xlu0 %1518 }
 0xe95   : > { %v1422_v56 = vpop.permute.xlu1 %1421 }
 0xe96   : > { %1424 = vst.msk [vmem:[#allocation4] sm:$0xff] %vm675_vm1, %v1422_v56  ;;  %1431 = vst.msk [vmem:[#allocation2 + $0x20] sm:$0xff] %vm675_vm1, %v1422_v56 }
 0xe9d   : > { %v1432_v4 = vld [vmem:[#allocation4] sm:$0xff]  ;;  %v1576_v57 = vld [vmem:[#allocation2 + $0x20] sm:$0xff] }
 0xe9e   : > { %2960 = vmatmul.mubr.msk.f32.vlgmr.msra.gmra.mxu1 %vm675_vm1, %v1432_v4  ;;  %2976 = vmatprep.mubr.msk.f32.mxu0 %vm675_vm1, %v1576_v57 }
 0xe9f   : > { %2987 = vmatprep.mubr.msk.f32.mxu1 %vm3560_vm0, %v3559_v0  ;;  %2980 = vmatpush3.msra.mxu1 %v4239_v25 }
 0xea0   : > { %2981 = vmatprep.subr.mxu1 %v3559_v0 }
 0xea1   : > { %2982 = vmatpush3.msra.mxu1 %v4241_v26 }
 0xea2   : > { %2983 = vmatprep.subr.mxu1 %v3559_v0 }
 0xea3   : > { %2984 = vmatpush3.msra.mxu1 %v4246_v28 }
 0xea4   : > { %2985 = vmatprep.subr.mxu1 %v3559_v0 }
 0xea5   : > { %2986 = vmatpush3.msra.mxu1 %v4255_v30 }
 0xea6   : > { %3001 = vmatprep.subr.mxu1 %v3559_v0 }
 0xf5e   : > { %v1505_v58 = vpop.f32.mrf.mxu1 }
 0xf5f   : > { %v1509_v59 = vadd.f32 %v1505_v58, %v786_v7 }
 0xf60   : > { %v2961_v10 = vpop.f32.mrf.mxu1 }
 0xf61   : > { %3179 = vtanh.f32 %v1509_v59  ;;  %v1510_v61 = vsub.f32 0.0, %v1509_v59 }
 0xf63   : > { %v1511_v63 = vmul.f32 1.442695, %v1510_v61 }
 0xf65   : > { %3181 = vpow2.f32 %v1511_v63 }
 0xf6e   : > { %v3180_v60 = vpop.eup %3179 }
 0xf6f   : > { %1523 = vrot.lane.b32.xlu1 %v3180_v60, %s3561_s11 }
 0xf72   : > { %v3182_v1 = vpop.eup %3181 }
 0xf73   : > { %v1513_v2 = vadd.f32 1.0, %v3182_v1 }
 0xf75   : > { %3183 = vrcp.f32 %v1513_v2  ;;  %v1678_v2 = vpop.f32.mrf.mxu0 }
 0xf76   : > { %v1679_v62 = vadd.f32 %v4295_v40, %v1678_v2 }
 0xf82   : > { %v3184_v6 = vpop.eup %3183 }
 0xf83   : > { %v1521_v11 = vmul.f32 %v3184_v6, %v1519_v22 }
 0xfe1   : > { %v1524_v8 = vpop.permute.xlu1 %1523 }
 0xfe2   : > { %v1526_v9 = vmul.f32 %v3184_v6, %v1524_v8 }
 0xfe4   : > { %1528 = vrot.lane.b32.xlu1 %v1526_v9, %s3562_s17  ;;  %v1674_v9 = vadd.f32 %v2972_v38, %v4295_v40 }
 0xfe8   : > { %1542 = vrot.lane.b32.xlu1 %v1432_v4, %s3563_s13 }
0x1056   : > { %v1529_v12 = vpop.permute.xlu1 %1528 }
0x1057   : > { %v1531_v14 = vadd.f32 %v1529_v12, %v1521_v11 }
0x1059   : > { %3185 = vtanh.f32 %v1531_v14  ;;  %v1546_v16 = vsel %vm4221_vm7, %v1531_v14, %v1519_v22 }
0x105a   : > { %1553 = vrot.lane.b32.xlu1 %v1546_v16, %s3563_s13  ;;  %v1543_v18 = vpop.permute.xlu1 %1542 }
0x1066   : > { %v3186_v17 = vpop.eup %3185 }
0x1067   : > { %1534 = vrot.lane.b32.xlu0 %v3186_v17, %s3561_s11 }
0x10cc   : > { %v1554_v19 = vpop.permute.xlu1 %1553 }
0x10cd   : > { %1556 = vst.msk [vmem:[#allocation5] sm:$0xff] %vm675_vm1, %v1554_v19 }
0x10d4   : > { %v1561_v21 = vld [vmem:[#allocation5] sm:$0xff] }
0x10d5   : > { %1708 = vst.msk [vmem:[#allocation5] sm:$0xff] %vm675_vm1, %v2774_v20  ;;  %1562 = vst.msk [vmem:[%s4234_s27] sm:$0xff] %vm675_vm1, %v1561_v21 }
0x10d9   : > { %v1535_v24 = vpop.permute.xlu0 %1534 }
0x10da   : > { %v1537_v27 = vmul.f32 %v3184_v6, %v1535_v24 }
0x10dc   : > { %v1545_v29 = vsel %vm4221_vm7, %v1537_v27, %v1543_v18  ;;  %v1710_v31 = vld [vmem:[#allocation5] sm:$0xff] }
0x10dd   : > { %1548 = vrot.lane.b32.xlu0 %v1545_v29, %s3562_s17  ;;  %1794 = vrot.lane.b32.xlu1 %v1710_v31, %s3562_s17 }
0x114f   : > { %v1549_v32 = vpop.permute.xlu0 %1548  ;;  %v1795_v3 = vpop.permute.xlu1 %1794 }
0x1150   : > { %1551 = vst.msk [vmem:[#allocation4] sm:$0xff] %vm675_vm1, %v1549_v32  ;;  %1558 = vst.msk [vmem:[#allocation2 + $0x28] sm:$0xff] %vm675_vm1, %v1549_v32 }
0x1157   : > { %v1559_v35 = vld [vmem:[#allocation4] sm:$0xff]  ;;  %v1577_v36 = vld [vmem:[#allocation2 + $0x28] sm:$0xff] }
0x1158   : > { %1705 = vst.msk [vmem:[#allocation4] sm:$0xff] %vm675_vm1, %v2773_v33  ;;  %2977 = vmatmul.mubr.msk.f32.gmra.mxu0 %vm675_vm1, %v1577_v36  ;;  %1560 = vst.msk [vmem:[%s4274_s19] sm:$0xff] %vm675_vm1, %v1559_v35 }
0x1159   : > { %2998 = vmatprep.mubr.msk.f32.mxu0 %vm3560_vm0, %v3559_v0 }
0x115f   : > { %v1709_v37 = vld [vmem:[#allocation4] sm:$0xff] }
0x1160   : > { %2988 = vmatmul.mubr.msk.f32.vlgmr.msra.gmra.mxu1 %vm675_vm1, %v1709_v37 }
0x1161   : > { %3002 = vmatpush3.msra.mxu1 %v4239_v25  ;;  %3009 = vmatprep.mubr.msk.f32.mxu1 %vm3560_vm0, %v3559_v0 }
0x1162   : > { %3003 = vmatprep.subr.mxu1 %v3559_v0 }
0x1163   : > { %3004 = vmatpush3.msra.mxu1 %v4241_v26 }
0x1164   : > { %3005 = vmatprep.subr.mxu1 %v3559_v0 }
0x1165   : > { %3006 = vmatpush3.msra.mxu1 %v4246_v28 }
0x1166   : > { %3007 = vmatprep.subr.mxu1 %v3559_v0 }
0x1167   : > { %3008 = vmatpush3.msra.mxu1 %v4255_v30 }
0x1168   : > { %3023 = vmatprep.subr.mxu1 %v3559_v0 }
0x1218   : > { %v4324_v6 = vpop.f32.mrf.mxu0 }
0x121a   : > { %v4326_v8 = vpop.f32.mrf.mxu0 }
0x1220   : > { %v1781_v43 = vpop.f32.mrf.mxu1 }
0x1221   : > { %v1785_v23 = vadd.f32 %v1781_v43, %v1669_v42 }
0x1222   : > { %v2989_v44 = vpop.f32.mrf.mxu1 }
0x1223   : > { %3187 = vtanh.f32 %v1785_v23  ;;  %v1786_v46 = vsub.f32 0.0, %v1785_v23 }
0x1225   : > { %v1787_v48 = vmul.f32 1.442695, %v1786_v46 }
0x1227   : > { %3189 = vpow2.f32 %v1787_v48 }
0x1230   : > { %v3188_v45 = vpop.eup %3187 }
0x1231   : > { %1799 = vrot.lane.b32.xlu0 %v3188_v45, %s3561_s11 }
0x1234   : > { %v3190_v49 = vpop.eup %3189 }
0x1235   : > { %v1789_v50 = vadd.f32 1.0, %v3190_v49 }
0x1237   : > { %3191 = vrcp.f32 %v1789_v50 }
0x1244   : > { %v3192_v51 = vpop.eup %3191 }
0x1245   : > { %v1797_v54 = vmul.f32 %v3192_v51, %v1795_v3 }
0x12a3   : > { %v1800_v52 = vpop.permute.xlu0 %1799 }
0x12a4   : > { %v1802_v53 = vmul.f32 %v3192_v51, %v1800_v52 }
0x12a6   : > { %1804 = vrot.lane.b32.xlu0 %v1802_v53, %s3562_s17 }
0x12aa   : > { %1814 = vrot.lane.b32.xlu0 %v1709_v37, %s3563_s13 }
0x1318   : > { %v1805_v55 = vpop.permute.xlu0 %1804 }
0x1319   : > { %v1807_v56 = vadd.f32 %v1805_v55, %v1797_v54 }
0x131b   : > { %3193 = vtanh.f32 %v1807_v56  ;;  %v1818_v4 = vsel %vm4058_vm2, %v1807_v56, %v1795_v3 }
0x131c   : > { %1825 = vrot.lane.b32.xlu0 %v1818_v4, %s3563_s13  ;;  %v1815_v7 = vpop.permute.xlu0 %1814 }
0x1328   : > { %v3194_v57 = vpop.eup %3193 }
0x1329   : > { %1810 = vrot.lane.b32.xlu1 %v3194_v57, %s3561_s11 }
0x138e   : > { %v1826_v58 = vpop.permute.xlu0 %1825 }
0x138f   : > { %1828 = vst.msk [vmem:[#allocation5] sm:$0xff] %vm675_vm1, %v1826_v58 }
0x1396   : > { %v1830_v59 = vld [vmem:[#allocation5] sm:$0xff] }
0x1397   : > { %1914 = vrot.lane.b32.xlu0 %v1830_v59, %s3562_s17 }
0x139b   : > { %v1811_v10 = vpop.permute.xlu1 %1810 }
0x139c   : > { %v1813_v60 = vmul.f32 %v3192_v51, %v1811_v10 }
0x139e   : > { %v1817_v61 = vsel %vm4058_vm2, %v1813_v60, %v1815_v7 }
0x139f   : > { %1820 = vrot.lane.b32.xlu1 %v1817_v61, %s3562_s17 }
0x1409   : > { %v1915_v24 = vpop.permute.xlu0 %1914 }
0x1411   : > { %v1821_v63 = vpop.permute.xlu1 %1820 }
0x1412   : > { %1823 = vst.msk [vmem:[#allocation4] sm:$0xff] %vm675_vm1, %v1821_v63 }
0x1419   : > { %v1829_v1 = vld [vmem:[#allocation4] sm:$0xff] }
0x141a   : > { %2999 = vmatmul.mubr.msk.f32.vlgmr.msra.gmra.mxu0 %vm675_vm1, %v1829_v1 }
0x141b   : > { %3013 = vmatpush3.msra.mxu0 %v4239_v25  ;;  %3020 = vmatprep.mubr.msk.f32.mxu0 %vm3560_vm0, %v3559_v0 }
0x141c   : > { %3014 = vmatprep.subr.mxu0 %v3559_v0 }
0x141d   : > { %3015 = vmatpush3.msra.mxu0 %v4241_v26 }
0x141e   : > { %3016 = vmatprep.subr.mxu0 %v3559_v0 }
0x141f   : > { %3017 = vmatpush3.msra.mxu0 %v4246_v28 }
0x1420   : > { %3018 = vmatprep.subr.mxu0 %v3559_v0 }
0x1421   : > { %3019 = vmatpush3.msra.mxu0 %v4255_v30 }
0x1422   : > { %3034 = vmatprep.subr.mxu0 %v3559_v0 }
0x14da   : > { %v1901_v15 = vpop.f32.mrf.mxu0 }
0x14db   : > { %v1905_v22 = vadd.f32 %v1901_v15, %v1674_v9 }
0x14dc   : > { %v3000_v11 = vpop.f32.mrf.mxu0 }
0x14dd   : > { %3195 = vtanh.f32 %v1905_v22  ;;  %v1906_v14 = vsub.f32 0.0, %v1905_v22 }
0x14df   : > { %v1907_v16 = vmul.f32 1.442695, %v1906_v14 }
0x14e1   : > { %3197 = vpow2.f32 %v1907_v16 }
0x14ea   : > { %v3196_v12 = vpop.eup %3195 }
0x14eb   : > { %1919 = vrot.lane.b32.xlu1 %v3196_v12, %s3561_s11 }
0x14ee   : > { %v3198_v17 = vpop.eup %3197 }
0x14ef   : > { %v1909_v18 = vadd.f32 1.0, %v3198_v17 }
0x14f1   : > { %3199 = vrcp.f32 %v1909_v18 }
0x14fe   : > { %v3200_v19 = vpop.eup %3199 }
0x14ff   : > { %v1917_v27 = vmul.f32 %v3200_v19, %v1915_v24 }
0x155d   : > { %v1920_v20 = vpop.permute.xlu1 %1919 }
0x155e   : > { %v1922_v21 = vmul.f32 %v3200_v19, %v1920_v20 }
0x1560   : > { %1924 = vrot.lane.b32.xlu1 %v1922_v21, %s3562_s17 }
0x1564   : > { %1934 = vrot.lane.b32.xlu1 %v1829_v1, %s3563_s13 }
0x15d2   : > { %v1925_v29 = vpop.permute.xlu1 %1924 }
0x15d3   : > { %v1927_v31 = vadd.f32 %v1925_v29, %v1917_v27 }
0x15d5   : > { %3201 = vtanh.f32 %v1927_v31  ;;  %v1938_v32 = vsel %vm4090_vm3, %v1927_v31, %v1915_v24 }
0x15d6   : > { %1945 = vrot.lane.b32.xlu1 %v1938_v32, %s3563_s13  ;;  %v1935_v35 = vpop.permute.xlu1 %1934 }
0x15e2   : > { %v3202_v33 = vpop.eup %3201 }
0x15e3   : > { %1930 = vrot.lane.b32.xlu0 %v3202_v33, %s3561_s11 }
0x1648   : > { %v1946_v36 = vpop.permute.xlu1 %1945 }
0x1649   : > { %1948 = vst.msk [vmem:[#allocation5] sm:$0xff] %vm675_vm1, %v1946_v36 }
0x1650   : > { %v1950_v37 = vld [vmem:[#allocation5] sm:$0xff] }
0x1651   : > { %2034 = vrot.lane.b32.xlu1 %v1950_v37, %s3562_s17  ;;  %v1689_v37 = vadd.f32 %v4295_v40, %v4326_v8 }
0x1655   : > { %v1931_v38 = vpop.permute.xlu0 %1930 }
0x1656   : > { %v1933_v39 = vmul.f32 %v3200_v19, %v1931_v38 }
0x1658   : > { %v1937_v42 = vsel %vm4090_vm3, %v1933_v39, %v1935_v35 }
0x1659   : > { %1940 = vrot.lane.b32.xlu0 %v1937_v42, %s3562_s17 }
0x16c3   : > { %v2035_v55 = vpop.permute.xlu1 %2034 }
0x16cb   : > { %v1941_v43 = vpop.permute.xlu0 %1940 }
0x16cc   : > { %1943 = vst.msk [vmem:[#allocation4] sm:$0xff] %vm675_vm1, %v1941_v43 }
0x16d3   : > { %v1949_v23 = vld [vmem:[#allocation4] sm:$0xff] }
0x16d4   : > { %3010 = vmatmul.mubr.msk.f32.vlgmr.msra.gmra.mxu1 %vm675_vm1, %v1949_v23 }
0x16d5   : > { %3024 = vmatpush3.msra.mxu1 %v4239_v25  ;;  %3031 = vmatprep.mubr.msk.f32.mxu1 %vm3560_vm0, %v3559_v0 }
0x16d6   : > { %3025 = vmatprep.subr.mxu1 %v3559_v0 }
0x16d7   : > { %3026 = vmatpush3.msra.mxu1 %v4241_v26 }
0x16d8   : > { %3027 = vmatprep.subr.mxu1 %v3559_v0 }
0x16d9   : > { %3028 = vmatpush3.msra.mxu1 %v4246_v28 }
0x16da   : > { %3029 = vmatprep.subr.mxu1 %v3559_v0 }
0x16db   : > { %3030 = vmatpush3.msra.mxu1 %v4255_v30 }
0x1794   : > { %v2021_v44 = vpop.f32.mrf.mxu1 }
0x1795   : > { %v2025_v45 = vadd.f32 %v2021_v44, %v1679_v62 }
0x1796   : > { %v3011_v46 = vpop.f32.mrf.mxu1 }
0x1797   : > { %3203 = vtanh.f32 %v2025_v45  ;;  %v2026_v49 = vsub.f32 0.0, %v2025_v45 }
0x1799   : > { %v2027_v50 = vmul.f32 1.442695, %v2026_v49 }
0x179b   : > { %3205 = vpow2.f32 %v2027_v50 }
0x17a4   : > { %v3204_v48 = vpop.eup %3203 }
0x17a5   : > { %2039 = vrot.lane.b32.xlu0 %v3204_v48, %s3561_s11 }
0x17a8   : > { %v3206_v51 = vpop.eup %3205 }
0x17a9   : > { %v2029_v52 = vadd.f32 1.0, %v3206_v51 }
0x17ab   : > { %3207 = vrcp.f32 %v2029_v52 }
0x17b8   : > { %v3208_v53 = vpop.eup %3207 }
0x17b9   : > { %v2037_v56 = vmul.f32 %v3208_v53, %v2035_v55 }
0x1817   : > { %v2040_v3 = vpop.permute.xlu0 %2039 }
0x1818   : > { %v2042_v54 = vmul.f32 %v3208_v53, %v2040_v3 }
0x181a   : > { %2044 = vrot.lane.b32.xlu0 %v2042_v54, %s3562_s17 }
0x181e   : > { %2054 = vrot.lane.b32.xlu0 %v1949_v23, %s3563_s13 }
0x188c   : > { %v2045_v4 = vpop.permute.xlu0 %2044 }
0x188d   : > { %v2047_v57 = vadd.f32 %v2045_v4, %v2037_v56 }
0x188f   : > { %3209 = vtanh.f32 %v2047_v57  ;;  %v2058_v7 = vsel %vm4134_vm4, %v2047_v57, %v2035_v55 }
0x1890   : > { %2065 = vrot.lane.b32.xlu0 %v2058_v7, %s3563_s13  ;;  %v2055_v59 = vpop.permute.xlu0 %2054 }
0x189c   : > { %v3210_v58 = vpop.eup %3209 }
0x189d   : > { %2050 = vrot.lane.b32.xlu1 %v3210_v58, %s3561_s11 }
0x1902   : > { %v2066_v10 = vpop.permute.xlu0 %2065 }
0x1903   : > { %2068 = vst.msk [vmem:[#allocation5] sm:$0xff] %vm675_vm1, %v2066_v10 }
0x190a   : > { %v2070_v60 = vld [vmem:[#allocation5] sm:$0xff] }
0x190b   : > { %2154 = vrot.lane.b32.xlu0 %v2070_v60, %s3562_s17 }
0x190f   : > { %v2051_v61 = vpop.permute.xlu1 %2050 }
0x1910   : > { %v2053_v63 = vmul.f32 %v3208_v53, %v2051_v61 }
0x1912   : > { %v2057_v1 = vsel %vm4134_vm4, %v2053_v63, %v2055_v59  ;;  %v1694_v59 = vadd.f32 %v4324_v6, %v4295_v40 }
0x1913   : > { %2060 = vrot.lane.b32.xlu1 %v2057_v1, %s3562_s17 }
0x1985   : > { %v2061_v2 = vpop.permute.xlu1 %2060 }
0x1986   : > { %2063 = vst.msk [vmem:[#allocation4] sm:$0xff] %vm675_vm1, %v2061_v2 }
0x198d   : > { %v2069_v9 = vld [vmem:[#allocation4] sm:$0xff] }
0x198e   : > { %3021 = vmatmul.mubr.msk.f32.vlgmr.msra.gmra.mxu0 %vm675_vm1, %v2069_v9 }
0x198f   : > { %3035 = vmatpush3.msra.mxu0 %v4239_v25  ;;  %3042 = vmatprep.mubr.msk.f32.mxu0 %vm3560_vm0, %v3559_v0 }
0x1990   : > { %3036 = vmatprep.subr.mxu0 %v3559_v0 }
0x1991   : > { %3037 = vmatpush3.msra.mxu0 %v4241_v26 }
0x1992   : > { %3038 = vmatprep.subr.mxu0 %v3559_v0 }
0x1993   : > { %3039 = vmatpush3.msra.mxu0 %v4246_v28 }
0x1994   : > { %3040 = vmatprep.subr.mxu0 %v3559_v0 }
0x1995   : > { %3041 = vmatpush3.msra.mxu0 %v4255_v30  ;;  %v2155_v30 = vpop.permute.xlu0 %2154 }
0x1a4e   : > { %v2141_v15 = vpop.f32.mrf.mxu0 }
0x1a4f   : > { %v2145_v25 = vadd.f32 %v2141_v15, %v1684_v41 }
0x1a50   : > { %v3022_v22 = vpop.f32.mrf.mxu0 }
0x1a51   : > { %3211 = vtanh.f32 %v2145_v25  ;;  %v2146_v12 = vsub.f32 0.0, %v2145_v25 }
0x1a53   : > { %v2147_v26 = vmul.f32 1.442695, %v2146_v12 }
0x1a55   : > { %3213 = vpow2.f32 %v2147_v26 }
0x1a5e   : > { %v3212_v11 = vpop.eup %3211 }
0x1a5f   : > { %2159 = vrot.lane.b32.xlu1 %v3212_v11, %s3561_s11 }
0x1a62   : > { %v3214_v14 = vpop.eup %3213 }
0x1a63   : > { %v2149_v16 = vadd.f32 1.0, %v3214_v14 }
0x1a65   : > { %3215 = vrcp.f32 %v2149_v16 }
0x1a72   : > { %v3216_v28 = vpop.eup %3215 }
0x1a73   : > { %v2157_v34 = vmul.f32 %v3216_v28, %v2155_v30 }
0x1ad1   : > { %v2160_v0 = vpop.permute.xlu1 %2159 }
0x1ad2   : > { %v2162_v17 = vmul.f32 %v3216_v28, %v2160_v0 }
0x1ad4   : > { %2164 = vrot.lane.b32.xlu1 %v2162_v17, %s3562_s17 }
0x1ad8   : > { %2174 = vrot.lane.b32.xlu1 %v2069_v9, %s3563_s13 }
0x1b46   : > { %v2165_v18 = vpop.permute.xlu1 %2164 }
0x1b47   : > { %v2167_v19 = vadd.f32 %v2165_v18, %v2157_v34 }
0x1b49   : > { %3217 = vtanh.f32 %v2167_v19  ;;  %v2178_v20 = vsel %vm4165_vm5, %v2167_v19, %v2155_v30 }
0x1b4a   : > { %2185 = vrot.lane.b32.xlu1 %v2178_v20, %s3563_s13  ;;  %v2175_v24 = vpop.permute.xlu1 %2174 }
0x1b56   : > { %v3218_v21 = vpop.eup %3217 }
0x1b57   : > { %2170 = vrot.lane.b32.xlu0 %v3218_v21, %s3561_s11 }
0x1bbc   : > { %v2186_v27 = vpop.permute.xlu1 %2185 }
0x1bbd   : > { %2188 = vst.msk [vmem:[#allocation5] sm:$0xff] %vm675_vm1, %v2186_v27 }
0x1bc4   : > { %v2190_v29 = vld [vmem:[#allocation5] sm:$0xff] }
0x1bc5   : > { %2274 = vrot.lane.b32.xlu1 %v2190_v29, %s3562_s17 }
0x1bc9   : > { %v2171_v31 = vpop.permute.xlu0 %2170 }
0x1bca   : > { %v2173_v32 = vmul.f32 %v3216_v28, %v2171_v31 }
0x1bcc   : > { %v2177_v33 = vsel %vm4165_vm5, %v2173_v32, %v2175_v24 }
0x1bcd   : > { %2180 = vrot.lane.b32.xlu0 %v2177_v33, %s3562_s17 }
0x1c37   : > { %v2275_v8 = vpop.permute.xlu1 %2274 }
0x1c3f   : > { %v2181_v35 = vpop.permute.xlu0 %2180 }
0x1c40   : > { %2183 = vst.msk [vmem:[#allocation4] sm:$0xff] %vm675_vm1, %v2181_v35 }
0x1c47   : > { %v2189_v36 = vld [vmem:[#allocation4] sm:$0xff] }
0x1c48   : > { %3032 = vmatmul.mubr.msk.f32.vlgmr.msra.gmra.mxu1 %vm675_vm1, %v2189_v36 }
0x1d08   : > { %v2261_v38 = vpop.f32.mrf.mxu1 }
0x1d09   : > { %v2265_v39 = vadd.f32 %v2261_v38, %v1689_v37 }
0x1d0a   : > { %v3033_v42 = vpop.f32.mrf.mxu1 }
0x1d0b   : > { %3219 = vtanh.f32 %v2265_v39  ;;  %v2266_v5 = vsub.f32 0.0, %v2265_v39 }
0x1d0d   : > { %v2267_v23 = vmul.f32 1.442695, %v2266_v5 }
0x1d0f   : > { %3221 = vpow2.f32 %v2267_v23 }
0x1d18   : > { %v3220_v43 = vpop.eup %3219 }
0x1d19   : > { %2279 = vrot.lane.b32.xlu0 %v3220_v43, %s3561_s11 }
0x1d1c   : > { %v3222_v62 = vpop.eup %3221 }
0x1d1d   : > { %v2269_v44 = vadd.f32 1.0, %v3222_v62 }
0x1d1f   : > { %3223 = vrcp.f32 %v2269_v44 }
0x1d2c   : > { %v3224_v45 = vpop.eup %3223 }
0x1d2d   : > { %v2277_v49 = vmul.f32 %v3224_v45, %v2275_v8 }
0x1d8b   : > { %v2280_v46 = vpop.permute.xlu0 %2279 }
0x1d8c   : > { %v2282_v48 = vmul.f32 %v3224_v45, %v2280_v46 }
0x1d8e   : > { %2284 = vrot.lane.b32.xlu0 %v2282_v48, %s3562_s17 }
0x1d92   : > { %2294 = vrot.lane.b32.xlu0 %v2189_v36, %s3563_s13 }
0x1e00   : > { %v2285_v50 = vpop.permute.xlu0 %2284 }
0x1e01   : > { %v2287_v51 = vadd.f32 %v2285_v50, %v2277_v49 }
0x1e03   : > { %3225 = vtanh.f32 %v2287_v51  ;;  %v2298_v52 = vsel %vm4196_vm6, %v2287_v51, %v2275_v8 }
0x1e04   : > { %2305 = vrot.lane.b32.xlu0 %v2298_v52, %s3563_s13  ;;  %v2295_v3 = vpop.permute.xlu0 %2294 }
0x1e10   : > { %v3226_v53 = vpop.eup %3225 }
0x1e11   : > { %2290 = vrot.lane.b32.xlu1 %v3226_v53, %s3561_s11 }
0x1e76   : > { %v2306_v54 = vpop.permute.xlu0 %2305 }
0x1e77   : > { %2308 = vst.msk [vmem:[#allocation5] sm:$0xff] %vm675_vm1, %v2306_v54 }
0x1e7e   : > { %v2310_v55 = vld [vmem:[#allocation5] sm:$0xff] }
0x1e7f   : > { %2394 = vrot.lane.b32.xlu0 %v2310_v55, %s3562_s17 }
0x1e83   : > { %v2291_v56 = vpop.permute.xlu1 %2290 }
0x1e84   : > { %v2293_v4 = vmul.f32 %v3224_v45, %v2291_v56 }
0x1e86   : > { %v2297_v57 = vsel %vm4196_vm6, %v2293_v4, %v2295_v3 }
0x1e87   : > { %2300 = vrot.lane.b32.xlu1 %v2297_v57, %s3562_s17 }
0x1ef1   : > { %v2395_v40 = vpop.permute.xlu0 %2394 }
0x1ef9   : > { %v2301_v7 = vpop.permute.xlu1 %2300 }
0x1efa   : > { %2303 = vst.msk [vmem:[#allocation4] sm:$0xff] %vm675_vm1, %v2301_v7 }
0x1f01   : > { %v2309_v58 = vld [vmem:[#allocation4] sm:$0xff] }
0x1f02   : > { %3043 = vmatmul.mubr.msk.f32.vlgmr.msra.gmra.mxu0 %vm675_vm1, %v2309_v58 }
0x1fc2   : > { %v2381_v10 = vpop.f32.mrf.mxu0 }
0x1fc3   : > { %v2385_v60 = vadd.f32 %v2381_v10, %v1694_v59 }
0x1fc4   : > { %v3044_v61 = vpop.f32.mrf.mxu0 }
0x1fc5   : > { %3227 = vtanh.f32 %v2385_v60  ;;  %v2386_v47 = vsub.f32 0.0, %v2385_v60 }
0x1fc7   : > { %v2387_v1 = vmul.f32 1.442695, %v2386_v47 }
0x1fc9   : > { %3229 = vpow2.f32 %v2387_v1 }
0x1fd2   : > { %v3228_v63 = vpop.eup %3227 }
0x1fd3   : > { %2399 = vrot.lane.b32.xlu1 %v3228_v63, %s3561_s11 }
0x1fd6   : > { %v3230_v2 = vpop.eup %3229 }
0x1fd7   : > { %v2389_v9 = vadd.f32 1.0, %v3230_v2 }
0x1fd9   : > { %3231 = vrcp.f32 %v2389_v9 }
0x1fe6   : > { %v3232_v41 = vpop.eup %3231 }
0x1fe7   : > { %v2397_v6 = vmul.f32 %v3232_v41, %v2395_v40 }
0x2045   : > { %v2400_v15 = vpop.permute.xlu1 %2399 }
0x2046   : > { %v2402_v25 = vmul.f32 %v3232_v41, %v2400_v15 }
0x2048   : > { %2404 = vrot.lane.b32.xlu1 %v2402_v25, %s3562_s17 }
0x204c   : > { %2414 = vrot.lane.b32.xlu1 %v2309_v58, %s3563_s13 }
0x20ba   : > { %v2405_v22 = vpop.permute.xlu1 %2404 }
0x20bb   : > { %v2407_v11 = vadd.f32 %v2405_v22, %v2397_v6 }
0x20bd   : > { %3233 = vtanh.f32 %v2407_v11  ;;  %v2418_v12 = vsel %vm4221_vm7, %v2407_v11, %v2395_v40 }
0x20be   : > { %2425 = vrot.lane.b32.xlu1 %v2418_v12, %s3563_s13  ;;  %v2415_v14 = vpop.permute.xlu1 %2414  ;;  %s2441_s13 = scalar_lea.sflag [#allocation22], %s3952_s25 }
0x20ca   : > { %v3234_v26 = vpop.eup %3233 }
0x20cb   : > { %2410 = vrot.lane.b32.xlu0 %v3234_v26, %s3561_s11  ;;  %s2470_s11 = sshll.u32 %s4234_s27, 4  ;;  %s4432_s11 = int_to_ptr.vmem [resolvable:$true] %s2470_s11 }
0x20cc   : > { %s3439_s4 = scalar_lea.vmem %s4432_s11, 256  ;;  %p3446_p9 = scmp.lt.s32.totalorder %s4432_s11, %s3444_s0 }
0x20cd   : > { %p3440_p10 = scmp.ne.s32.totalorder %s4432_s11, %s3439_s4  ;;  %p3447_p1 = scmp.lt.s32.totalorder %s3445_s9, %s3439_s4 }
0x20cf   : > { %p3441_p2 = pnand %p3440_p10, %p4595_p0  ;;  %p3448_p12 = por %p3447_p1, %p3446_p9 }
0x20d1   : > { %p3442_p6 = pneg %p3441_p2 }
0x20d3   : > { %p3449_p13 = pnand %p3448_p12, %p3442_p6 }
0x2130   : > { %v2426_v16 = vpop.permute.xlu1 %2425 }
0x2131   : > { %2428 = vst.msk [vmem:[#allocation5] sm:$0xff] %vm675_vm1, %v2426_v16 }
0x2138   : > { %v2432_v28 = vld [vmem:[#allocation5] sm:$0xff] }
0x2139   : > { %2782 = vst.msk [vmem:[%s4234_s27 + $0x8] sm:$0xff] %vm675_vm1, %v2432_v28 }
0x213d   : > { %v2411_v0 = vpop.permute.xlu0 %2410 }
0x213e   : > { %v2413_v17 = vmul.f32 %v3232_v41, %v2411_v0 }
0x2140   : > { %v2417_v30 = vsel %vm4221_vm7, %v2413_v17, %v2415_v14 }
0x2141   : > { %2420 = vrot.lane.b32.xlu0 %v2417_v30, %s3562_s17 }
0x2142   : > { %3452 = shalt.err (!%p3449_p13)
}
0x2143   : > { %s3453_s17 = scalar_lea.hbm %s4428_s10, 256  ;;  %s3457_s6 = scalar_lea.hbm %s4594_s16, 512 }
0x2144   : > { %p3454_p3 = scmp.ne.s32.totalorder %s4428_s10, %s3453_s17  ;;  %p3458_p5 = scmp.lt.s32.totalorder %s4428_s10, %s4594_s16 }
0x2145   : > { %p3459_p7 = scmp.lt.s32.totalorder %s3457_s6, %s3453_s17 }
0x2146   : > { %p3455_p11 = pnand %p3454_p3, %p4595_p0 }
0x2147   : > { %p3460_p8 = por %p3459_p7, %p3458_p5 }
0x2148   : > { %p3456_p4 = pneg %p3455_p11 }
0x214a   : > { %p3461_p10 = pnand %p3460_p8, %p3456_p4 }
0x214c   : > { %3464 = shalt.err (!%p3461_p10)
}
0x214d   : > { %s3565_s15 = smov 128   ;;  %s3566_s30 = smov 8  }
0x214e   : > { %3063 = dma.vmem_to_hbm [thread:$0]  (%p4595_p0), %s4432_s11, 256, %s4428_s10, %s2441_s13, %s3565_s15, %s3565_s15, %s3566_s30  }
0x214f   : > { %s2454_s12 = sshll.u32 %s4274_s19, 4  ;;  %s4596_s2 = sld [smem:[#allocation41_spill]]  ;;  %s4469_s12 = int_to_ptr.vmem [resolvable:$true] %s2454_s12 }
0x2150   : > { %s2436_s28 = scalar_lea.sflag [#allocation10], %s3952_s25  ;;  %s3465_s10 = scalar_lea.vmem %s4469_s12, 256 }
0x2151   : > { %p3466_p2 = scmp.ne.s32.totalorder %s4469_s12, %s3465_s10  ;;  %s3567_s23 = smov [#allocation20]  }
0x2152   : > { %s3469_s11 = sshll.u32 %s3567_s23, 4  ;;  %s3470_s11 = int_to_ptr.vmem [resolvable:$false] %s3469_s11 }
0x2153   : > { %p3467_p6 = pnand %p3466_p2, %p4595_p0  ;;  %s3471_s13 = scalar_lea.vmem %s3470_s11, 512 }
0x2154   : > { %p3472_p1 = scmp.lt.s32.totalorder %s4469_s12, %s3470_s11  ;;  %p3473_p12 = scmp.lt.s32.totalorder %s3471_s13, %s3465_s10 }
0x2155   : > { %s4467_s4 = scalar_lea.hbm %s4596_s2, %s2797_s29  ;;  %p3468_p9 = pneg %p3467_p6 }
0x2156   : > { %p3474_p13 = por %p3473_p12, %p3472_p1 }
0x2158   : > { %p3475_p3 = pnand %p3474_p13, %p3468_p9 }
0x21b3   : > { %v2421_v13 = vpop.permute.xlu0 %2420 }
0x21b4   : > { %2423 = vst.msk [vmem:[#allocation4] sm:$0xff] %vm675_vm1, %v2421_v13 }
0x21bb   : > { %v2429_v34 = vld [vmem:[#allocation4] sm:$0xff] }
0x21bc   : > { %2781 = vst.msk [vmem:[%s4274_s19 + $0x8] sm:$0xff] %vm675_vm1, %v2429_v34 }
0x21bd   : > { %3478 = shalt.err (!%p3475_p3)
}
0x21be   : > { %s3479_s19 = scalar_lea.hbm %s4467_s4, 256  ;;  %s3483_s0 = scalar_lea.hbm %s4596_s2, 512 }
0x21bf   : > { %p3480_p11 = scmp.ne.s32.totalorder %s4467_s4, %s3479_s19  ;;  %p3484_p7 = scmp.lt.s32.totalorder %s4467_s4, %s4596_s2 }
0x21c0   : > { %p3485_p8 = scmp.lt.s32.totalorder %s3483_s0, %s3479_s19 }
0x21c1   : > { %p3481_p4 = pnand %p3480_p11, %p4595_p0 }
0x21c2   : > { %p3486_p10 = por %p3485_p8, %p3484_p7 }
0x21c3   : > { %p3482_p5 = pneg %p3481_p4 }
0x21c5   : > { %p3487_p2 = pnand %p3486_p10, %p3482_p5 }
0x21c7   : > { %3490 = shalt.err (!%p3487_p2)
}
0x21c8   : > { %3062 = dma.vmem_to_hbm [thread:$0]  (%p4595_p0), %s4469_s12, 256, %s4467_s4, %s2436_s28, %s3565_s15, %s3565_s15, %s3566_s30  }
0x21c9 PF: > { %s4597_s14 = sld [smem:[#allocation30_spill]]  ;;  %p4600_p9 = scmp.ge.s32.totalorder %s3547_s22, 2 }
0x21ca   : > { %s4598_s24 = sld [smem:[#allocation35_spill]] }
0x21cf   : > { %s2485_s6 = sand.u32 1, %s4597_s14  }
0x21d0   : > { %p4599_p6 = scmp.ne.s32.totalorder %s4598_s24, 0  ;;  %s2486_s27 = scalar_lea.sflag [#allocation10], %s2485_s6 }
0x21d2   : > { %p3089_p1 = pnand %p4600_p9, %p4599_p6 }
0x21d4   : > { %p3090_p12 = pneg %p3089_p1 }
0x21d6   : > { %3526 = dma.done.wait (%p3090_p12), %s2486_s27, 256  }
0x21d7   : > { %3528 = vsyncadd (%p3090_p12), %s2486_s27, 4294967040  ;;  %s2495_s20 = scalar_lea.sflag [#allocation22], %s2485_s6 }
0x21d8   : > { %3530 = dma.done.wait (%p3090_p12), %s2495_s20, 256  }
0x21d9   : > { %3532 = vsyncadd (%p3090_p12), %s2495_s20, 4294967040  ;;  %s4601_s22 = sld [smem:[#allocation32_spill]]  ;;  %s4604_s20 = smov %s3539_s21 }
0x21da   : > { %s4602_s26 = sld [smem:[#allocation31_spill]] }
0x21db   : > { %s4603_s0 = sld [smem:[#allocation33_spill]] }
0x21df   : > { %p41_p0 = scmp.ge.s32.totalorder %s4601_s22, 4  }
0x21e0   : > { %s4605_s21 = smov %s4602_s26 }
0x21e1   :  { %43 = sbr.rel (!%p41_p0) target bundleno = 25 (0x19), region = 210 }
0x21e6   :  { %2500 = vsyncpa [#allocation9], 1 }
0x21e7   :  { %2502 = vsyncpa [#allocation9 + $0x1], 1 }
0x21e8   :  { %2503 = vsyncpa [#allocation12], 1 }
0x21e9   :  { %2505 = vsyncpa [#allocation12 + $0x1], 1 }
0x21ea   :  { %2506 = vsyncpa [#allocation15], 1 }
0x21eb   :  { %2508 = vsyncpa [#allocation15 + $0x1], 1 }
0x21ec   :  { %2509 = vsyncpa [#allocation18], 1 }
0x21ed   :  { %2511 = vsyncpa [#allocation18 + $0x1], 1 }
0x21ee   :  { %2512 = vsyncpa [#allocation10], 1 }
0x21ef   :  { %2514 = vsyncpa [#allocation10 + $0x1], 1 }
0x21f0   :  { %2515 = vsyncpa [#allocation22], 1 }
0x21f1   :  { %2517 = vsyncpa [#allocation22 + $0x1], 1 }

</bundles_post_ra>
